<compile_context>
chip_gen: v7x
topology: tpu7x:2x2x1
jax: 0.10.0
libtpu: 0.0.40
codegen_flags: <defaults>
</compile_context>

<pallas_src>
import math
from functools import partial

import jax
import jax.numpy as jnp
from jax.experimental import pallas as pl
from jax.experimental.pallas import tpu as pltpu

_VMEM_LIMIT = 48 * 1024 * 1024        # above v5e's 16 MiB default, inside v7x's 64 MiB
_K_FULL_MAX = 2048                    # K <= this => single full-extent K tile, no acc scratch
_GN_FUSED_BYTES = 2 * 1024 * 1024     # bf16 bytes of one (HW, C) slab to use the fused GN kernel
_GN_TILE_BYTES = 2 * 1024 * 1024      # per-block budget for the streaming GN path


def _round_up(x, m):
    return (x + m - 1) // m * m


def _silu(y):
    # y * sigmoid(y).  Only yields NaN for y = +-inf; activations here are finite.
    return y * (1.0 / (1.0 + jnp.exp(-y)))


# ---------------------------------------------------------------------------
# Tile selection for the matmul kernel.
# ---------------------------------------------------------------------------
def _pick_m_tile(m):
    # Prefer >=2 tiles of 1024/512/256 rows with <=25% padding; otherwise one
    # 16-row-aligned full-extent tile (bf16 packs 16 rows per vreg).
    for tm in (1024, 512, 256):
        mp = _round_up(m, tm)
        if m >= 2 * tm and (mp - m) * 4 <= m:
            return tm, mp
    tm = _round_up(m, 16)
    return tm, tm


def _pick_k_tile(k):
    if k <= _K_FULL_MAX:
        return k                       # single full-extent K tile
    for t in (512, 256, 128):
        if k % t == 0:
            return t
    return k


def _pick_n_tile(n):
    if n <= 1024:
        return n                       # single full-extent, lane-dense N tile
    for t in (1024, 512, 256, 128):
        if n % t == 0:
            return t
    return n


# ---------------------------------------------------------------------------
# Pallas kernel 1: tiled matmul   y = silu?(x @ w + b) [+ residual]
#   multi-K : grid = (M/tm, N/tn, K/tk), K innermost, f32 acc scratch (tm, tn)
#   single-K: grid = (M/tm, N/tn), no scratch, epilogue fused into the dot step
# ---------------------------------------------------------------------------
def _mm_kernel(silu_out, add_res, multi_k):
    def kernel(*refs):
        if multi_k:
            *ins, o_ref, acc_ref = refs
        else:
            *ins, o_ref = refs
            acc_ref = None
        if add_res:
            x_ref, w_ref, b_ref, r_ref = ins
        else:
            x_ref, w_ref, b_ref = ins
            r_ref = None

        def epilogue(acc):
            y = acc + b_ref[...]
            if silu_out:
                y = _silu(y)
            if add_res:
                y = y + r_ref[...].astype(jnp.float32)
            o_ref[...] = y.astype(o_ref.dtype)

        if multi_k:
            k = pl.program_id(2)

            @pl.when(k == 0)
            def _():
                acc_ref[...] = jnp.zeros_like(acc_ref)

            acc_ref[...] += jnp.dot(x_ref[...], w_ref[...],
                                    preferred_element_type=jnp.float32)

            @pl.when(k == pl.num_programs(2) - 1)
            def _():
                epilogue(acc_ref[...])
        else:
            epilogue(jnp.dot(x_ref[...], w_ref[...],
                             preferred_element_type=jnp.float32))

    return kernel


@partial(jax.jit, static_argnames=("silu_out",))
def matmul_pallas(x, w, b, residual=None, *, silu_out=False):
    """y = silu?(x @ w + b) (+ residual).  x:(M,K) bf16, w:(K,N) bf16 (pre-padded),
    b:(1,N) f32, residual:(M,N) bf16.  Returns (M,N) bf16."""
    M, K = x.shape
    K2, N = w.shape
    assert K == K2, (K, K2)
    # Fail loudly instead of silently falling back to a VMEM-busting full-K tile.
    assert K <= _K_FULL_MAX or K % 512 == 0, f"pad K={K} to a multiple of 512 via _prep_matmul"

    tm, Mp = _pick_m_tile(M)
    tk = _pick_k_tile(K)
    tn = _pick_n_tile(N)
    # v7x megacore: when the M axis has a single tile, split N so the parallel
    # grid has >=2 points (each TensorCore streams half the weights).
    if Mp // tm == 1 and tn == N and N >= 512 and N % 256 == 0:
        tn = N // 2
    assert K % tk == 0 and N % tn == 0, (K, tk, N, tn)
    multi_k = (K // tk) > 1

    x = x.astype(jnp.bfloat16)
    if Mp != M:
        x = jnp.pad(x, ((0, Mp - M), (0, 0)))

    add_res = residual is not None
    args = [x, w.astype(jnp.bfloat16), b.astype(jnp.float32)]
    if multi_k:
        in_specs = [pl.BlockSpec((tm, tk), lambda i, j, k: (i, k)),
                    pl.BlockSpec((tk, tn), lambda i, j, k: (k, j)),
                    pl.BlockSpec((1, tn), lambda i, j, k: (0, j))]
        res_spec = pl.BlockSpec((tm, tn), lambda i, j, k: (i, j))
        out_spec = pl.BlockSpec((tm, tn), lambda i, j, k: (i, j))
        grid = (Mp // tm, N // tn, K // tk)
        sems = ("parallel", "parallel", "arbitrary")
        scratch = [pltpu.VMEM((tm, tn), jnp.float32)]
    else:
        in_specs = [pl.BlockSpec((tm, tk), lambda i, j: (i, 0)),
                    pl.BlockSpec((tk, tn), lambda i, j: (0, j)),
                    pl.BlockSpec((1, tn), lambda i, j: (0, j))]
        res_spec = pl.BlockSpec((tm, tn), lambda i, j: (i, j))
        out_spec = pl.BlockSpec((tm, tn), lambda i, j: (i, j))
        grid = (Mp // tm, N // tn)
        sems = ("parallel", "parallel")
        scratch = []
    if add_res:
        r = residual.astype(jnp.bfloat16)
        if Mp != M:
            r = jnp.pad(r, ((0, Mp - M), (0, 0)))
        args.append(r)
        in_specs.append(res_spec)

    out = pl.pallas_call(
        _mm_kernel(silu_out, add_res, multi_k),
        out_shape=jax.ShapeDtypeStruct((Mp, N), jnp.bfloat16),
        grid_spec=pltpu.PrefetchScalarGridSpec(
            num_scalar_prefetch=0,
            grid=grid,
            in_specs=in_specs,
            out_specs=out_spec,
            scratch_shapes=scratch),
        compiler_params=pltpu.CompilerParams(
            dimension_semantics=sems,
            vmem_limit_bytes=_VMEM_LIMIT),
    )(*args)
    return out if Mp == M else out[:M]


# ---------------------------------------------------------------------------
# Pallas kernels 2-4: GroupNorm(32, C) + FiLM + SiLU over NHWC.
#   * fused single kernel (x slab resident in VMEM, exact two-pass mean/var)
#   * streaming fallback: stats kernel (shifted variance) + apply kernel
# ---------------------------------------------------------------------------
def _group_onehot(c):
    gidx = jnp.arange(c) // (c // 32)
    g = (gidx[:, None] == jnp.arange(32)[None, :]).astype(jnp.float32)   # (C, 32)
    return g, g.T


def _pick_hw_tile(hw, c):
    budget = max(16, _GN_TILE_BYTES // (2 * c))
    if hw <= budget:
        return hw
    for step in (16, 8):                       # 16-row steps match bf16 sublane packing
        d = (budget // step) * step
        while d >= step:
            if hw % d == 0:
                return d
            d -= step
    return hw   # TODO(synk): no aligned divisor found; falls back to one full-extent tile.


def _gn_fused_kernel_factory(hw, c):
    n_g = float(hw * (c // 32))
    eps = 1e-5

    def kernel(x_ref, g_ref, gt_ref, gb_ref, o_ref):
        x = x_ref[0].astype(jnp.float32)                                 # (HW, C)
        mean_g = jnp.dot(jnp.sum(x, axis=0, keepdims=True), g_ref[...],
                         preferred_element_type=jnp.float32) / n_g       # (1, 32)
        mean_c = jnp.dot(mean_g, gt_ref[...],
                         preferred_element_type=jnp.float32)             # (1, C)
        xc = x - mean_c
        var_g = jnp.dot(jnp.sum(xc * xc, axis=0, keepdims=True), g_ref[...],
                        preferred_element_type=jnp.float32) / n_g
        rstd_c = jnp.dot(jax.lax.rsqrt(var_g + eps), gt_ref[...],
                         preferred_element_type=jnp.float32)             # (1, C)
        gb = gb_ref[0]                                                   # (2, C): g_eff, b_eff
        scale = rstd_c * gb[0:1, :]
        shift = gb[1:2, :] - mean_c * scale
        y = x * scale + shift
        o_ref[0] = _silu(y).astype(o_ref.dtype)

    return kernel


@jax.jit
def _gn_fused(x3, gb):
    B, HW, C = x3.shape
    G, GT = _group_onehot(C)
    return pl.pallas_call(
        _gn_fused_kernel_factory(HW, C),
        out_shape=jax.ShapeDtypeStruct((B, HW, C), jnp.bfloat16),
        grid_spec=pltpu.PrefetchScalarGridSpec(
            num_scalar_prefetch=0,
            grid=(B,),
            in_specs=[pl.BlockSpec((1, HW, C), lambda b: (b, 0, 0)),
                      pl.BlockSpec((C, 32), lambda b: (0, 0)),
                      pl.BlockSpec((32, C), lambda b: (0, 0)),
                      pl.BlockSpec((1, 2, C), lambda b: (b, 0, 0))],
            out_specs=pl.BlockSpec((1, HW, C), lambda b: (b, 0, 0)),
        ),
        compiler_params=pltpu.CompilerParams(
            dimension_semantics=("parallel",),
            vmem_limit_bytes=_VMEM_LIMIT),
    )(x3, G, GT, gb)


def _gn_stats_kernel_factory(hw, c, thw):
    n_g = float(hw * (c // 32))
    eps = 1e-5
    inv_thw = 1.0 / float(thw)

    def kernel(x_ref, g_ref, gt_ref, o_ref, sh_ref, s_ref, q_ref):
        i = pl.program_id(1)
        x = x_ref[0].astype(jnp.float32)                                 # (thw, C)

        @pl.when(i == 0)
        def _():
            # Per-channel shift = mean of the first tile (kills E[x^2]-E[x]^2 cancellation).
            sh_ref[...] = jnp.sum(x, axis=0, keepdims=True) * inv_thw
            s_ref[...] = jnp.zeros_like(s_ref)
            q_ref[...] = jnp.zeros_like(q_ref)

        xs = x - sh_ref[...]
        s_ref[...] += jnp.sum(xs, axis=0, keepdims=True)                 # (1, C)
        q_ref[...] += jnp.sum(xs * xs, axis=0, keepdims=True)            # (1, C)

        @pl.when(i == pl.num_programs(1) - 1)
        def _():
            sh, s, q = sh_ref[...], s_ref[...], q_ref[...]
            sum_g = jnp.dot(s + hw * sh, g_ref[...],
                            preferred_element_type=jnp.float32)          # (1, 32)
            mean_g = sum_g / n_g
            mean_c = jnp.dot(mean_g, gt_ref[...],
                             preferred_element_type=jnp.float32)         # (1, C)
            d = sh - mean_c
            contrib = q + 2.0 * d * s + hw * d * d                       # (1, C), all benign terms
            var_g = jnp.dot(contrib, g_ref[...],
                            preferred_element_type=jnp.float32) / n_g
            var_g = jnp.maximum(var_g, 0.0)
            rstd_c = jnp.dot(jax.lax.rsqrt(var_g + eps), gt_ref[...],
                             preferred_element_type=jnp.float32)
            o_ref[0] = jnp.concatenate([mean_c, rstd_c], axis=0)         # (2, C)

    return kernel


@partial(jax.jit, static_argnames=("thw",))
def _gn_stats(x3, *, thw):
    B, HW, C = x3.shape
    G, GT = _group_onehot(C)
    return pl.pallas_call(
        _gn_stats_kernel_factory(HW, C, thw),
        out_shape=jax.ShapeDtypeStruct((B, 2, C), jnp.float32),
        grid_spec=pltpu.PrefetchScalarGridSpec(
            num_scalar_prefetch=0,
            grid=(B, HW // thw),
            in_specs=[pl.BlockSpec((1, thw, C), lambda b, i: (b, i, 0)),
                      pl.BlockSpec((C, 32), lambda b, i: (0, 0)),
                      pl.BlockSpec((32, C), lambda b, i: (0, 0))],
            out_specs=pl.BlockSpec((1, 2, C), lambda b, i: (b, 0, 0)),
            scratch_shapes=[pltpu.VMEM((1, C), jnp.float32),
                            pltpu.VMEM((1, C), jnp.float32),
                            pltpu.VMEM((1, C), jnp.float32)],
        ),
        compiler_params=pltpu.CompilerParams(
            dimension_semantics=("parallel", "arbitrary"),
            vmem_limit_bytes=_VMEM_LIMIT),
    )(x3, G, GT)


def _gn_apply_kernel(x_ref, ss_ref, o_ref):
    x = x_ref[0].astype(jnp.float32)         # (thw, C)
    s = ss_ref[0]                            # (2, C): [scale, shift]
    y = x * s[0:1, :] + s[1:2, :]
    o_ref[0] = _silu(y).astype(o_ref.dtype)


@partial(jax.jit, static_argnames=("thw",))
def _gn_apply(x3, ss, *, thw):
    B, HW, C = x3.shape
    return pl.pallas_call(
        _gn_apply_kernel,
        out_shape=jax.ShapeDtypeStruct((B, HW, C), jnp.bfloat16),
        grid_spec=pltpu.PrefetchScalarGridSpec(
            num_scalar_prefetch=0,
            grid=(B, HW // thw),
            in_specs=[pl.BlockSpec((1, thw, C), lambda b, i: (b, i, 0)),
                      pl.BlockSpec((1, 2, C), lambda b, i: (b, 0, 0))],
            out_specs=pl.BlockSpec((1, thw, C), lambda b, i: (b, i, 0)),
        ),
        compiler_params=pltpu.CompilerParams(
            dimension_semantics=("parallel", "parallel"),
            vmem_limit_bytes=_VMEM_LIMIT),
    )(x3, ss)


def group_norm_silu(x, p, film=None):
    """silu( GN32(x; gamma,beta) [* (t1+1) + t2] ) over NHWC."""
    B, H, W, C = x.shape
    x3 = x.reshape(B, H * W, C)
    gamma = p['g'].astype(jnp.float32)
    beta = p['b'].astype(jnp.float32)
    if film is None:
        g_eff = jnp.broadcast_to(gamma[None, :], (B, C))
        b_eff = jnp.broadcast_to(beta[None, :], (B, C))
    else:
        t1, t2 = film
        t1 = t1.astype(jnp.float32)
        t2 = t2.astype(jnp.float32)
        g_eff = gamma[None, :] * (t1 + 1.0)
        b_eff = beta[None, :] * (t1 + 1.0) + t2

    if H * W * C * 2 <= _GN_FUSED_BYTES:
        y3 = _gn_fused(x3, jnp.stack([g_eff, b_eff], axis=1))
    else:
        thw = _pick_hw_tile(H * W, C)
        stats = _gn_stats(x3, thw=thw)
        mean, rstd = stats[:, 0, :], stats[:, 1, :]
        scale = rstd * g_eff
        shift = b_eff - mean * scale
        y3 = _gn_apply(x3, jnp.stack([scale, shift], axis=1), thw=thw)
    return y3.reshape(B, H, W, C)


# ---------------------------------------------------------------------------
# Convolutions as Pallas matmuls (im2col glue in JAX, weights pre-packed).
# ---------------------------------------------------------------------------
@jax.jit
def conv3x3(x, p, residual=None):
    """3x3 / stride 1 / pad 1 conv, NHWC.  p['w'] is (Kpad, Npad) bf16."""
    B, H, W, Cin = x.shape
    Kp, Np = p['w'].shape
    xp = jnp.pad(x, ((0, 0), (1, 1), (1, 1), (0, 0)))
    # TODO(synk): im2col still materializes a 9x bf16 activation slab (K-pad fused into
    # the same concat); a halo-DMA direct conv (pl.ANY + make_async_copy) would cut
    # that remaining HBM traffic further, mattering most on v5e at real resolutions.
    parts = [xp[:, dy:dy + H, dx:dx + W, :] for dy in range(3) for dx in range(3)]
    if Kp > 9 * Cin:
        parts.append(jnp.zeros((B, H, W, Kp - 9 * Cin), x.dtype))
    patches = jnp.concatenate(parts, axis=-1).reshape(B * H * W, Kp)
    res = residual.reshape(B * H * W, Np) if residual is not None else None
    y = matmul_pallas(patches, p['w'], p['b'], res)
    return y.reshape(B, H, W, Np)


@jax.jit
def conv1x1(x, p):
    B, H, W, Cin = x.shape
    Np = p['w'].shape[1]
    y = matmul_pallas(x.reshape(B * H * W, Cin), p['w'], p['b'])
    return y.reshape(B, H, W, Np)


def avg_pool2(x):
    # TODO(synk): plain-JAX 2x2 average pool (pure data movement).
    B, H, W, C = x.shape
    return (x.reshape(B, H // 2, 2, W // 2, 2, C).astype(jnp.float32)
             .mean(axis=(2, 4)).astype(x.dtype))


def nearest_up(x, s):
    # TODO(synk): plain-JAX nearest-neighbor upsample (pure data movement).
    return jnp.repeat(jnp.repeat(x, s, axis=1), s, axis=2)


# ---------------------------------------------------------------------------
# One-time weight packing (matmul form, K/N padding, bf16 cast, bias reshape).
# ---------------------------------------------------------------------------
def _prep_matmul(w_io, b):
    K, N = w_io.shape
    Kp = K if K <= _K_FULL_MAX else _round_up(K, 512)   # tk=512 divides every big K
    Np = N if N >= 128 else 128                          # lane-dense output for tiny Cout
    wp = jnp.pad(w_io, ((0, Kp - K), (0, Np - N))).astype(jnp.bfloat16)
    bp = jnp.pad(b, (0, Np - N)).reshape(1, Np).astype(jnp.float32)
    return {'w': wp, 'b': bp}


def prep_linear(w_oi, b):                 # torch nn.Linear weight: (out, in)
    return _prep_matmul(jnp.transpose(w_oi), b)


def prep_conv3x3(w, b):                   # torch Conv2d weight: (Cout, Cin, 3, 3)
    cout, cin = w.shape[0], w.shape[1]
    wm = jnp.transpose(w, (2, 3, 1, 0)).reshape(9 * cin, cout)
    return _prep_matmul(wm, b)


def prep_conv1x1(w, b):                   # (Cout, Cin, 1, 1)
    wm = jnp.transpose(w.reshape(w.shape[0], w.shape[1]))
    return _prep_matmul(wm, b)


def _collect_blocks(params):
    blocks = []
    for stage in params['down']:
        blocks += stage
    blocks += params['mid']
    for stage in params['up']:
        blocks += stage
    return blocks


def _pack_time_projections(params):
    """Concatenate every block's f_t weight along N -> one matmul per forward."""
    ws, bs, off = [], [], 0
    for blk in _collect_blocks(params):
        w_oi, bias = blk.pop('f_t_raw')
        ws.append(jnp.transpose(w_oi))          # (1280, 2*cout)
        bs.append(bias)
        blk['ft_off'] = off
        off += 2 * blk['cout']
    w_all = jnp.concatenate(ws, axis=1)
    b_all = jnp.concatenate(bs)
    npad = _round_up(w_all.shape[1], 512) - w_all.shape[1]   # lane-dense tn=512 tiles
    if npad:
        w_all = jnp.pad(w_all, ((0, 0), (0, npad)))
        b_all = jnp.pad(b_all, (0, npad))
    params['ft_all'] = _prep_matmul(w_all, b_all)
    return params


# ---------------------------------------------------------------------------
# Model forward (glue calling the Pallas kernels).
# ---------------------------------------------------------------------------
def timestep_embedding(p, t_idx):
    e = p['emb'][t_idx]                                              # (B, 320) gather
    h = matmul_pallas(e, p['f_1']['w'], p['f_1']['b'], silu_out=True)
    t = matmul_pallas(h, p['f_2']['w'], p['f_2']['b'])               # (B, 1280)
    # silu(t) is what every block's f_t consumes -> compute it once here.
    return _silu(t.astype(jnp.float32)).astype(jnp.bfloat16)


def block_forward(p, x, t_all):
    """ConvResblock / Downsample / Upsample (selected by p['kind'])."""
    kind = p['kind']
    cout = p['cout']
    off = p['ft_off']
    tl = t_all[:, off:off + 2 * cout]                                # pre-batched f_t slice
    t1 = tl[:, :cout].astype(jnp.float32)
    t2 = tl[:, cout:].astype(jnp.float32)

    h = group_norm_silu(x, p['gn_1'])                                # silu(gn_1(x))
    if kind == 'down':
        h = avg_pool2(h)
    elif kind == 'up':
        h = nearest_up(h, 2)
    f1 = conv3x3(h, p['f_1'])
    h2 = group_norm_silu(f1, p['gn_2'], film=(t1, t2))               # silu(gn2*(t1+1)+t2)

    if kind == 'down':
        skip = avg_pool2(x)
    elif kind == 'up':
        skip = nearest_up(x, 2)
    elif 'f_s' in p:
        skip = conv1x1(x, p['f_s'])
    else:
        skip = x
    return conv3x3(h2, p['f_2'], residual=skip)


def conv_unet_vae(params, x, t_idx, features):
    # x (B,H,W,3), features (B,H/8,W/8,4), t_idx (B,) int -> out (B,H,W,6)
    x = x.astype(jnp.bfloat16)
    x = jnp.concatenate([x, nearest_up(features.astype(jnp.bfloat16), 8)], axis=-1)
    temb_silu = timestep_embedding(params['embed_time'], t_idx)
    t_all = matmul_pallas(temb_silu, params['ft_all']['w'], params['ft_all']['b'])
    x = conv3x3(x, params['embed_image'])
    skips = [x]
    for stage in params['down']:
        for blk in stage:
            x = block_forward(blk, x, t_all)
            skips.append(x)
    for blk in params['mid']:
        x = block_forward(blk, x, t_all)
    for stage in params['up'][::-1]:
        for blk in stage:
            if blk['kind'] == 'res':
                x = jnp.concatenate([x, skips.pop()], axis=-1)
            x = block_forward(blk, x, t_all)
    gn = group_norm_silu(x, params['output']['gn'])
    y = conv3x3(gn, params['output']['f'])          # (B,H,W,128): lane-dense store
    return y[..., :6].astype(jnp.float32)


def init_params(key):
    ctr = [0]

    def nxt():
        ctr[0] += 1
        return jax.random.fold_in(key, ctr[0])

    def nrm(shape, fan_in):
        return jax.random.normal(nxt(), shape, jnp.float32) * (1.0 / math.sqrt(fan_in))

    def linear(n_in, n_out):
        return prep_linear(nrm((n_out, n_in), n_in), jnp.zeros((n_out,), jnp.float32))

    def conv3(cin, cout):
        return prep_conv3x3(nrm((cout, cin, 3, 3), cin * 9),
                            jnp.zeros((cout,), jnp.float32))

    def conv1(cin, cout):
        return prep_conv1x1(nrm((cout, cin, 1, 1), cin),
                            jnp.zeros((cout,), jnp.float32))

    def gn(c):
        return {'g': jnp.ones((c,), jnp.float32), 'b': jnp.zeros((c,), jnp.float32)}

    def ft_raw(cout):
        return (nrm((2 * cout, 1280), 1280), jnp.zeros((2 * cout,), jnp.float32))

    def resblock(cin, cout):
        p = {'kind': 'res', 'cout': cout, 'f_t_raw': ft_raw(cout),
             'gn_1': gn(cin), 'f_1': conv3(cin, cout),
             'gn_2': gn(cout), 'f_2': conv3(cout, cout)}
        if cin != cout:
            p['f_s'] = conv1(cin, cout)
        return p

    def updown(c, kind):
        return {'kind': kind, 'cout': c, 'f_t_raw': ft_raw(c),
                'gn_1': gn(c), 'f_1': conv3(c, c),
                'gn_2': gn(c), 'f_2': conv3(c, c)}

    params = {
        'embed_image': conv3(7, 320),
        'embed_time': {'emb': nrm((1024, 320), 320).astype(jnp.bfloat16),
                       'f_1': linear(320, 1280), 'f_2': linear(1280, 1280)},
        'down': [
            [resblock(320, 320), resblock(320, 320), resblock(320, 320), updown(320, 'down')],
            [resblock(320, 640), resblock(640, 640), resblock(640, 640), updown(640, 'down')],
            [resblock(640, 1024), resblock(1024, 1024), resblock(1024, 1024), updown(1024, 'down')],
            [resblock(1024, 1024), resblock(1024, 1024), resblock(1024, 1024)],
        ],
        'mid': [resblock(1024, 1024), resblock(1024, 1024)],
        'up': [
            [resblock(960, 320), resblock(640, 320), resblock(640, 320), resblock(640, 320)],
            [resblock(1664, 640), resblock(1280, 640), resblock(1280, 640), resblock(960, 640), updown(640, 'up')],
            [resblock(2048, 1024), resblock(2048, 1024), resblock(2048, 1024), resblock(1664, 1024), updown(1024, 'up')],
            [resblock(2048, 1024), resblock(2048, 1024), resblock(2048, 1024), resblock(2048, 1024), updown(1024, 'up')],
        ],
        'output': {'gn': gn(320), 'f': conv3(320, 6)},
    }
    return _pack_time_projections(params)


if __name__ == "__main__":
    key = jax.random.PRNGKey(0)

    # --- spot-check 1: tiled matmul (multi-K tiles, megacore N split, fused residual)
    km = jax.random.fold_in(key, 10)
    M0, K0, N0 = 300, 2880, 1024
    xr = jax.random.normal(km, (M0, K0), jnp.float32)
    wr = jax.random.normal(jax.random.fold_in(km, 1), (K0, N0), jnp.float32) / math.sqrt(K0)
    br = jax.random.normal(jax.random.fold_in(km, 2), (N0,), jnp.float32)
    rr = jax.random.normal(jax.random.fold_in(km, 3), (M0, N0), jnp.float32)
    pw = _prep_matmul(wr, br)
    xp = jnp.pad(xr, ((0, 0), (0, pw['w'].shape[0] - K0))).astype(jnp.bfloat16)
    got = matmul_pallas(xp, pw['w'], pw['b'], residual=rr.astype(jnp.bfloat16))
    ref = (xp.astype(jnp.float32)[:, :K0] @ wr.astype(jnp.bfloat16).astype(jnp.float32)
           + br[None, :] + rr.astype(jnp.bfloat16).astype(jnp.float32))
    assert bool(jnp.allclose(got.astype(jnp.float32), ref, atol=0.1, rtol=0.05)), "matmul mismatch"

    # --- spot-check 2: GroupNorm+SiLU, both fused and streaming (multi-tile) paths
    kg = jax.random.fold_in(key, 11)
    Bg, HWg, Cg = 1, 512, 64
    xg = (jax.random.normal(kg, (Bg, HWg, Cg), jnp.float32) * 1.5 + 3.0).astype(jnp.bfloat16)
    gam = jnp.linspace(0.5, 1.5, Cg, dtype=jnp.float32)
    bet = jnp.linspace(-0.3, 0.3, Cg, dtype=jnp.float32)
    xf = xg.astype(jnp.float32).reshape(Bg, HWg, 32, Cg // 32)
    mu = xf.mean(axis=(1, 3), keepdims=True)
    var = ((xf - mu) ** 2).mean(axis=(1, 3), keepdims=True)
    yr = ((xf - mu) * jax.lax.rsqrt(var + 1e-5)).reshape(Bg, HWg, Cg) * gam + bet
    ref_gn = yr * jax.nn.sigmoid(yr)
    stats = _gn_stats(xg, thw=128)                      # 4-tile shifted accumulation
    scale = stats[:, 1, :] * gam[None, :]
    shift = bet[None, :] - stats[:, 0, :] * scale
    got_s = _gn_apply(xg, jnp.stack([scale, shift], axis=1), thw=128).astype(jnp.float32)
    assert bool(jnp.allclose(got_s, ref_gn, atol=0.1, rtol=0.05)), "streaming GN mismatch"
    gbg = jnp.stack([jnp.broadcast_to(gam[None, :], (Bg, Cg)),
                     jnp.broadcast_to(bet[None, :], (Bg, Cg))], axis=1)
    got_f = _gn_fused(xg, gbg).astype(jnp.float32)
    assert bool(jnp.allclose(got_f, ref_gn, atol=0.1, rtol=0.05)), "fused GN mismatch"

    # --- full forward pass at small shapes
    params = init_params(jax.random.fold_in(key, 1))
    B, H, W = 1, 16, 16                       # H, W divisible by 8
    x = jax.random.normal(jax.random.fold_in(key, 2), (B, H, W, 3), jnp.float32)
    features = jax.random.normal(jax.random.fold_in(key, 3),
                                 (B, H // 8, W // 8, 4), jnp.float32)
    t_idx = jnp.array([7], dtype=jnp.int32)   # timestep index < 1024

    out = conv_unet_vae(params, x, t_idx, features)
    out = jax.block_until_ready(out)
    assert out.shape == (B, H, W, 6), out.shape
    assert bool(jnp.isfinite(out).all())
    print("KERNEL_OK")
</pallas_src>

<mosaic_0001>
module attributes {stable_mosaic.version = 11 : i64} {
  func.func @kernel(%arg0: i32, %arg1: i32, %arg2: i32, %arg3: memref<304x512xbf16, #tpu.memory_space<vmem>>, %arg4: memref<512x512xbf16, #tpu.memory_space<vmem>>, %arg5: memref<1x512xf32, #tpu.memory_space<vmem>>, %arg6: memref<304x512xbf16, #tpu.memory_space<vmem>>, %arg7: memref<304x512xbf16, #tpu.memory_space<vmem>>, %arg8: memref<304x512xf32, #tpu.memory_space<vmem>>) attributes {dimension_semantics = [#tpu.dimension_semantics<parallel>, #tpu.dimension_semantics<parallel>, #tpu.dimension_semantics<arbitrary>], iteration_bounds = array<i64: 1, 2, 6>, scalar_prefetch = 0 : i64, scratch_operands = 1 : i64, tpu.core_type = #tpu.core_type<tc>, window_params = [{transform_indices = @transform_0, window_bounds = array<i64: 304, 512>}, {transform_indices = @transform_1, window_bounds = array<i64: 512, 512>}, {transform_indices = @transform_2, window_bounds = array<i64: 1, 512>}, {transform_indices = @transform_3, window_bounds = array<i64: 304, 512>}, {transform_indices = @transform_4, window_bounds = array<i64: 304, 512>}]} {
    %c0_i32 = arith.constant 0 : i32
    %0 = arith.cmpi eq, %arg2, %c0_i32 : i32
    %1 = arith.extui %0 : i1 to i32
    %c0_i32_0 = arith.constant 0 : i32
    %2 = arith.cmpi ne, %1, %c0_i32_0 : i32
    scf.if %2 {
      %cst_9 = arith.constant 0.000000e+00 : f32
      %12 = vector.broadcast %cst_9 : f32 to vector<304x512xf32>
      %c0_10 = arith.constant 0 : index
      %c0_11 = arith.constant 0 : index
      %13 = vector.load %arg8[%c0_10, %c0_11] : memref<304x512xf32, #tpu.memory_space<vmem>>, vector<304x512xf32>
      tpu.vector_store %arg8[%c0_10, %c0_11], %12 {strides = array<i32>} : memref<304x512xf32, #tpu.memory_space<vmem>>, vector<304x512xf32>,
    } else {
    }
    %c0 = arith.constant 0 : index
    %c0_1 = arith.constant 0 : index
    %3 = vector.load %arg8[%c0, %c0_1] : memref<304x512xf32, #tpu.memory_space<vmem>>, vector<304x512xf32>
    %c0_2 = arith.constant 0 : index
    %c0_3 = arith.constant 0 : index
    %4 = vector.load %arg3[%c0_2, %c0_3] : memref<304x512xbf16, #tpu.memory_space<vmem>>, vector<304x512xbf16>
    %c0_4 = arith.constant 0 : index
    %c0_5 = arith.constant 0 : index
    %5 = vector.load %arg4[%c0_4, %c0_5] : memref<512x512xbf16, #tpu.memory_space<vmem>>, vector<512x512xbf16>
    %cst = arith.constant dense<0.000000e+00> : vector<304x512xf32>
    %6 = tpu.matmul %4, %5, %cst {dimension_numbers = #tpu.dot_dimension_numbers<[1], [0], [0], [1], [0, 0, 1, 1], [], []>} : vector<304x512xbf16>, vector<512x512xbf16>, vector<304x512xf32> -> vector<304x512xf32>
    %7 = arith.addf %3, %6 : vector<304x512xf32>
    %c0_6 = arith.constant 0 : index
    %c0_7 = arith.constant 0 : index
    %8 = vector.load %arg8[%c0_6, %c0_7] : memref<304x512xf32, #tpu.memory_space<vmem>>, vector<304x512xf32>
    tpu.vector_store %arg8[%c0_6, %c0_7], %7 {strides = array<i32>} : memref<304x512xf32, #tpu.memory_space<vmem>>, vector<304x512xf32>,
    %c5_i32 = arith.constant 5 : i32
    %9 = arith.cmpi eq, %arg2, %c5_i32 : i32
    %10 = arith.extui %9 : i1 to i32
    %c0_i32_8 = arith.constant 0 : i32
    %11 = arith.cmpi ne, %10, %c0_i32_8 : i32
    scf.if %11 {
      %c0_9 = arith.constant 0 : index
      %c0_10 = arith.constant 0 : index
      %12 = vector.load %arg8[%c0_9, %c0_10] : memref<304x512xf32, #tpu.memory_space<vmem>>, vector<304x512xf32>
      %c0_11 = arith.constant 0 : index
      %c0_12 = arith.constant 0 : index
      %13 = vector.load %arg5[%c0_11, %c0_12] : memref<1x512xf32, #tpu.memory_space<vmem>>, vector<1x512xf32>
      %14 = vector.broadcast %13 : vector<1x512xf32> to vector<304x512xf32>
      %15 = arith.addf %12, %14 : vector<304x512xf32>
      %c0_13 = arith.constant 0 : index
      %c0_14 = arith.constant 0 : index
      %16 = vector.load %arg6[%c0_13, %c0_14] : memref<304x512xbf16, #tpu.memory_space<vmem>>, vector<304x512xbf16>
      %17 = arith.extf %16 : vector<304x512xbf16> to vector<304x512xf32>
      %18 = arith.addf %15, %17 : vector<304x512xf32>
      %19 = arith.truncf %18 : vector<304x512xf32> to vector<304x512xbf16>
      %c0_15 = arith.constant 0 : index
      %c0_16 = arith.constant 0 : index
      %20 = vector.load %arg7[%c0_15, %c0_16] : memref<304x512xbf16, #tpu.memory_space<vmem>>, vector<304x512xbf16>
      tpu.vector_store %arg7[%c0_15, %c0_16], %19 {strides = array<i32>} : memref<304x512xbf16, #tpu.memory_space<vmem>>, vector<304x512xbf16>,
    } else {
    }
    return
  }
  func.func @transform_0(%arg0: i32, %arg1: i32, %arg2: i32) -> (i32, i32) {
    %c0_i32 = arith.constant 0 : i32
    return %arg0, %arg2 : i32, i32
  }
  func.func @transform_1(%arg0: i32, %arg1: i32, %arg2: i32) -> (i32, i32) {
    %c0_i32 = arith.constant 0 : i32
    return %arg2, %arg1 : i32, i32
  }
  func.func @transform_2(%arg0: i32, %arg1: i32, %arg2: i32) -> (i32, i32) {
    %c0_i32 = arith.constant 0 : i32
    %c0_i32_0 = arith.constant 0 : i32
    return %c0_i32, %arg1 : i32, i32
  }
  func.func @transform_3(%arg0: i32, %arg1: i32, %arg2: i32) -> (i32, i32) {
    %c0_i32 = arith.constant 0 : i32
    return %arg0, %arg1 : i32, i32
  }
  func.func @transform_4(%arg0: i32, %arg1: i32, %arg2: i32) -> (i32, i32) {
    %c0_i32 = arith.constant 0 : i32
    return %arg0, %arg1 : i32, i32
  }
}

</mosaic_0001>

<bundles_post_ra>
// kernel: matmul_pallas.1
= control target key start
LH: loop header
LB: loop body
LE: loop exit
PB: predicated region body
PF: predicated region fallthrough
CT: control target
= control target key end

     0   :  { %s7239_s0 = inlined_call_operand.vmem [shape: bf16[304,3072], index: 0, kind: input, shape index: {}]   ;;  %s7240_s1 = inlined_call_operand.hbm [shape: bf16[3072,1024], index: 1, kind: input, shape index: {}]   ;;  %s7241_s2 = inlined_call_operand.vmem [shape: f32[1,1024], index: 2, kind: input, shape index: {}]   ;;  %s7242_s3 = inlined_call_operand.vmem [shape: bf16[304,1024], index: 3, kind: input, shape index: {}]   ;;  %s7243_s4 = inlined_call_operand.hbm [shape: bf16[304,1024], index: 4, kind: output, shape index: {}]  }
   0x1   :  { %7251 = sst [smem:[#allocation19_spill]] %s7239_s0 }
   0x2   :  { %9 = vsyncpa [#allocation5], 0 }
   0x3   :  { %11 = vsyncpa [#allocation5 + $0x1], 0 }
   0x4   :  { %12 = vsyncpa [#allocation6], 0 }
   0x5   :  { %14 = vsyncpa [#allocation6 + $0x1], 0  ;;  %s5956_s15 = smov 0   ;;  %s5958_s16 = smov 0  }
   0x6   :  { %s5960_s17 = smov 0   ;;  %s5962_s18 = smov 0  }
   0x7   :  { %s5964_s19 = smov 0   ;;  %s5966_s20 = smov 0  }
   0x8   :  { %s5968_s21 = smov 0   ;;  %s5970_s22 = smov 0  }
   0x9   :  { %s5972_s23 = smov 0   ;;  %s5974_s24 = smov 0  }
   0xa   :  { %s5976_s25 = smov 0   ;;  %s5978_s26 = smov 0  }
   0xb   :  { %s5980_s27 = smov 0  }
   0xc LB: > { %7252 = sst [smem:[#allocation11_spill]] %s5892_s20  ;;  %s4790_s28 = sadd.s32 4294967295, %s5920_s27   ;;  %s5920_s27 = sphi %s5980_s27, %s20_s27   ;;  %s5916_s26 = sphi %s5978_s26, %s7290_s26   ;;  %s5912_s25 = sphi %s5976_s25, %s7289_s25   ;;  %s5908_s24 = sphi %s5974_s24, %s7288_s24   ;;  %s5904_s23 = sphi %s5972_s23, %s7287_s23   ;;  %s5900_s22 = sphi %s5970_s22, %s7277_s22   ;;  %s5896_s21 = sphi %s5968_s21, %s7276_s21   ;;  %s5892_s20 = sphi %s5966_s20, %s7286_s20   ;;  %s5888_s19 = sphi %s5964_s19, %s7285_s19   ;;  %s5884_s18 = sphi %s5962_s18, %s7284_s18   ;;  %s5880_s17 = sphi %s5960_s17, %s7283_s17   ;;  %s5876_s16 = sphi %s5958_s16, %s7282_s16   ;;  %s5872_s15 = sphi %s5956_s15, %s7281_s15  }
   0xd   : > { %7253 = sst [smem:[#allocation12_spill]] %s5900_s22  ;;  %s32_s30 = sadd.s32 1, %s5912_s25 }
   0xe   : > { %s35_s5 = sadd.s32 1, %s5916_s26  ;;  %p33_p0 = scmp.ge.s32.totalorder %s32_s30, 6 }
   0xf   : > { %s48_s6 = sadd.s32 1, %s5900_s22  ;;  %p55_p1 = scmp.ne.s32.totalorder %s5900_s22, %s5896_s21 }
  0x10   : > { %p56_p2 = scmp.eq.s32.totalorder %s5920_s27, 0  ;;  %s7292_s30 = smov (%p33_p0, %s32_s30), 0 }
  0x11   : > { %7254 = sst [smem:[#allocation13_spill]] %s7292_s30  ;;  %s7294_s5 = smov (!%p33_p0, %s35_s5), %s5916_s26 }
  0x12   : > { %s44_s7 = ssub.s32 %s5912_s25, %s7292_s30  ;;  %p6036_p3 = por %p56_p2, %p55_p1 }
  0x13   : > { %p37_p4 = scmp.ge.s32.totalorder %s7294_s5, 2  ;;  %p46_p5 = scmp.eq.s32.totalorder %s44_s7, 0 }
  0x14   : > { %s76_s9 = sadd.s32 1, %s5892_s20  ;;  %p83_p6 = scmp.ne.s32.totalorder %s5892_s20, %s5888_s19 }
  0x15   : > { %s7296_s5 = smov (%p37_p4, %s7294_s5), 0  ;;  %p89_p8 = scmp.ne.s32.totalorder %s5888_s19, %s5884_s18 }
  0x16   : > { %7256 = sst [smem:[#allocation14_spill]] %s7296_s5  ;;  %s72_s11 = ssub.s32 %s5916_s26, %s7296_s5 }
  0x17   : > { %s6046_s10 = scalar_select %p46_p5, %s5900_s22, %s48_s6  }
  0x18   : > { %p6052_p7 = por %p83_p6, %p56_p2  ;;  %s73_s13 = sor.u32 %s72_s11, %s44_s7 }
  0x19   : > { %7257 = sst [smem:[#allocation15_spill]] %s6046_s10  ;;  %p74_p9 = scmp.eq.s32.totalorder %s73_s13, 0 }
  0x1a   : > { %p90_p10 = scmp.eq.s32.totalorder %s4790_s28, 0  ;;  %p128_p11 = scmp.eq.s32.totalorder %s72_s11, 0 }
  0x1b   : > { %s130_s14 = sadd.s32 1, %s5880_s17  ;;  %p137_p13 = scmp.ne.s32.totalorder %s5880_s17, %s5876_s16 }
  0x1c   : > { %s6062_s29 = scalar_select %p74_p9, %s5892_s20, %s76_s9  }
  0x1d   : > { %p6064_p12 = por %p90_p10, %p89_p8  ;;  %p6075_p0 = por %p137_p13, %p56_p2 }
  0x1e   : > { %7259 = sst [smem:[#allocation16_spill]] %s6062_s29  ;;  %p169_p1 = scmp.eq.s32.totalorder %s4790_s28, 11 }
  0x1f   : > { %s7260_s30 = scalar_select %p6064_p12, 1, 0 }
  0x20   : > { %s6071_s6 = scalar_select %p128_p11, %s5880_s17, %s130_s14  }
  0x21   : > { %p174_p4 = scmp.ne.s32.totalorder %s5876_s16, %s5872_s15  ;;  %s7263_s18 = sadd.s32 4294967294, %s5920_s27  }
  0x22   : > { %7261 = sst [smem:[#allocation17_spill]] %s6071_s6  ;;  %p175_p5 = scmp.eq.s32.totalorder %s7263_s18, 11 }
  0x23   : > { %p6085_p6 = por %p169_p1, %p137_p13  ;;  %p4793_p9 = scmp.ge.s32.totalorder %s5920_s27, 12 }
  0x24   : > { %p6089_p8 = por %p175_p5, %p174_p4 }
  0x25   : > { %s7264_s7 = scalar_select %p6085_p6, 1, 0 }
  0x26   : > { %s7265_s9 = scalar_select %p6089_p8, 1, 0 }
  0x27   : > { %191 = sbr.rel (%p4793_p9) target bundleno = 165 (0xa5), region = 16 }
  0x28   : > { %7266 = sst [smem:[#allocation18_spill]] %s7265_s9 }
  0x2e   : > { %194 = sbr.rel (!%p6036_p3) target bundleno = 94 (0x5e), region = 20  ;;  %s196_s28 = sand.u32 (%p6036_p3), 1, %s5900_s22  }
  0x2f   : > { %s5092_s11 = sshll.u32 (%p6036_p3), %s5912_s25, 4  ;;  %s5324_s13 = smul.u32 (%p6036_p3), 608, %s196_s28 }
  0x30   : > { %s7267_s0 = sld [smem:[#allocation19_spill]] (%p6036_p3) }
  0x31   : > { %s6109_s8 = scalar_lea.vmem (%p6036_p3), [#allocation3], %s5324_s13 }
  0x36   : > { %s6101_s10 = scalar_lea.vmem %s7267_s0, %s5092_s11 }
  0x37   : > { %v217_v0 = vld [vmem:[%s6101_s10] sm:$0xff]  ;;  %v219_v1 = vld [vmem:[%s6101_s10 + $0x8] sm:$0xff] }
  0x38   : > { %v221_v2 = vld [vmem:[%s6101_s10 + $0x60] sm:$0xff]  ;;  %v223_v3 = vld [vmem:[%s6101_s10 + $0x68] sm:$0xff]  ;;  %218 = vst [vmem:[%s6109_s8] sm:$0xff] %v217_v0  ;;  %220 = vst [vmem:[%s6109_s8 + $0x8] sm:$0xff] %v219_v1 }
  0x39   : > { %v225_v4 = vld [vmem:[%s6101_s10 + $0xc0] sm:$0xff]  ;;  %v227_v5 = vld [vmem:[%s6101_s10 + $0xc8] sm:$0xff]  ;;  %222 = vst [vmem:[%s6109_s8 + $0x10] sm:$0xff] %v221_v2  ;;  %224 = vst [vmem:[%s6109_s8 + $0x18] sm:$0xff] %v223_v3 }
  0x3a   : > { %226 = vst [vmem:[%s6109_s8 + $0x20] sm:$0xff] %v225_v4  ;;  %228 = vst [vmem:[%s6109_s8 + $0x28] sm:$0xff] %v227_v5  ;;  %v229_v6 = vld [vmem:[%s6101_s10 + $0x120] sm:$0xff]  ;;  %v231_v7 = vld [vmem:[%s6101_s10 + $0x128] sm:$0xff] }
  0x3b   : > { %v233_v8 = vld [vmem:[%s6101_s10 + $0x180] sm:$0xff]  ;;  %230 = vst [vmem:[%s6109_s8 + $0x30] sm:$0xff] %v229_v6  ;;  %232 = vst [vmem:[%s6109_s8 + $0x38] sm:$0xff] %v231_v7  ;;  %v235_v9 = vld [vmem:[%s6101_s10 + $0x188] sm:$0xff] }
  0x3c   : > { %234 = vst [vmem:[%s6109_s8 + $0x40] sm:$0xff] %v233_v8  ;;  %v237_v10 = vld [vmem:[%s6101_s10 + $0x1e0] sm:$0xff]  ;;  %v239_v11 = vld [vmem:[%s6101_s10 + $0x1e8] sm:$0xff]  ;;  %236 = vst [vmem:[%s6109_s8 + $0x48] sm:$0xff] %v235_v9 }
  0x3d   : > { %238 = vst [vmem:[%s6109_s8 + $0x50] sm:$0xff] %v237_v10  ;;  %240 = vst [vmem:[%s6109_s8 + $0x58] sm:$0xff] %v239_v11  ;;  %v241_v12 = vld [vmem:[%s6101_s10 + $0x240] sm:$0xff]  ;;  %v243_v13 = vld [vmem:[%s6101_s10 + $0x248] sm:$0xff] }
  0x3e   : > { %v245_v14 = vld [vmem:[%s6101_s10 + $0x2a0] sm:$0xff]  ;;  %242 = vst [vmem:[%s6109_s8 + $0x60] sm:$0xff] %v241_v12  ;;  %244 = vst [vmem:[%s6109_s8 + $0x68] sm:$0xff] %v243_v13  ;;  %v247_v15 = vld [vmem:[%s6101_s10 + $0x2a8] sm:$0xff] }
  0x3f   : > { %246 = vst [vmem:[%s6109_s8 + $0x70] sm:$0xff] %v245_v14  ;;  %v249_v16 = vld [vmem:[%s6101_s10 + $0x300] sm:$0xff]  ;;  %v251_v17 = vld [vmem:[%s6101_s10 + $0x308] sm:$0xff]  ;;  %248 = vst [vmem:[%s6109_s8 + $0x78] sm:$0xff] %v247_v15 }
  0x40   : > { %250 = vst [vmem:[%s6109_s8 + $0x80] sm:$0xff] %v249_v16  ;;  %252 = vst [vmem:[%s6109_s8 + $0x88] sm:$0xff] %v251_v17  ;;  %v253_v18 = vld [vmem:[%s6101_s10 + $0x360] sm:$0xff]  ;;  %v255_v19 = vld [vmem:[%s6101_s10 + $0x368] sm:$0xff] }
  0x41   : > { %v257_v20 = vld [vmem:[%s6101_s10 + $0x3c0] sm:$0xff]  ;;  %254 = vst [vmem:[%s6109_s8 + $0x90] sm:$0xff] %v253_v18  ;;  %256 = vst [vmem:[%s6109_s8 + $0x98] sm:$0xff] %v255_v19  ;;  %v259_v21 = vld [vmem:[%s6101_s10 + $0x3c8] sm:$0xff] }
  0x42   : > { %258 = vst [vmem:[%s6109_s8 + $0xa0] sm:$0xff] %v257_v20  ;;  %v261_v22 = vld [vmem:[%s6101_s10 + $0x420] sm:$0xff]  ;;  %v263_v23 = vld [vmem:[%s6101_s10 + $0x428] sm:$0xff]  ;;  %260 = vst [vmem:[%s6109_s8 + $0xa8] sm:$0xff] %v259_v21 }
  0x43   : > { %262 = vst [vmem:[%s6109_s8 + $0xb0] sm:$0xff] %v261_v22  ;;  %264 = vst [vmem:[%s6109_s8 + $0xb8] sm:$0xff] %v263_v23  ;;  %v265_v24 = vld [vmem:[%s6101_s10 + $0x480] sm:$0xff]  ;;  %v267_v25 = vld [vmem:[%s6101_s10 + $0x488] sm:$0xff] }
  0x44   : > { %v269_v26 = vld [vmem:[%s6101_s10 + $0x4e0] sm:$0xff]  ;;  %266 = vst [vmem:[%s6109_s8 + $0xc0] sm:$0xff] %v265_v24  ;;  %268 = vst [vmem:[%s6109_s8 + $0xc8] sm:$0xff] %v267_v25  ;;  %v271_v27 = vld [vmem:[%s6101_s10 + $0x4e8] sm:$0xff] }
  0x45   : > { %270 = vst [vmem:[%s6109_s8 + $0xd0] sm:$0xff] %v269_v26  ;;  %v273_v28 = vld [vmem:[%s6101_s10 + $0x540] sm:$0xff]  ;;  %v275_v29 = vld [vmem:[%s6101_s10 + $0x548] sm:$0xff]  ;;  %272 = vst [vmem:[%s6109_s8 + $0xd8] sm:$0xff] %v271_v27 }
  0x46   : > { %274 = vst [vmem:[%s6109_s8 + $0xe0] sm:$0xff] %v273_v28  ;;  %276 = vst [vmem:[%s6109_s8 + $0xe8] sm:$0xff] %v275_v29  ;;  %v277_v30 = vld [vmem:[%s6101_s10 + $0x5a0] sm:$0xff]  ;;  %v279_v31 = vld [vmem:[%s6101_s10 + $0x5a8] sm:$0xff] }
  0x47   : > { %v281_v32 = vld [vmem:[%s6101_s10 + $0x600] sm:$0xff]  ;;  %278 = vst [vmem:[%s6109_s8 + $0xf0] sm:$0xff] %v277_v30  ;;  %280 = vst [vmem:[%s6109_s8 + $0xf8] sm:$0xff] %v279_v31  ;;  %v283_v33 = vld [vmem:[%s6101_s10 + $0x608] sm:$0xff] }
  0x48   : > { %282 = vst [vmem:[%s6109_s8 + $0x100] sm:$0xff] %v281_v32  ;;  %v285_v34 = vld [vmem:[%s6101_s10 + $0x660] sm:$0xff]  ;;  %v287_v35 = vld [vmem:[%s6101_s10 + $0x668] sm:$0xff]  ;;  %284 = vst [vmem:[%s6109_s8 + $0x108] sm:$0xff] %v283_v33 }
  0x49   : > { %286 = vst [vmem:[%s6109_s8 + $0x110] sm:$0xff] %v285_v34  ;;  %288 = vst [vmem:[%s6109_s8 + $0x118] sm:$0xff] %v287_v35  ;;  %v289_v36 = vld [vmem:[%s6101_s10 + $0x6c0] sm:$0xff]  ;;  %v291_v37 = vld [vmem:[%s6101_s10 + $0x6c8] sm:$0xff] }
  0x4a   : > { %v293_v38 = vld [vmem:[%s6101_s10 + $0x720] sm:$0xff]  ;;  %290 = vst [vmem:[%s6109_s8 + $0x120] sm:$0xff] %v289_v36  ;;  %292 = vst [vmem:[%s6109_s8 + $0x128] sm:$0xff] %v291_v37  ;;  %v295_v39 = vld [vmem:[%s6101_s10 + $0x728] sm:$0xff] }
  0x4b   : > { %294 = vst [vmem:[%s6109_s8 + $0x130] sm:$0xff] %v293_v38  ;;  %v297_v40 = vld [vmem:[%s6101_s10 + $0x780] sm:$0xff]  ;;  %v299_v41 = vld [vmem:[%s6101_s10 + $0x788] sm:$0xff]  ;;  %296 = vst [vmem:[%s6109_s8 + $0x138] sm:$0xff] %v295_v39 }
  0x4c   : > { %298 = vst [vmem:[%s6109_s8 + $0x140] sm:$0xff] %v297_v40  ;;  %300 = vst [vmem:[%s6109_s8 + $0x148] sm:$0xff] %v299_v41  ;;  %v301_v42 = vld [vmem:[%s6101_s10 + $0x7e0] sm:$0xff]  ;;  %v303_v43 = vld [vmem:[%s6101_s10 + $0x7e8] sm:$0xff] }
  0x4d   : > { %v305_v44 = vld [vmem:[%s6101_s10 + $0x840] sm:$0xff]  ;;  %302 = vst [vmem:[%s6109_s8 + $0x150] sm:$0xff] %v301_v42  ;;  %304 = vst [vmem:[%s6109_s8 + $0x158] sm:$0xff] %v303_v43  ;;  %v307_v45 = vld [vmem:[%s6101_s10 + $0x848] sm:$0xff] }
  0x4e   : > { %306 = vst [vmem:[%s6109_s8 + $0x160] sm:$0xff] %v305_v44  ;;  %v309_v46 = vld [vmem:[%s6101_s10 + $0x8a0] sm:$0xff]  ;;  %v311_v47 = vld [vmem:[%s6101_s10 + $0x8a8] sm:$0xff]  ;;  %308 = vst [vmem:[%s6109_s8 + $0x168] sm:$0xff] %v307_v45 }
  0x4f   : > { %310 = vst [vmem:[%s6109_s8 + $0x170] sm:$0xff] %v309_v46  ;;  %312 = vst [vmem:[%s6109_s8 + $0x178] sm:$0xff] %v311_v47  ;;  %v313_v48 = vld [vmem:[%s6101_s10 + $0x900] sm:$0xff]  ;;  %v315_v49 = vld [vmem:[%s6101_s10 + $0x908] sm:$0xff] }
  0x50   : > { %v317_v50 = vld [vmem:[%s6101_s10 + $0x960] sm:$0xff]  ;;  %314 = vst [vmem:[%s6109_s8 + $0x180] sm:$0xff] %v313_v48  ;;  %316 = vst [vmem:[%s6109_s8 + $0x188] sm:$0xff] %v315_v49  ;;  %v319_v51 = vld [vmem:[%s6101_s10 + $0x968] sm:$0xff] }
  0x51   : > { %318 = vst [vmem:[%s6109_s8 + $0x190] sm:$0xff] %v317_v50  ;;  %v321_v52 = vld [vmem:[%s6101_s10 + $0x9c0] sm:$0xff]  ;;  %v323_v53 = vld [vmem:[%s6101_s10 + $0x9c8] sm:$0xff]  ;;  %320 = vst [vmem:[%s6109_s8 + $0x198] sm:$0xff] %v319_v51 }
  0x52   : > { %322 = vst [vmem:[%s6109_s8 + $0x1a0] sm:$0xff] %v321_v52  ;;  %324 = vst [vmem:[%s6109_s8 + $0x1a8] sm:$0xff] %v323_v53  ;;  %v325_v54 = vld [vmem:[%s6101_s10 + $0xa20] sm:$0xff]  ;;  %v327_v55 = vld [vmem:[%s6101_s10 + $0xa28] sm:$0xff] }
  0x53   : > { %v329_v56 = vld [vmem:[%s6101_s10 + $0xa80] sm:$0xff]  ;;  %326 = vst [vmem:[%s6109_s8 + $0x1b0] sm:$0xff] %v325_v54  ;;  %328 = vst [vmem:[%s6109_s8 + $0x1b8] sm:$0xff] %v327_v55  ;;  %v331_v57 = vld [vmem:[%s6101_s10 + $0xa88] sm:$0xff] }
  0x54   : > { %330 = vst [vmem:[%s6109_s8 + $0x1c0] sm:$0xff] %v329_v56  ;;  %v333_v58 = vld [vmem:[%s6101_s10 + $0xae0] sm:$0xff]  ;;  %v335_v59 = vld [vmem:[%s6101_s10 + $0xae8] sm:$0xff]  ;;  %332 = vst [vmem:[%s6109_s8 + $0x1c8] sm:$0xff] %v331_v57 }
  0x55   : > { %334 = vst [vmem:[%s6109_s8 + $0x1d0] sm:$0xff] %v333_v58  ;;  %336 = vst [vmem:[%s6109_s8 + $0x1d8] sm:$0xff] %v335_v59  ;;  %v337_v60 = vld [vmem:[%s6101_s10 + $0xb40] sm:$0xff]  ;;  %v339_v61 = vld [vmem:[%s6101_s10 + $0xb48] sm:$0xff] }
  0x56   : > { %v341_v62 = vld [vmem:[%s6101_s10 + $0xba0] sm:$0xff]  ;;  %338 = vst [vmem:[%s6109_s8 + $0x1e0] sm:$0xff] %v337_v60  ;;  %340 = vst [vmem:[%s6109_s8 + $0x1e8] sm:$0xff] %v339_v61  ;;  %v343_v63 = vld [vmem:[%s6101_s10 + $0xba8] sm:$0xff] }
  0x57   : > { %342 = vst [vmem:[%s6109_s8 + $0x1f0] sm:$0xff] %v341_v62  ;;  %v345_v0 = vld [vmem:[%s6101_s10 + $0xc00] sm:$0xff]  ;;  %v347_v1 = vld [vmem:[%s6101_s10 + $0xc08] sm:$0xff]  ;;  %344 = vst [vmem:[%s6109_s8 + $0x1f8] sm:$0xff] %v343_v63 }
  0x58   : > { %346 = vst [vmem:[%s6109_s8 + $0x200] sm:$0xff] %v345_v0  ;;  %348 = vst [vmem:[%s6109_s8 + $0x208] sm:$0xff] %v347_v1  ;;  %v349_v2 = vld [vmem:[%s6101_s10 + $0xc60] sm:$0xff]  ;;  %v351_v3 = vld [vmem:[%s6101_s10 + $0xc68] sm:$0xff] }
  0x59   : > { %v353_v4 = vld [vmem:[%s6101_s10 + $0xcc0] sm:$0xff]  ;;  %350 = vst [vmem:[%s6109_s8 + $0x210] sm:$0xff] %v349_v2  ;;  %352 = vst [vmem:[%s6109_s8 + $0x218] sm:$0xff] %v351_v3  ;;  %v355_v5 = vld [vmem:[%s6101_s10 + $0xcc8] sm:$0xff] }
  0x5a   : > { %354 = vst [vmem:[%s6109_s8 + $0x220] sm:$0xff] %v353_v4  ;;  %v357_v6 = vld [vmem:[%s6101_s10 + $0xd20] sm:$0xff]  ;;  %v359_v7 = vld [vmem:[%s6101_s10 + $0xd28] sm:$0xff]  ;;  %356 = vst [vmem:[%s6109_s8 + $0x228] sm:$0xff] %v355_v5 }
  0x5b   : > { %358 = vst [vmem:[%s6109_s8 + $0x230] sm:$0xff] %v357_v6  ;;  %360 = vst [vmem:[%s6109_s8 + $0x238] sm:$0xff] %v359_v7  ;;  %v361_v8 = vld [vmem:[%s6101_s10 + $0xd80] sm:$0xff]  ;;  %v363_v9 = vld [vmem:[%s6101_s10 + $0xd88] sm:$0xff] }
  0x5c   : > { %v365_v10 = vld [vmem:[%s6101_s10 + $0xde0] sm:$0xff]  ;;  %362 = vst [vmem:[%s6109_s8 + $0x240] sm:$0xff] %v361_v8  ;;  %364 = vst [vmem:[%s6109_s8 + $0x248] sm:$0xff] %v363_v9  ;;  %v367_v11 = vld [vmem:[%s6101_s10 + $0xde8] sm:$0xff] }
  0x5d   : > { %366 = vst [vmem:[%s6109_s8 + $0x250] sm:$0xff] %v365_v10  ;;  %368 = vst [vmem:[%s6109_s8 + $0x258] sm:$0xff] %v367_v11 }
  0x5e PF: > { %s375_s28 = sand.u32 1, %s5892_s20   ;;  %s4798_s11 = sshll.u32 %s5916_s26, 2 }
  0x5f   : > { %s4796_s13 = sshll.u32 %s375_s28, 10  ;;  %s5093_s14 = sshll.u32 %s5912_s25, 9 }
  0x60   : > { %s386_s18 = sadd.s32 %s5093_s14, %s4798_s11  ;;  %s379_s0 = scalar_lea.vmem [#allocation4], %s4796_s13 }
  0x61   : > { %s389_s22 = sshll.u32 %s379_s0, 4  ;;  %s4800_s29 = sshll.u32 %s386_s18, 6  ;;  %s6260_s22 = int_to_ptr.vmem [resolvable:$true] %s389_s22 }
  0x62   : > { %s6265_s10 = scalar_lea.hbm %s7240_s1, %s4800_s29  ;;  %s6267_s8 = scalar_lea.sflag [#allocation5], %s375_s28 }
  0x63   : > { %s5754_s20 = scalar_lea.hbm %s6265_s10, 16384  ;;  %s5758_s13 = scalar_lea.hbm %s7240_s1, 196608 }
  0x64   : > { %p5755_p2 = scmp.ne.s32.totalorder %s6265_s10, %s5754_s20  ;;  %p5759_p11 = scmp.lt.u32.totalorder %s6265_s10, %s7240_s1 }
  0x65   : > { %p5760_p13 = scmp.lt.u32.totalorder %s5758_s13, %s5754_s20  ;;  %p5762_p4 = scmp.lt.u32.totalorder %s5754_s20, %s6265_s10 }
  0x66   : > { %p5756_p3 = pnand %p5755_p2, %p6052_p7 }
  0x67   : > { %p5761_p1 = por %p5760_p13, %p5759_p11 }
  0x68   : > { %p5757_p10 = pneg %p5756_p3 }
  0x69   : > { %p5763_p5 = por %p5762_p4, %p5761_p1 }
  0x6b   : > { %p5764_p9 = pnand %p5763_p5, %p5757_p10 }
  0x6d   : > { %5767 = shalt.err (!%p5764_p9)
}
  0x6e   : > { %s5768_s29 = scalar_lea.vmem %s6260_s22, 16384  ;;  %s5922_s6 = smov [#allocation4]  }
  0x6f   : > { %p5769_p2 = scmp.ne.s32.totalorder %s6260_s22, %s5768_s29  ;;  %s5772_s9 = sshll.u32 %s5922_s6, 4  ;;  %s5773_s9 = int_to_ptr.vmem [resolvable:$false] %s5772_s9 }
  0x70   : > { %s5774_s28 = scalar_lea.vmem %s5773_s9, 32768  ;;  %p5775_p6 = scmp.lt.s32.totalorder %s6260_s22, %s5773_s9 }
  0x71   : > { %p5770_p3 = pnand %p5769_p2, %p6052_p7  ;;  %p5776_p12 = scmp.lt.s32.totalorder %s5774_s28, %s5768_s29 }
  0x73   : > { %p5771_p8 = pneg %p5770_p3  ;;  %p5777_p11 = por %p5776_p12, %p5775_p6 }
  0x75   : > { %p5778_p13 = pnand %p5777_p11, %p5771_p8 }
  0x77   : > { %5781 = shalt.err (!%p5778_p13)
}
  0x78   : > { %s5923_s20 = smov 512   ;;  %s5924_s0 = smov 256  }
  0x79   : > { %s5925_s11 = smov 16   ;;  %406 = sbr.rel (!%p6075_p0) target bundleno = 165 (0xa5), region = 51 }
  0x7a   : > { %5328 = dma.hbm_to_vmem [thread:$0]  (%p6052_p7), %s6265_s10, 16384, %s6260_s22, %s6267_s8, %s5923_s20, %s5924_s0, %s5925_s11  }
  0x7b   : > { %s408_s13 = sand.u32 (%p6075_p0), 1, %s5880_s17   ;;  %s5094_s14 = sshll.u32 (%p6075_p0), %s5916_s26, 4 }
  0x7c   : > { %s5325_s18 = smul.u32 (%p6075_p0), 608, %s408_s13  ;;  %s6298_s9 = scalar_lea.vmem (%p6075_p0), %s7242_s3, %s5094_s14 }
  0x7d   : > { %v429_v12 = vld [vmem:[%s6298_s9] sm:$0xff] (%p6075_p0)  ;;  %v431_v13 = vld [vmem:[%s6298_s9 + $0x8] sm:$0xff] (%p6075_p0) }
  0x7e   : > { %v433_v14 = vld [vmem:[%s6298_s9 + $0x20] sm:$0xff] (%p6075_p0)  ;;  %v435_v15 = vld [vmem:[%s6298_s9 + $0x28] sm:$0xff] (%p6075_p0)  ;;  %s6306_s22 = scalar_lea.vmem (%p6075_p0), [#allocation7], %s5325_s18 }
  0x7f   : > { %v437_v16 = vld [vmem:[%s6298_s9 + $0x40] sm:$0xff] (%p6075_p0)  ;;  %v439_v17 = vld [vmem:[%s6298_s9 + $0x48] sm:$0xff] (%p6075_p0)  ;;  %430 = vst [vmem:[%s6306_s22] sm:$0xff] (%p6075_p0), %v429_v12  ;;  %432 = vst [vmem:[%s6306_s22 + $0x8] sm:$0xff] (%p6075_p0), %v431_v13 }
  0x80   : > { %434 = vst [vmem:[%s6306_s22 + $0x10] sm:$0xff] %v433_v14  ;;  %436 = vst [vmem:[%s6306_s22 + $0x18] sm:$0xff] %v435_v15  ;;  %v441_v18 = vld [vmem:[%s6298_s9 + $0x60] sm:$0xff]  ;;  %v443_v19 = vld [vmem:[%s6298_s9 + $0x68] sm:$0xff] }
  0x81   : > { %438 = vst [vmem:[%s6306_s22 + $0x20] sm:$0xff] %v437_v16  ;;  %440 = vst [vmem:[%s6306_s22 + $0x28] sm:$0xff] %v439_v17  ;;  %v445_v20 = vld [vmem:[%s6298_s9 + $0x80] sm:$0xff]  ;;  %v447_v21 = vld [vmem:[%s6298_s9 + $0x88] sm:$0xff] }
  0x82   : > { %442 = vst [vmem:[%s6306_s22 + $0x30] sm:$0xff] %v441_v18  ;;  %444 = vst [vmem:[%s6306_s22 + $0x38] sm:$0xff] %v443_v19  ;;  %v449_v22 = vld [vmem:[%s6298_s9 + $0xa0] sm:$0xff]  ;;  %v451_v23 = vld [vmem:[%s6298_s9 + $0xa8] sm:$0xff] }
  0x83   : > { %446 = vst [vmem:[%s6306_s22 + $0x40] sm:$0xff] %v445_v20  ;;  %448 = vst [vmem:[%s6306_s22 + $0x48] sm:$0xff] %v447_v21  ;;  %v453_v24 = vld [vmem:[%s6298_s9 + $0xc0] sm:$0xff]  ;;  %v455_v25 = vld [vmem:[%s6298_s9 + $0xc8] sm:$0xff] }
  0x84   : > { %450 = vst [vmem:[%s6306_s22 + $0x50] sm:$0xff] %v449_v22  ;;  %452 = vst [vmem:[%s6306_s22 + $0x58] sm:$0xff] %v451_v23  ;;  %v457_v26 = vld [vmem:[%s6298_s9 + $0xe0] sm:$0xff]  ;;  %v459_v27 = vld [vmem:[%s6298_s9 + $0xe8] sm:$0xff] }
  0x85   : > { %454 = vst [vmem:[%s6306_s22 + $0x60] sm:$0xff] %v453_v24  ;;  %456 = vst [vmem:[%s6306_s22 + $0x68] sm:$0xff] %v455_v25  ;;  %v461_v28 = vld [vmem:[%s6298_s9 + $0x100] sm:$0xff]  ;;  %v463_v29 = vld [vmem:[%s6298_s9 + $0x108] sm:$0xff] }
  0x86   : > { %458 = vst [vmem:[%s6306_s22 + $0x70] sm:$0xff] %v457_v26  ;;  %460 = vst [vmem:[%s6306_s22 + $0x78] sm:$0xff] %v459_v27  ;;  %v465_v30 = vld [vmem:[%s6298_s9 + $0x120] sm:$0xff]  ;;  %v467_v31 = vld [vmem:[%s6298_s9 + $0x128] sm:$0xff] }
  0x87   : > { %462 = vst [vmem:[%s6306_s22 + $0x80] sm:$0xff] %v461_v28  ;;  %464 = vst [vmem:[%s6306_s22 + $0x88] sm:$0xff] %v463_v29  ;;  %v469_v32 = vld [vmem:[%s6298_s9 + $0x140] sm:$0xff]  ;;  %v471_v33 = vld [vmem:[%s6298_s9 + $0x148] sm:$0xff] }
  0x88   : > { %466 = vst [vmem:[%s6306_s22 + $0x90] sm:$0xff] %v465_v30  ;;  %468 = vst [vmem:[%s6306_s22 + $0x98] sm:$0xff] %v467_v31  ;;  %v473_v34 = vld [vmem:[%s6298_s9 + $0x160] sm:$0xff]  ;;  %v475_v35 = vld [vmem:[%s6298_s9 + $0x168] sm:$0xff] }
  0x89   : > { %470 = vst [vmem:[%s6306_s22 + $0xa0] sm:$0xff] %v469_v32  ;;  %472 = vst [vmem:[%s6306_s22 + $0xa8] sm:$0xff] %v471_v33  ;;  %v477_v36 = vld [vmem:[%s6298_s9 + $0x180] sm:$0xff]  ;;  %v479_v37 = vld [vmem:[%s6298_s9 + $0x188] sm:$0xff] }
  0x8a   : > { %474 = vst [vmem:[%s6306_s22 + $0xb0] sm:$0xff] %v473_v34  ;;  %476 = vst [vmem:[%s6306_s22 + $0xb8] sm:$0xff] %v475_v35  ;;  %v481_v38 = vld [vmem:[%s6298_s9 + $0x1a0] sm:$0xff]  ;;  %v483_v39 = vld [vmem:[%s6298_s9 + $0x1a8] sm:$0xff] }
  0x8b   : > { %478 = vst [vmem:[%s6306_s22 + $0xc0] sm:$0xff] %v477_v36  ;;  %480 = vst [vmem:[%s6306_s22 + $0xc8] sm:$0xff] %v479_v37  ;;  %v485_v40 = vld [vmem:[%s6298_s9 + $0x1c0] sm:$0xff]  ;;  %v487_v41 = vld [vmem:[%s6298_s9 + $0x1c8] sm:$0xff] }
  0x8c   : > { %482 = vst [vmem:[%s6306_s22 + $0xd0] sm:$0xff] %v481_v38  ;;  %484 = vst [vmem:[%s6306_s22 + $0xd8] sm:$0xff] %v483_v39  ;;  %v489_v42 = vld [vmem:[%s6298_s9 + $0x1e0] sm:$0xff]  ;;  %v491_v43 = vld [vmem:[%s6298_s9 + $0x1e8] sm:$0xff] }
  0x8d   : > { %486 = vst [vmem:[%s6306_s22 + $0xe0] sm:$0xff] %v485_v40  ;;  %488 = vst [vmem:[%s6306_s22 + $0xe8] sm:$0xff] %v487_v41  ;;  %v493_v44 = vld [vmem:[%s6298_s9 + $0x200] sm:$0xff]  ;;  %v495_v45 = vld [vmem:[%s6298_s9 + $0x208] sm:$0xff] }
  0x8e   : > { %490 = vst [vmem:[%s6306_s22 + $0xf0] sm:$0xff] %v489_v42  ;;  %492 = vst [vmem:[%s6306_s22 + $0xf8] sm:$0xff] %v491_v43  ;;  %v497_v46 = vld [vmem:[%s6298_s9 + $0x220] sm:$0xff]  ;;  %v499_v47 = vld [vmem:[%s6298_s9 + $0x228] sm:$0xff] }
  0x8f   : > { %494 = vst [vmem:[%s6306_s22 + $0x100] sm:$0xff] %v493_v44  ;;  %496 = vst [vmem:[%s6306_s22 + $0x108] sm:$0xff] %v495_v45  ;;  %v501_v48 = vld [vmem:[%s6298_s9 + $0x240] sm:$0xff]  ;;  %v503_v49 = vld [vmem:[%s6298_s9 + $0x248] sm:$0xff] }
  0x90   : > { %498 = vst [vmem:[%s6306_s22 + $0x110] sm:$0xff] %v497_v46  ;;  %500 = vst [vmem:[%s6306_s22 + $0x118] sm:$0xff] %v499_v47  ;;  %v505_v50 = vld [vmem:[%s6298_s9 + $0x260] sm:$0xff]  ;;  %v507_v51 = vld [vmem:[%s6298_s9 + $0x268] sm:$0xff] }
  0x91   : > { %502 = vst [vmem:[%s6306_s22 + $0x120] sm:$0xff] %v501_v48  ;;  %504 = vst [vmem:[%s6306_s22 + $0x128] sm:$0xff] %v503_v49  ;;  %v509_v52 = vld [vmem:[%s6298_s9 + $0x280] sm:$0xff]  ;;  %v511_v53 = vld [vmem:[%s6298_s9 + $0x288] sm:$0xff] }
  0x92   : > { %506 = vst [vmem:[%s6306_s22 + $0x130] sm:$0xff] %v505_v50  ;;  %508 = vst [vmem:[%s6306_s22 + $0x138] sm:$0xff] %v507_v51  ;;  %v513_v54 = vld [vmem:[%s6298_s9 + $0x2a0] sm:$0xff]  ;;  %v515_v55 = vld [vmem:[%s6298_s9 + $0x2a8] sm:$0xff] }
  0x93   : > { %510 = vst [vmem:[%s6306_s22 + $0x140] sm:$0xff] %v509_v52  ;;  %512 = vst [vmem:[%s6306_s22 + $0x148] sm:$0xff] %v511_v53  ;;  %v517_v56 = vld [vmem:[%s6298_s9 + $0x2c0] sm:$0xff]  ;;  %v519_v57 = vld [vmem:[%s6298_s9 + $0x2c8] sm:$0xff] }
  0x94   : > { %514 = vst [vmem:[%s6306_s22 + $0x150] sm:$0xff] %v513_v54  ;;  %516 = vst [vmem:[%s6306_s22 + $0x158] sm:$0xff] %v515_v55  ;;  %v521_v58 = vld [vmem:[%s6298_s9 + $0x2e0] sm:$0xff]  ;;  %v523_v59 = vld [vmem:[%s6298_s9 + $0x2e8] sm:$0xff] }
  0x95   : > { %518 = vst [vmem:[%s6306_s22 + $0x160] sm:$0xff] %v517_v56  ;;  %520 = vst [vmem:[%s6306_s22 + $0x168] sm:$0xff] %v519_v57  ;;  %v525_v60 = vld [vmem:[%s6298_s9 + $0x300] sm:$0xff]  ;;  %v527_v61 = vld [vmem:[%s6298_s9 + $0x308] sm:$0xff] }
  0x96   : > { %522 = vst [vmem:[%s6306_s22 + $0x170] sm:$0xff] %v521_v58  ;;  %524 = vst [vmem:[%s6306_s22 + $0x178] sm:$0xff] %v523_v59  ;;  %v529_v62 = vld [vmem:[%s6298_s9 + $0x320] sm:$0xff]  ;;  %v531_v63 = vld [vmem:[%s6298_s9 + $0x328] sm:$0xff] }
  0x97   : > { %526 = vst [vmem:[%s6306_s22 + $0x180] sm:$0xff] %v525_v60  ;;  %528 = vst [vmem:[%s6306_s22 + $0x188] sm:$0xff] %v527_v61  ;;  %v533_v0 = vld [vmem:[%s6298_s9 + $0x340] sm:$0xff]  ;;  %v535_v1 = vld [vmem:[%s6298_s9 + $0x348] sm:$0xff] }
  0x98   : > { %530 = vst [vmem:[%s6306_s22 + $0x190] sm:$0xff] %v529_v62  ;;  %532 = vst [vmem:[%s6306_s22 + $0x198] sm:$0xff] %v531_v63  ;;  %v537_v2 = vld [vmem:[%s6298_s9 + $0x360] sm:$0xff]  ;;  %v539_v3 = vld [vmem:[%s6298_s9 + $0x368] sm:$0xff] }
  0x99   : > { %534 = vst [vmem:[%s6306_s22 + $0x1a0] sm:$0xff] %v533_v0  ;;  %536 = vst [vmem:[%s6306_s22 + $0x1a8] sm:$0xff] %v535_v1  ;;  %v541_v4 = vld [vmem:[%s6298_s9 + $0x380] sm:$0xff]  ;;  %v543_v5 = vld [vmem:[%s6298_s9 + $0x388] sm:$0xff] }
  0x9a   : > { %538 = vst [vmem:[%s6306_s22 + $0x1b0] sm:$0xff] %v537_v2  ;;  %540 = vst [vmem:[%s6306_s22 + $0x1b8] sm:$0xff] %v539_v3  ;;  %v545_v6 = vld [vmem:[%s6298_s9 + $0x3a0] sm:$0xff]  ;;  %v547_v7 = vld [vmem:[%s6298_s9 + $0x3a8] sm:$0xff] }
  0x9b   : > { %542 = vst [vmem:[%s6306_s22 + $0x1c0] sm:$0xff] %v541_v4  ;;  %544 = vst [vmem:[%s6306_s22 + $0x1c8] sm:$0xff] %v543_v5  ;;  %v549_v8 = vld [vmem:[%s6298_s9 + $0x3c0] sm:$0xff]  ;;  %v551_v9 = vld [vmem:[%s6298_s9 + $0x3c8] sm:$0xff] }
  0x9c   : > { %546 = vst [vmem:[%s6306_s22 + $0x1d0] sm:$0xff] %v545_v6  ;;  %548 = vst [vmem:[%s6306_s22 + $0x1d8] sm:$0xff] %v547_v7  ;;  %v553_v10 = vld [vmem:[%s6298_s9 + $0x3e0] sm:$0xff]  ;;  %v555_v11 = vld [vmem:[%s6298_s9 + $0x3e8] sm:$0xff] }
  0x9d   : > { %550 = vst [vmem:[%s6306_s22 + $0x1e0] sm:$0xff] %v549_v8  ;;  %552 = vst [vmem:[%s6306_s22 + $0x1e8] sm:$0xff] %v551_v9  ;;  %v557_v12 = vld [vmem:[%s6298_s9 + $0x400] sm:$0xff]  ;;  %v559_v13 = vld [vmem:[%s6298_s9 + $0x408] sm:$0xff] }
  0x9e   : > { %554 = vst [vmem:[%s6306_s22 + $0x1f0] sm:$0xff] %v553_v10  ;;  %556 = vst [vmem:[%s6306_s22 + $0x1f8] sm:$0xff] %v555_v11  ;;  %v561_v14 = vld [vmem:[%s6298_s9 + $0x420] sm:$0xff]  ;;  %v563_v15 = vld [vmem:[%s6298_s9 + $0x428] sm:$0xff] }
  0x9f   : > { %558 = vst [vmem:[%s6306_s22 + $0x200] sm:$0xff] %v557_v12  ;;  %560 = vst [vmem:[%s6306_s22 + $0x208] sm:$0xff] %v559_v13  ;;  %v565_v16 = vld [vmem:[%s6298_s9 + $0x440] sm:$0xff]  ;;  %v567_v17 = vld [vmem:[%s6298_s9 + $0x448] sm:$0xff] }
  0xa0   : > { %562 = vst [vmem:[%s6306_s22 + $0x210] sm:$0xff] %v561_v14  ;;  %564 = vst [vmem:[%s6306_s22 + $0x218] sm:$0xff] %v563_v15  ;;  %v569_v18 = vld [vmem:[%s6298_s9 + $0x460] sm:$0xff]  ;;  %v571_v19 = vld [vmem:[%s6298_s9 + $0x468] sm:$0xff] }
  0xa1   : > { %566 = vst [vmem:[%s6306_s22 + $0x220] sm:$0xff] %v565_v16  ;;  %568 = vst [vmem:[%s6306_s22 + $0x228] sm:$0xff] %v567_v17  ;;  %v573_v20 = vld [vmem:[%s6298_s9 + $0x480] sm:$0xff]  ;;  %v575_v21 = vld [vmem:[%s6298_s9 + $0x488] sm:$0xff] }
  0xa2   : > { %570 = vst [vmem:[%s6306_s22 + $0x230] sm:$0xff] %v569_v18  ;;  %572 = vst [vmem:[%s6306_s22 + $0x238] sm:$0xff] %v571_v19  ;;  %v577_v22 = vld [vmem:[%s6298_s9 + $0x4a0] sm:$0xff]  ;;  %v579_v23 = vld [vmem:[%s6298_s9 + $0x4a8] sm:$0xff] }
  0xa3   : > { %574 = vst [vmem:[%s6306_s22 + $0x240] sm:$0xff] %v573_v20  ;;  %576 = vst [vmem:[%s6306_s22 + $0x248] sm:$0xff] %v575_v21 }
  0xa4   : > { %578 = vst [vmem:[%s6306_s22 + $0x250] sm:$0xff] %v577_v22  ;;  %580 = vst [vmem:[%s6306_s22 + $0x258] sm:$0xff] %v579_v23 }
  0xa5 PF: > { %p4803_p7 = scmp.ge.s32.totalorder %s5920_s27, 1  ;;  %p585_p12 = scmp.lt.s32.totalorder %s5920_s27, 13 }
  0xa7   : > { %p586_p0 = pnand %p4803_p7, %p585_p12 }
  0xa8   : > { %s592_s5 = sand.u32 (!%p586_p0), 1, %s5896_s21   ;;  %s598_s12 = sand.u32 (!%p586_p0), 1, %s5888_s19  }
  0xa9   : > { %589 = sbr.rel (%p586_p0) target bundleno = 994 (0x3e2), region = 74  ;;  %s4804_s8 = sshll.u32 (!%p586_p0), %s598_s12, 10 }
  0xaa   : > { %s5326_s10 = smul.u32 (!%p586_p0), 608, %s592_s5  ;;  %s599_s20 = scalar_lea.sflag (!%p586_p0), [#allocation5], %s598_s12 }
  0xab   : > { %s6460_s0 = scalar_lea.vmem (!%p586_p0), [#allocation4], %s4804_s8  ;;  %p7268_p6 = scmp.ne.s32.totalorder (!%p586_p0), %s7260_s30, 0 }
  0xac   : > { %s6458_s28 = scalar_lea.vmem (!%p586_p0), [#allocation3], %s5326_s10 }
  0xb0   : > { %5863 = dma.done.wait (%p7268_p6), %s599_s20, 16384  }
  0xb1   : > { %5865 = vsyncadd (%p7268_p6), %s599_s20, 4294950912  ;;  %s608_s11 = sand.u32 1, %s5876_s16   ;;  %s4805_s13 = sshll.u32 %s5908_s24, 2 }
  0xb2   : > { %s5327_s21 = smul.u32 608, %s608_s11  ;;  %p651_p8 = scmp.lt.s32.totalorder %s4805_s13, 7 }
  0xb3   : > { %p4806_p10 = scmp.ne.s32.totalorder %s5904_s23, 0 }
  0xb4   : > { %s7298_s13 = smov (!%p651_p8, %s4805_s13), 7  ;;  %s6476_s6 = scalar_lea.vmem [#allocation7], %s5327_s21  ;;  %v5926_v24 = vmov (!%p4806_p10), 0.0  }
  0xb5   : > { %s653_s29 = scalar_lea.vmem %s7241_s2, %s7298_s13  ;;  %s6478_s9 = scalar_lea.vmem [#allocation8], %s5327_s21  ;;  %663 = vst [vmem:[#allocation2] sm:$0xff] (!%p4806_p10), %v5926_v24  ;;  %664 = vst [vmem:[#allocation2 + $0x8] sm:$0xff] (!%p4806_p10), %v5926_v24 }
  0xb6   : > { %662 = sbr.rel (%p4806_p10) target bundleno = 257 (0x101), region = 90  ;;  %665 = vst [vmem:[#allocation2 + $0x10] sm:$0xff] (!%p4806_p10), %v5926_v24  ;;  %666 = vst [vmem:[#allocation2 + $0x18] sm:$0xff] (!%p4806_p10), %v5926_v24 }
  0xb7   : > { %667 = vst [vmem:[#allocation2 + $0x20] sm:$0xff] (!%p4806_p10), %v5926_v24  ;;  %668 = vst [vmem:[#allocation2 + $0x28] sm:$0xff] (!%p4806_p10), %v5926_v24 }
  0xb8   : > { %669 = vst [vmem:[#allocation2 + $0x30] sm:$0xff] (!%p4806_p10), %v5926_v24  ;;  %670 = vst [vmem:[#allocation2 + $0x38] sm:$0xff] (!%p4806_p10), %v5926_v24 }
  0xb9   : > { %671 = vst [vmem:[#allocation2 + $0x40] sm:$0xff] (!%p4806_p10), %v5926_v24  ;;  %672 = vst [vmem:[#allocation2 + $0x48] sm:$0xff] (!%p4806_p10), %v5926_v24 }
  0xba   : > { %673 = vst [vmem:[#allocation2 + $0x50] sm:$0xff] (!%p4806_p10), %v5926_v24  ;;  %674 = vst [vmem:[#allocation2 + $0x58] sm:$0xff] (!%p4806_p10), %v5926_v24 }
  0xbb   : > { %675 = vst [vmem:[#allocation2 + $0x60] sm:$0xff] (!%p4806_p10), %v5926_v24  ;;  %676 = vst [vmem:[#allocation2 + $0x68] sm:$0xff] (!%p4806_p10), %v5926_v24 }
  0xbc   : > { %677 = vst [vmem:[#allocation2 + $0x70] sm:$0xff] (!%p4806_p10), %v5926_v24  ;;  %678 = vst [vmem:[#allocation2 + $0x78] sm:$0xff] (!%p4806_p10), %v5926_v24 }
  0xbd   : > { %679 = vst [vmem:[#allocation2 + $0x80] sm:$0xff] %v5926_v24  ;;  %680 = vst [vmem:[#allocation2 + $0x88] sm:$0xff] %v5926_v24 }
  0xbe   : > { %681 = vst [vmem:[#allocation2 + $0x90] sm:$0xff] %v5926_v24  ;;  %682 = vst [vmem:[#allocation2 + $0x98] sm:$0xff] %v5926_v24 }
  0xbf   : > { %683 = vst [vmem:[#allocation2 + $0xa0] sm:$0xff] %v5926_v24  ;;  %684 = vst [vmem:[#allocation2 + $0xa8] sm:$0xff] %v5926_v24 }
  0xc0   : > { %685 = vst [vmem:[#allocation2 + $0xb0] sm:$0xff] %v5926_v24  ;;  %686 = vst [vmem:[#allocation2 + $0xb8] sm:$0xff] %v5926_v24 }
  0xc1   : > { %687 = vst [vmem:[#allocation2 + $0xc0] sm:$0xff] %v5926_v24  ;;  %688 = vst [vmem:[#allocation2 + $0xc8] sm:$0xff] %v5926_v24 }
  0xc2   : > { %689 = vst [vmem:[#allocation2 + $0xd0] sm:$0xff] %v5926_v24  ;;  %690 = vst [vmem:[#allocation2 + $0xd8] sm:$0xff] %v5926_v24 }
  0xc3   : > { %691 = vst [vmem:[#allocation2 + $0xe0] sm:$0xff] %v5926_v24  ;;  %692 = vst [vmem:[#allocation2 + $0xe8] sm:$0xff] %v5926_v24 }
  0xc4   : > { %693 = vst [vmem:[#allocation2 + $0xf0] sm:$0xff] %v5926_v24  ;;  %694 = vst [vmem:[#allocation2 + $0xf8] sm:$0xff] %v5926_v24 }
  0xc5   : > { %695 = vst [vmem:[#allocation2 + $0x100] sm:$0xff] %v5926_v24  ;;  %696 = vst [vmem:[#allocation2 + $0x108] sm:$0xff] %v5926_v24 }
  0xc6   : > { %697 = vst [vmem:[#allocation2 + $0x110] sm:$0xff] %v5926_v24  ;;  %698 = vst [vmem:[#allocation2 + $0x118] sm:$0xff] %v5926_v24 }
  0xc7   : > { %699 = vst [vmem:[#allocation2 + $0x120] sm:$0xff] %v5926_v24  ;;  %700 = vst [vmem:[#allocation2 + $0x128] sm:$0xff] %v5926_v24 }
  0xc8   : > { %701 = vst [vmem:[#allocation2 + $0x130] sm:$0xff] %v5926_v24  ;;  %702 = vst [vmem:[#allocation2 + $0x138] sm:$0xff] %v5926_v24 }
  0xc9   : > { %703 = vst [vmem:[#allocation2 + $0x140] sm:$0xff] %v5926_v24  ;;  %704 = vst [vmem:[#allocation2 + $0x148] sm:$0xff] %v5926_v24 }
  0xca   : > { %705 = vst [vmem:[#allocation2 + $0x150] sm:$0xff] %v5926_v24  ;;  %706 = vst [vmem:[#allocation2 + $0x158] sm:$0xff] %v5926_v24 }
  0xcb   : > { %707 = vst [vmem:[#allocation2 + $0x160] sm:$0xff] %v5926_v24  ;;  %708 = vst [vmem:[#allocation2 + $0x168] sm:$0xff] %v5926_v24 }
  0xcc   : > { %709 = vst [vmem:[#allocation2 + $0x170] sm:$0xff] %v5926_v24  ;;  %710 = vst [vmem:[#allocation2 + $0x178] sm:$0xff] %v5926_v24 }
  0xcd   : > { %711 = vst [vmem:[#allocation2 + $0x180] sm:$0xff] %v5926_v24  ;;  %712 = vst [vmem:[#allocation2 + $0x188] sm:$0xff] %v5926_v24 }
  0xce   : > { %713 = vst [vmem:[#allocation2 + $0x190] sm:$0xff] %v5926_v24  ;;  %714 = vst [vmem:[#allocation2 + $0x198] sm:$0xff] %v5926_v24 }
  0xcf   : > { %715 = vst [vmem:[#allocation2 + $0x1a0] sm:$0xff] %v5926_v24  ;;  %716 = vst [vmem:[#allocation2 + $0x1a8] sm:$0xff] %v5926_v24 }
  0xd0   : > { %717 = vst [vmem:[#allocation2 + $0x1b0] sm:$0xff] %v5926_v24  ;;  %718 = vst [vmem:[#allocation2 + $0x1b8] sm:$0xff] %v5926_v24 }
  0xd1   : > { %719 = vst [vmem:[#allocation2 + $0x1c0] sm:$0xff] %v5926_v24  ;;  %720 = vst [vmem:[#allocation2 + $0x1c8] sm:$0xff] %v5926_v24 }
  0xd2   : > { %721 = vst [vmem:[#allocation2 + $0x1d0] sm:$0xff] %v5926_v24  ;;  %722 = vst [vmem:[#allocation2 + $0x1d8] sm:$0xff] %v5926_v24 }
  0xd3   : > { %723 = vst [vmem:[#allocation2 + $0x1e0] sm:$0xff] %v5926_v24  ;;  %724 = vst [vmem:[#allocation2 + $0x1e8] sm:$0xff] %v5926_v24 }
  0xd4   : > { %725 = vst [vmem:[#allocation2 + $0x1f0] sm:$0xff] %v5926_v24  ;;  %726 = vst [vmem:[#allocation2 + $0x1f8] sm:$0xff] %v5926_v24 }
  0xd5   : > { %727 = vst [vmem:[#allocation2 + $0x200] sm:$0xff] %v5926_v24  ;;  %728 = vst [vmem:[#allocation2 + $0x208] sm:$0xff] %v5926_v24 }
  0xd6   : > { %729 = vst [vmem:[#allocation2 + $0x210] sm:$0xff] %v5926_v24  ;;  %730 = vst [vmem:[#allocation2 + $0x218] sm:$0xff] %v5926_v24 }
  0xd7   : > { %731 = vst [vmem:[#allocation2 + $0x220] sm:$0xff] %v5926_v24  ;;  %732 = vst [vmem:[#allocation2 + $0x228] sm:$0xff] %v5926_v24 }
  0xd8   : > { %733 = vst [vmem:[#allocation2 + $0x230] sm:$0xff] %v5926_v24  ;;  %734 = vst [vmem:[#allocation2 + $0x238] sm:$0xff] %v5926_v24 }
  0xd9   : > { %735 = vst [vmem:[#allocation2 + $0x240] sm:$0xff] %v5926_v24  ;;  %736 = vst [vmem:[#allocation2 + $0x248] sm:$0xff] %v5926_v24 }
  0xda   : > { %737 = vst [vmem:[#allocation2 + $0x250] sm:$0xff] %v5926_v24  ;;  %738 = vst [vmem:[#allocation2 + $0x258] sm:$0xff] %v5926_v24 }
  0xdb   : > { %739 = vst [vmem:[#allocation2 + $0x260] sm:$0xff] %v5926_v24  ;;  %740 = vst [vmem:[#allocation2 + $0x268] sm:$0xff] %v5926_v24 }
  0xdc   : > { %741 = vst [vmem:[#allocation2 + $0x270] sm:$0xff] %v5926_v24  ;;  %742 = vst [vmem:[#allocation2 + $0x278] sm:$0xff] %v5926_v24 }
  0xdd   : > { %743 = vst [vmem:[#allocation2 + $0x280] sm:$0xff] %v5926_v24  ;;  %744 = vst [vmem:[#allocation2 + $0x288] sm:$0xff] %v5926_v24 }
  0xde   : > { %745 = vst [vmem:[#allocation2 + $0x290] sm:$0xff] %v5926_v24  ;;  %746 = vst [vmem:[#allocation2 + $0x298] sm:$0xff] %v5926_v24 }
  0xdf   : > { %747 = vst [vmem:[#allocation2 + $0x2a0] sm:$0xff] %v5926_v24  ;;  %748 = vst [vmem:[#allocation2 + $0x2a8] sm:$0xff] %v5926_v24 }
  0xe0   : > { %749 = vst [vmem:[#allocation2 + $0x2b0] sm:$0xff] %v5926_v24  ;;  %750 = vst [vmem:[#allocation2 + $0x2b8] sm:$0xff] %v5926_v24 }
  0xe1   : > { %751 = vst [vmem:[#allocation2 + $0x2c0] sm:$0xff] %v5926_v24  ;;  %752 = vst [vmem:[#allocation2 + $0x2c8] sm:$0xff] %v5926_v24 }
  0xe2   : > { %753 = vst [vmem:[#allocation2 + $0x2d0] sm:$0xff] %v5926_v24  ;;  %754 = vst [vmem:[#allocation2 + $0x2d8] sm:$0xff] %v5926_v24 }
  0xe3   : > { %755 = vst [vmem:[#allocation2 + $0x2e0] sm:$0xff] %v5926_v24  ;;  %756 = vst [vmem:[#allocation2 + $0x2e8] sm:$0xff] %v5926_v24 }
  0xe4   : > { %757 = vst [vmem:[#allocation2 + $0x2f0] sm:$0xff] %v5926_v24  ;;  %758 = vst [vmem:[#allocation2 + $0x2f8] sm:$0xff] %v5926_v24 }
  0xe5   : > { %759 = vst [vmem:[#allocation2 + $0x300] sm:$0xff] %v5926_v24  ;;  %760 = vst [vmem:[#allocation2 + $0x308] sm:$0xff] %v5926_v24 }
  0xe6   : > { %761 = vst [vmem:[#allocation2 + $0x310] sm:$0xff] %v5926_v24  ;;  %762 = vst [vmem:[#allocation2 + $0x318] sm:$0xff] %v5926_v24 }
  0xe7   : > { %763 = vst [vmem:[#allocation2 + $0x320] sm:$0xff] %v5926_v24  ;;  %764 = vst [vmem:[#allocation2 + $0x328] sm:$0xff] %v5926_v24 }
  0xe8   : > { %765 = vst [vmem:[#allocation2 + $0x330] sm:$0xff] %v5926_v24  ;;  %766 = vst [vmem:[#allocation2 + $0x338] sm:$0xff] %v5926_v24 }
  0xe9   : > { %767 = vst [vmem:[#allocation2 + $0x340] sm:$0xff] %v5926_v24  ;;  %768 = vst [vmem:[#allocation2 + $0x348] sm:$0xff] %v5926_v24 }
  0xea   : > { %769 = vst [vmem:[#allocation2 + $0x350] sm:$0xff] %v5926_v24  ;;  %770 = vst [vmem:[#allocation2 + $0x358] sm:$0xff] %v5926_v24 }
  0xeb   : > { %771 = vst [vmem:[#allocation2 + $0x360] sm:$0xff] %v5926_v24  ;;  %772 = vst [vmem:[#allocation2 + $0x368] sm:$0xff] %v5926_v24 }
  0xec   : > { %773 = vst [vmem:[#allocation2 + $0x370] sm:$0xff] %v5926_v24  ;;  %774 = vst [vmem:[#allocation2 + $0x378] sm:$0xff] %v5926_v24 }
  0xed   : > { %775 = vst [vmem:[#allocation2 + $0x380] sm:$0xff] %v5926_v24  ;;  %776 = vst [vmem:[#allocation2 + $0x388] sm:$0xff] %v5926_v24 }
  0xee   : > { %777 = vst [vmem:[#allocation2 + $0x390] sm:$0xff] %v5926_v24  ;;  %778 = vst [vmem:[#allocation2 + $0x398] sm:$0xff] %v5926_v24 }
  0xef   : > { %779 = vst [vmem:[#allocation2 + $0x3a0] sm:$0xff] %v5926_v24  ;;  %780 = vst [vmem:[#allocation2 + $0x3a8] sm:$0xff] %v5926_v24 }
  0xf0   : > { %781 = vst [vmem:[#allocation2 + $0x3b0] sm:$0xff] %v5926_v24  ;;  %782 = vst [vmem:[#allocation2 + $0x3b8] sm:$0xff] %v5926_v24 }
  0xf1   : > { %783 = vst [vmem:[#allocation2 + $0x3c0] sm:$0xff] %v5926_v24  ;;  %784 = vst [vmem:[#allocation2 + $0x3c8] sm:$0xff] %v5926_v24 }
  0xf2   : > { %785 = vst [vmem:[#allocation2 + $0x3d0] sm:$0xff] %v5926_v24  ;;  %786 = vst [vmem:[#allocation2 + $0x3d8] sm:$0xff] %v5926_v24 }
  0xf3   : > { %787 = vst [vmem:[#allocation2 + $0x3e0] sm:$0xff] %v5926_v24  ;;  %788 = vst [vmem:[#allocation2 + $0x3e8] sm:$0xff] %v5926_v24 }
  0xf4   : > { %789 = vst [vmem:[#allocation2 + $0x3f0] sm:$0xff] %v5926_v24  ;;  %790 = vst [vmem:[#allocation2 + $0x3f8] sm:$0xff] %v5926_v24 }
  0xf5   : > { %791 = vst [vmem:[#allocation2 + $0x400] sm:$0xff] %v5926_v24  ;;  %792 = vst [vmem:[#allocation2 + $0x408] sm:$0xff] %v5926_v24 }
  0xf6   : > { %793 = vst [vmem:[#allocation2 + $0x410] sm:$0xff] %v5926_v24  ;;  %794 = vst [vmem:[#allocation2 + $0x418] sm:$0xff] %v5926_v24 }
  0xf7   : > { %795 = vst [vmem:[#allocation2 + $0x420] sm:$0xff] %v5926_v24  ;;  %796 = vst [vmem:[#allocation2 + $0x428] sm:$0xff] %v5926_v24 }
  0xf8   : > { %797 = vst [vmem:[#allocation2 + $0x430] sm:$0xff] %v5926_v24  ;;  %798 = vst [vmem:[#allocation2 + $0x438] sm:$0xff] %v5926_v24 }
  0xf9   : > { %799 = vst [vmem:[#allocation2 + $0x440] sm:$0xff] %v5926_v24  ;;  %800 = vst [vmem:[#allocation2 + $0x448] sm:$0xff] %v5926_v24 }
  0xfa   : > { %801 = vst [vmem:[#allocation2 + $0x450] sm:$0xff] %v5926_v24  ;;  %802 = vst [vmem:[#allocation2 + $0x458] sm:$0xff] %v5926_v24 }
  0xfb   : > { %803 = vst [vmem:[#allocation2 + $0x460] sm:$0xff] %v5926_v24  ;;  %804 = vst [vmem:[#allocation2 + $0x468] sm:$0xff] %v5926_v24 }
  0xfc   : > { %805 = vst [vmem:[#allocation2 + $0x470] sm:$0xff] %v5926_v24  ;;  %806 = vst [vmem:[#allocation2 + $0x478] sm:$0xff] %v5926_v24 }
  0xfd   : > { %807 = vst [vmem:[#allocation2 + $0x480] sm:$0xff] %v5926_v24  ;;  %808 = vst [vmem:[#allocation2 + $0x488] sm:$0xff] %v5926_v24 }
  0xfe   : > { %809 = vst [vmem:[#allocation2 + $0x490] sm:$0xff] %v5926_v24  ;;  %810 = vst [vmem:[#allocation2 + $0x498] sm:$0xff] %v5926_v24 }
  0xff   : > { %811 = vst [vmem:[#allocation2 + $0x4a0] sm:$0xff] %v5926_v24  ;;  %812 = vst [vmem:[#allocation2 + $0x4a8] sm:$0xff] %v5926_v24 }
 0x100   : > { %813 = vst [vmem:[#allocation2 + $0x4b0] sm:$0xff] %v5926_v24  ;;  %814 = vst [vmem:[#allocation2 + $0x4b8] sm:$0xff] %v5926_v24 }
 0x101 PF: > { %v5448_v25 = vld [vmem:[%s6460_s0 + $0x4] ss:$16 sps:$4 sm:$0xff]   ;;  %v5450_v26 = vld [vmem:[%s6460_s0 + $0xc] ss:$16 sps:$4 sm:$0xff]   ;;  %v5452_v27 = vld [vmem:[%s6460_s0] ss:$16 sps:$4 sm:$0xff]  }
 0x102   : > { %2191 = vmatprep.subr.bf16.mxu0 %v5448_v25  ;;  %v5453_v28 = vld [vmem:[%s6460_s0 + $0x8] ss:$16 sps:$4 sm:$0xff]   ;;  %2637 = vmatprep.subr.bf16.mxu1 %v5450_v26  ;;  %v5454_v29 = vld [vmem:[%s6460_s0 + $0x24] ss:$16 sps:$4 sm:$0xff]   ;;  %v5456_v30 = vld [vmem:[%s6460_s0 + $0x2c] ss:$16 sps:$4 sm:$0xff]  }
 0x103   : > { %2192 = vmatpush1.bf16.msra.mxu0 %v5452_v27  ;;  %2638 = vmatpush1.bf16.msra.mxu1 %v5453_v28  ;;  %v5458_v31 = vld [vmem:[%s6460_s0 + $0x20] ss:$16 sps:$4 sm:$0xff]   ;;  %v5459_v32 = vld [vmem:[%s6460_s0 + $0x28] ss:$16 sps:$4 sm:$0xff]   ;;  %v5460_v33 = vld [vmem:[%s6460_s0 + $0x44] ss:$16 sps:$4 sm:$0xff]  }
 0x104   : > { %2193 = vmatprep.subr.bf16.mxu0 %v5454_v29  ;;  %2639 = vmatprep.subr.bf16.mxu1 %v5456_v30  ;;  %v5462_v34 = vld [vmem:[%s6460_s0 + $0x4c] ss:$16 sps:$4 sm:$0xff]   ;;  %v5464_v35 = vld [vmem:[%s6460_s0 + $0x40] ss:$16 sps:$4 sm:$0xff]   ;;  %v5465_v36 = vld [vmem:[%s6460_s0 + $0x48] ss:$16 sps:$4 sm:$0xff]  }
 0x105   : > { %v5466_v37 = vld [vmem:[%s6460_s0 + $0x64] ss:$16 sps:$4 sm:$0xff]   ;;  %v5468_v38 = vld [vmem:[%s6460_s0 + $0x6c] ss:$16 sps:$4 sm:$0xff]   ;;  %v5470_v39 = vld [vmem:[%s6460_s0 + $0x60] ss:$16 sps:$4 sm:$0xff]  }
 0x106   : > { %v5471_v40 = vld [vmem:[%s6460_s0 + $0x68] ss:$16 sps:$4 sm:$0xff]   ;;  %v5472_v41 = vld [vmem:[%s6460_s0 + $0x84] ss:$16 sps:$4 sm:$0xff]   ;;  %v5474_v42 = vld [vmem:[%s6460_s0 + $0x8c] ss:$16 sps:$4 sm:$0xff]  }
 0x107   : > { %2194 = vmatpush1.bf16.msra.mxu0 %v5458_v31  ;;  %2640 = vmatpush1.bf16.msra.mxu1 %v5459_v32  ;;  %v5476_v43 = vld [vmem:[%s6460_s0 + $0x80] ss:$16 sps:$4 sm:$0xff]   ;;  %v5477_v44 = vld [vmem:[%s6460_s0 + $0x88] ss:$16 sps:$4 sm:$0xff]   ;;  %v5478_v45 = vld [vmem:[%s6460_s0 + $0xa4] ss:$16 sps:$4 sm:$0xff]  }
 0x108   : > { %2195 = vmatprep.subr.bf16.mxu0 %v5460_v33  ;;  %2641 = vmatprep.subr.bf16.mxu1 %v5462_v34  ;;  %v5480_v46 = vld [vmem:[%s6460_s0 + $0xac] ss:$16 sps:$4 sm:$0xff]   ;;  %v5482_v47 = vld [vmem:[%s6460_s0 + $0xa0] ss:$16 sps:$4 sm:$0xff]   ;;  %v5483_v48 = vld [vmem:[%s6460_s0 + $0xa8] ss:$16 sps:$4 sm:$0xff]  }
 0x109   : > { %v5484_v49 = vld [vmem:[%s6460_s0 + $0xc4] ss:$16 sps:$4 sm:$0xff]   ;;  %v5486_v50 = vld [vmem:[%s6460_s0 + $0xcc] ss:$16 sps:$4 sm:$0xff]   ;;  %v5488_v51 = vld [vmem:[%s6460_s0 + $0xc0] ss:$16 sps:$4 sm:$0xff]  }
 0x10a   : > { %v5489_v52 = vld [vmem:[%s6460_s0 + $0xc8] ss:$16 sps:$4 sm:$0xff]   ;;  %v5490_v53 = vld [vmem:[%s6460_s0 + $0xe4] ss:$16 sps:$4 sm:$0xff]   ;;  %v5492_v54 = vld [vmem:[%s6460_s0 + $0xec] ss:$16 sps:$4 sm:$0xff]  }
 0x10b   : > { %2196 = vmatpush1.bf16.msra.mxu0 %v5464_v35  ;;  %2642 = vmatpush1.bf16.msra.mxu1 %v5465_v36  ;;  %v5494_v55 = vld [vmem:[%s6460_s0 + $0xe0] ss:$16 sps:$4 sm:$0xff]   ;;  %v5495_v56 = vld [vmem:[%s6460_s0 + $0xe8] ss:$16 sps:$4 sm:$0xff]   ;;  %v5496_v57 = vld [vmem:[%s6460_s0 + $0x104] ss:$16 sps:$4 sm:$0xff]  }
 0x10c   : > { %2197 = vmatprep.subr.bf16.mxu0 %v5466_v37  ;;  %2643 = vmatprep.subr.bf16.mxu1 %v5468_v38  ;;  %v5498_v58 = vld [vmem:[%s6460_s0 + $0x10c] ss:$16 sps:$4 sm:$0xff]   ;;  %v5500_v59 = vld [vmem:[%s6460_s0 + $0x100] ss:$16 sps:$4 sm:$0xff]   ;;  %v5501_v60 = vld [vmem:[%s6460_s0 + $0x108] ss:$16 sps:$4 sm:$0xff]  }
 0x10d   : > { %v5502_v61 = vld [vmem:[%s6460_s0 + $0x124] ss:$16 sps:$4 sm:$0xff]   ;;  %v5504_v62 = vld [vmem:[%s6460_s0 + $0x12c] ss:$16 sps:$4 sm:$0xff]   ;;  %v5506_v63 = vld [vmem:[%s6460_s0 + $0x120] ss:$16 sps:$4 sm:$0xff]  }
 0x10e   : > { %v5507_v0 = vld [vmem:[%s6460_s0 + $0x128] ss:$16 sps:$4 sm:$0xff]   ;;  %v5508_v1 = vld [vmem:[%s6460_s0 + $0x144] ss:$16 sps:$4 sm:$0xff]   ;;  %v5510_v2 = vld [vmem:[%s6460_s0 + $0x14c] ss:$16 sps:$4 sm:$0xff]  }
 0x10f   : > { %2198 = vmatpush1.bf16.msra.mxu0 %v5470_v39  ;;  %2644 = vmatpush1.bf16.msra.mxu1 %v5471_v40  ;;  %v5512_v3 = vld [vmem:[%s6460_s0 + $0x140] ss:$16 sps:$4 sm:$0xff]   ;;  %v5513_v4 = vld [vmem:[%s6460_s0 + $0x148] ss:$16 sps:$4 sm:$0xff]   ;;  %v5514_v5 = vld [vmem:[%s6460_s0 + $0x164] ss:$16 sps:$4 sm:$0xff]  }
 0x110   : > { %2199 = vmatprep.subr.bf16.mxu0 %v5472_v41  ;;  %2645 = vmatprep.subr.bf16.mxu1 %v5474_v42  ;;  %v5516_v6 = vld [vmem:[%s6460_s0 + $0x16c] ss:$16 sps:$4 sm:$0xff]   ;;  %v5518_v7 = vld [vmem:[%s6460_s0 + $0x160] ss:$16 sps:$4 sm:$0xff]   ;;  %v5519_v8 = vld [vmem:[%s6460_s0 + $0x168] ss:$16 sps:$4 sm:$0xff]  }
 0x111   : > { %v5546_v9 = vld [vmem:[%s6458_s28 + $0x4] ss:$16 sps:$4 sm:$0xff]   ;;  %v5522_v11 = vld [vmem:[%s6460_s0 + $0x18c] ss:$16 sps:$4 sm:$0xff]   ;;  %v5524_v12 = vld [vmem:[%s6460_s0 + $0x180] ss:$16 sps:$4 sm:$0xff]  }
 0x112   : > { %v5520_v10 = vld [vmem:[%s6460_s0 + $0x184] ss:$16 sps:$4 sm:$0xff]   ;;  %2223 = vmatprep.mubr.bf16.mxu0 %v5546_v9  ;;  %2669 = vmatprep.mubr.bf16.mxu1 %v5546_v9  ;;  %v5525_v13 = vld [vmem:[%s6460_s0 + $0x188] ss:$16 sps:$4 sm:$0xff]   ;;  %v5528_v15 = vld [vmem:[%s6460_s0 + $0x1ac] ss:$16 sps:$4 sm:$0xff]  }
 0x113   : > { %2200 = vmatpush1.bf16.msra.mxu0 %v5476_v43  ;;  %2646 = vmatpush1.bf16.msra.mxu1 %v5477_v44  ;;  %v5526_v14 = vld [vmem:[%s6460_s0 + $0x1a4] ss:$16 sps:$4 sm:$0xff]   ;;  %v5530_v16 = vld [vmem:[%s6460_s0 + $0x1a0] ss:$16 sps:$4 sm:$0xff]   ;;  %v5531_v17 = vld [vmem:[%s6460_s0 + $0x1a8] ss:$16 sps:$4 sm:$0xff]  }
 0x114   : > { %2201 = vmatprep.subr.bf16.mxu0 %v5478_v45  ;;  %2647 = vmatprep.subr.bf16.mxu1 %v5480_v46  ;;  %v5532_v18 = vld [vmem:[%s6460_s0 + $0x1c4] ss:$16 sps:$4 sm:$0xff]   ;;  %v5534_v19 = vld [vmem:[%s6460_s0 + $0x1cc] ss:$16 sps:$4 sm:$0xff]   ;;  %v5536_v20 = vld [vmem:[%s6460_s0 + $0x1c0] ss:$16 sps:$4 sm:$0xff]  }
 0x115   : > { %v5537_v21 = vld [vmem:[%s6460_s0 + $0x1c8] ss:$16 sps:$4 sm:$0xff]   ;;  %v5538_v22 = vld [vmem:[%s6460_s0 + $0x1e4] ss:$16 sps:$4 sm:$0xff]   ;;  %v5540_v23 = vld [vmem:[%s6460_s0 + $0x1ec] ss:$16 sps:$4 sm:$0xff]  }
 0x116   : > { %v5542_v24 = vld [vmem:[%s6460_s0 + $0x1e0] ss:$16 sps:$4 sm:$0xff]   ;;  %v5543_v25 = vld [vmem:[%s6460_s0 + $0x1e8] ss:$16 sps:$4 sm:$0xff]   ;;  %v5549_v26 = vld [vmem:[%s6460_s0 + $0x204] ss:$16 sps:$4 sm:$0xff]  }
 0x117   : > { %2202 = vmatpush1.bf16.msra.mxu0 %v5482_v47  ;;  %2648 = vmatpush1.bf16.msra.mxu1 %v5483_v48  ;;  %v5552_v27 = vld [vmem:[%s6460_s0 + $0x20c] ss:$16 sps:$4 sm:$0xff]   ;;  %v5544_v28 = vld [vmem:[%s6458_s28] ss:$16 sps:$4 sm:$0xff]   ;;  %v5550_v30 = vld [vmem:[%s6460_s0 + $0x208] ss:$16 sps:$4 sm:$0xff]  }
 0x118   : > { %2203 = vmatprep.subr.bf16.mxu0 %v5484_v49  ;;  %2649 = vmatprep.subr.bf16.mxu1 %v5486_v50  ;;  %v5547_v29 = vld [vmem:[%s6460_s0 + $0x200] ss:$16 sps:$4 sm:$0xff]   ;;  %v5553_v31 = vld [vmem:[%s6458_s28 + $0x24] ss:$16 sps:$4 sm:$0xff]   ;;  %v5561_v33 = vld [vmem:[%s6460_s0 + $0x22c] ss:$16 sps:$4 sm:$0xff]  }
 0x119   : > { %v5558_v32 = vld [vmem:[%s6460_s0 + $0x224] ss:$16 sps:$4 sm:$0xff]   ;;  %v5556_v34 = vld [vmem:[%s6460_s0 + $0x220] ss:$16 sps:$4 sm:$0xff]   ;;  %v5559_v35 = vld [vmem:[%s6460_s0 + $0x228] ss:$16 sps:$4 sm:$0xff]  }
 0x11a   : > { %v5567_v36 = vld [vmem:[%s6460_s0 + $0x244] ss:$16 sps:$4 sm:$0xff]   ;;  %v5570_v37 = vld [vmem:[%s6460_s0 + $0x24c] ss:$16 sps:$4 sm:$0xff]   ;;  %v5555_v38 = vld [vmem:[%s6458_s28 + $0x20] ss:$16 sps:$4 sm:$0xff]  }
 0x11b   : > { %2204 = vmatpush1.bf16.msra.mxu0 %v5488_v51  ;;  %2650 = vmatpush1.bf16.msra.mxu1 %v5489_v52  ;;  %v5562_v39 = vld [vmem:[%s6458_s28 + $0x44] ss:$16 sps:$4 sm:$0xff]   ;;  %v5565_v40 = vld [vmem:[%s6460_s0 + $0x240] ss:$16 sps:$4 sm:$0xff]   ;;  %v5568_v41 = vld [vmem:[%s6460_s0 + $0x248] ss:$16 sps:$4 sm:$0xff]  }
 0x11c   : > { %2205 = vmatprep.subr.bf16.mxu0 %v5490_v53  ;;  %2651 = vmatprep.subr.bf16.mxu1 %v5492_v54  ;;  %v5576_v42 = vld [vmem:[%s6460_s0 + $0x264] ss:$16 sps:$4 sm:$0xff]   ;;  %v5579_v43 = vld [vmem:[%s6460_s0 + $0x26c] ss:$16 sps:$4 sm:$0xff]   ;;  %v5574_v44 = vld [vmem:[%s6460_s0 + $0x260] ss:$16 sps:$4 sm:$0xff]  }
 0x11d   : > { %v5577_v45 = vld [vmem:[%s6460_s0 + $0x268] ss:$16 sps:$4 sm:$0xff]   ;;  %v5585_v46 = vld [vmem:[%s6460_s0 + $0x284] ss:$16 sps:$4 sm:$0xff]   ;;  %v5588_v47 = vld [vmem:[%s6460_s0 + $0x28c] ss:$16 sps:$4 sm:$0xff]  }
 0x11e   : > { %v5564_v48 = vld [vmem:[%s6458_s28 + $0x40] ss:$16 sps:$4 sm:$0xff]   ;;  %v5571_v49 = vld [vmem:[%s6458_s28 + $0x64] ss:$16 sps:$4 sm:$0xff]   ;;  %v5586_v51 = vld [vmem:[%s6460_s0 + $0x288] ss:$16 sps:$4 sm:$0xff]  }
 0x11f   : > { %2206 = vmatpush1.bf16.msra.mxu0 %v5494_v55  ;;  %2652 = vmatpush1.bf16.msra.mxu1 %v5495_v56  ;;  %v5583_v50 = vld [vmem:[%s6460_s0 + $0x280] ss:$16 sps:$4 sm:$0xff]   ;;  %v5597_v52 = vld [vmem:[%s6460_s0 + $0x2a4] ss:$16 sps:$4 sm:$0xff]   ;;  %v5600_v53 = vld [vmem:[%s6460_s0 + $0x2ac] ss:$16 sps:$4 sm:$0xff]  }
 0x120   : > { %2207 = vmatprep.subr.bf16.mxu0 %v5496_v57  ;;  %2653 = vmatprep.subr.bf16.mxu1 %v5498_v58  ;;  %v5595_v54 = vld [vmem:[%s6460_s0 + $0x2a0] ss:$16 sps:$4 sm:$0xff]   ;;  %v5598_v55 = vld [vmem:[%s6460_s0 + $0x2a8] ss:$16 sps:$4 sm:$0xff]   ;;  %v5606_v56 = vld [vmem:[%s6460_s0 + $0x2c4] ss:$16 sps:$4 sm:$0xff]  }
 0x121   : > { %v5609_v57 = vld [vmem:[%s6460_s0 + $0x2cc] ss:$16 sps:$4 sm:$0xff]   ;;  %v5573_v58 = vld [vmem:[%s6458_s28 + $0x60] ss:$16 sps:$4 sm:$0xff]   ;;  %p5011_p1 = scmp.ne.s32.totalorder %s5904_s23, 5 }
 0x122   : > { %v5636_v9 = vld [vmem:[%s6460_s0 + $0x32c] ss:$16 sps:$4 sm:$0xff]  }
 0x123   : > { %2208 = vmatpush1.bf16.msra.mxu0 %v5500_v59  ;;  %2654 = vmatpush1.bf16.msra.mxu1 %v5501_v60  ;;  %v5580_v59 = vld [vmem:[%s6458_s28 + $0x84] ss:$16 sps:$4 sm:$0xff]   ;;  %v5604_v60 = vld [vmem:[%s6460_s0 + $0x2c0] ss:$16 sps:$4 sm:$0xff]  }
 0x124   : > { %2209 = vmatprep.subr.bf16.mxu0 %v5502_v61  ;;  %2655 = vmatprep.subr.bf16.mxu1 %v5504_v62  ;;  %v5607_v61 = vld [vmem:[%s6460_s0 + $0x2c8] ss:$16 sps:$4 sm:$0xff]   ;;  %v5615_v62 = vld [vmem:[%s6460_s0 + $0x2e4] ss:$16 sps:$4 sm:$0xff]  }
 0x127   : > { %2210 = vmatpush1.bf16.msra.mxu0 %v5506_v63  ;;  %2656 = vmatpush1.bf16.msra.mxu1 %v5507_v0  ;;  %v5618_v63 = vld [vmem:[%s6460_s0 + $0x2ec] ss:$16 sps:$4 sm:$0xff]   ;;  %v5613_v0 = vld [vmem:[%s6460_s0 + $0x2e0] ss:$16 sps:$4 sm:$0xff]  }
 0x128   : > { %2211 = vmatprep.subr.bf16.mxu0 %v5508_v1  ;;  %2657 = vmatprep.subr.bf16.mxu1 %v5510_v2  ;;  %v5616_v1 = vld [vmem:[%s6460_s0 + $0x2e8] ss:$16 sps:$4 sm:$0xff]   ;;  %v5624_v2 = vld [vmem:[%s6460_s0 + $0x304] ss:$16 sps:$4 sm:$0xff]  }
 0x12b   : > { %2212 = vmatpush1.bf16.msra.mxu0 %v5512_v3  ;;  %2658 = vmatpush1.bf16.msra.mxu1 %v5513_v4  ;;  %v5627_v3 = vld [vmem:[%s6460_s0 + $0x30c] ss:$16 sps:$4 sm:$0xff]   ;;  %v5582_v4 = vld [vmem:[%s6458_s28 + $0x80] ss:$16 sps:$4 sm:$0xff]  }
 0x12c   : > { %2213 = vmatprep.subr.bf16.mxu0 %v5514_v5  ;;  %2659 = vmatprep.subr.bf16.mxu1 %v5516_v6  ;;  %v5589_v5 = vld [vmem:[%s6458_s28 + $0xa4] ss:$16 sps:$4 sm:$0xff]   ;;  %v5622_v6 = vld [vmem:[%s6460_s0 + $0x300] ss:$16 sps:$4 sm:$0xff]  }
 0x12f   : > { %2214 = vmatpush1.bf16.msra.mxu0 %v5518_v7  ;;  %2660 = vmatpush1.bf16.msra.mxu1 %v5519_v8  ;;  %v5625_v7 = vld [vmem:[%s6460_s0 + $0x308] ss:$16 sps:$4 sm:$0xff]   ;;  %v5633_v8 = vld [vmem:[%s6460_s0 + $0x324] ss:$16 sps:$4 sm:$0xff]  }
 0x130   : > { %2215 = vmatprep.subr.bf16.mxu0 %v5520_v10  ;;  %2661 = vmatprep.subr.bf16.mxu1 %v5522_v11  ;;  %v5631_v10 = vld [vmem:[%s6460_s0 + $0x320] ss:$16 sps:$4 sm:$0xff]   ;;  %v5634_v11 = vld [vmem:[%s6460_s0 + $0x328] ss:$16 sps:$4 sm:$0xff]  }
 0x133   : > { %2216 = vmatpush1.bf16.msra.mxu0 %v5524_v12  ;;  %2662 = vmatpush1.bf16.msra.mxu1 %v5525_v13  ;;  %v5644_v12 = vld [vmem:[%s6460_s0 + $0x344] ss:$16 sps:$4 sm:$0xff]   ;;  %v5647_v13 = vld [vmem:[%s6460_s0 + $0x34c] ss:$16 sps:$4 sm:$0xff]  }
 0x134   : > { %2217 = vmatprep.subr.bf16.mxu0 %v5526_v14  ;;  %2663 = vmatprep.subr.bf16.mxu1 %v5528_v15  ;;  %v5591_v14 = vld [vmem:[%s6458_s28 + $0xa0] ss:$16 sps:$4 sm:$0xff]   ;;  %v5592_v15 = vld [vmem:[%s6458_s28 + $0xc4] ss:$16 sps:$4 sm:$0xff]  }
 0x137   : > { %2218 = vmatpush1.bf16.msra.mxu0 %v5530_v16  ;;  %2664 = vmatpush1.bf16.msra.mxu1 %v5531_v17  ;;  %v5642_v16 = vld [vmem:[%s6460_s0 + $0x340] ss:$16 sps:$4 sm:$0xff]   ;;  %v5645_v17 = vld [vmem:[%s6460_s0 + $0x348] ss:$16 sps:$4 sm:$0xff]  }
 0x138   : > { %2219 = vmatprep.subr.bf16.mxu0 %v5532_v18  ;;  %2665 = vmatprep.subr.bf16.mxu1 %v5534_v19  ;;  %v5654_v18 = vld [vmem:[%s6460_s0 + $0x364] ss:$16 sps:$4 sm:$0xff]   ;;  %v5657_v19 = vld [vmem:[%s6460_s0 + $0x36c] ss:$16 sps:$4 sm:$0xff]  }
 0x13b   : > { %2220 = vmatpush1.bf16.msra.mxu0 %v5536_v20  ;;  %2666 = vmatpush1.bf16.msra.mxu1 %v5537_v21  ;;  %v5652_v20 = vld [vmem:[%s6460_s0 + $0x360] ss:$16 sps:$4 sm:$0xff]   ;;  %v5655_v21 = vld [vmem:[%s6460_s0 + $0x368] ss:$16 sps:$4 sm:$0xff]  }
 0x13c   : > { %2221 = vmatprep.subr.bf16.mxu0 %v5538_v22  ;;  %2667 = vmatprep.subr.bf16.mxu1 %v5540_v23  ;;  %v5663_v22 = vld [vmem:[%s6460_s0 + $0x384] ss:$16 sps:$4 sm:$0xff]   ;;  %v5666_v23 = vld [vmem:[%s6460_s0 + $0x38c] ss:$16 sps:$4 sm:$0xff]  }
 0x13f   : > { %2222 = vmatpush1.bf16.msra.mxu0 %v5542_v24  ;;  %2668 = vmatpush1.bf16.msra.mxu1 %v5543_v25  ;;  %v5594_v24 = vld [vmem:[%s6458_s28 + $0xc0] ss:$16 sps:$4 sm:$0xff]   ;;  %v5601_v25 = vld [vmem:[%s6458_s28 + $0xe4] ss:$16 sps:$4 sm:$0xff]  }
 0x140   : > { %2414 = vmatprep.subr.bf16.mxu0 %v5549_v26  ;;  %2860 = vmatprep.subr.bf16.mxu1 %v5552_v27  ;;  %v5661_v26 = vld [vmem:[%s6460_s0 + $0x380] ss:$16 sps:$4 sm:$0xff]   ;;  %v5664_v27 = vld [vmem:[%s6460_s0 + $0x388] ss:$16 sps:$4 sm:$0xff]  }
 0x142   : > { %2224 = vmatmul.mubr.bf16.vlgmr.msra.gmra.mrb[0].mxu0 %v5544_v28  ;;  %2670 = vmatmul.mubr.bf16.vlgmr.msra.gmra.mrb[0].mxu1 %v5544_v28  ;;  %v5672_v28 = vld [vmem:[%s6460_s0 + $0x3a4] ss:$16 sps:$4 sm:$0xff]  }
 0x143   : > { %2415 = vmatpush1.bf16.msra.mxu0 %v5547_v29  ;;  %2861 = vmatpush1.bf16.msra.mxu1 %v5550_v30  ;;  %v5675_v29 = vld [vmem:[%s6460_s0 + $0x3ac] ss:$16 sps:$4 sm:$0xff]   ;;  %v5670_v30 = vld [vmem:[%s6460_s0 + $0x3a0] ss:$16 sps:$4 sm:$0xff]  }
 0x144   : > { %2233 = vmatprep.mubr.bf16.mxu0 %v5553_v31  ;;  %2679 = vmatprep.mubr.bf16.mxu1 %v5553_v31  ;;  %v5673_v31 = vld [vmem:[%s6460_s0 + $0x3a8] ss:$16 sps:$4 sm:$0xff]  }
 0x145   : > { %2416 = vmatprep.subr.bf16.mxu0 %v5558_v32  ;;  %2862 = vmatprep.subr.bf16.mxu1 %v5561_v33  ;;  %v5681_v32 = vld [vmem:[%s6460_s0 + $0x3c4] ss:$16 sps:$4 sm:$0xff]   ;;  %v5603_v33 = vld [vmem:[%s6458_s28 + $0xe0] ss:$16 sps:$4 sm:$0xff]  }
 0x147   : > { %2417 = vmatpush1.bf16.msra.mxu0 %v5556_v34  ;;  %2863 = vmatpush1.bf16.msra.mxu1 %v5559_v35  ;;  %v5684_v34 = vld [vmem:[%s6460_s0 + $0x3cc] ss:$16 sps:$4 sm:$0xff]   ;;  %v5610_v35 = vld [vmem:[%s6458_s28 + $0x104] ss:$16 sps:$4 sm:$0xff]  }
 0x148   : > { %2418 = vmatprep.subr.bf16.mxu0 %v5567_v36  ;;  %2864 = vmatprep.subr.bf16.mxu1 %v5570_v37  ;;  %v5679_v36 = vld [vmem:[%s6460_s0 + $0x3c0] ss:$16 sps:$4 sm:$0xff]   ;;  %v5682_v37 = vld [vmem:[%s6460_s0 + $0x3c8] ss:$16 sps:$4 sm:$0xff]  }
 0x14a   : > { %2234 = vmatmul.mubr.bf16.gmra.mrb[4].mxu0 %v5555_v38  ;;  %2680 = vmatmul.mubr.bf16.gmra.mrb[4].mxu1 %v5555_v38  ;;  %v5692_v38 = vld [vmem:[%s6460_s0 + $0x3e4] ss:$16 sps:$4 sm:$0xff]  }
 0x14b   : > { %2243 = vmatprep.mubr.bf16.mxu0 %v5562_v39  ;;  %2689 = vmatprep.mubr.bf16.mxu1 %v5562_v39  ;;  %v5695_v39 = vld [vmem:[%s6460_s0 + $0x3ec] ss:$16 sps:$4 sm:$0xff]  }
 0x14c   : > { %2419 = vmatpush1.bf16.msra.mxu0 %v5565_v40  ;;  %2865 = vmatpush1.bf16.msra.mxu1 %v5568_v41  ;;  %v5690_v40 = vld [vmem:[%s6460_s0 + $0x3e0] ss:$16 sps:$4 sm:$0xff]   ;;  %v5693_v41 = vld [vmem:[%s6460_s0 + $0x3e8] ss:$16 sps:$4 sm:$0xff]  }
 0x14d   : > { %2420 = vmatprep.subr.bf16.mxu0 %v5576_v42  ;;  %2866 = vmatprep.subr.bf16.mxu1 %v5579_v43  ;;  %v5612_v42 = vld [vmem:[%s6458_s28 + $0x100] ss:$16 sps:$4 sm:$0xff]   ;;  %v5619_v43 = vld [vmem:[%s6458_s28 + $0x124] ss:$16 sps:$4 sm:$0xff]  }
 0x150   : > { %2421 = vmatpush1.bf16.msra.mxu0 %v5574_v44  ;;  %2867 = vmatpush1.bf16.msra.mxu1 %v5577_v45  ;;  %v5621_v44 = vld [vmem:[%s6458_s28 + $0x120] ss:$16 sps:$4 sm:$0xff]   ;;  %v5628_v45 = vld [vmem:[%s6458_s28 + $0x144] ss:$16 sps:$4 sm:$0xff]  }
 0x151   : > { %2422 = vmatprep.subr.bf16.mxu0 %v5585_v46  ;;  %2868 = vmatprep.subr.bf16.mxu1 %v5588_v47  ;;  %v5630_v46 = vld [vmem:[%s6458_s28 + $0x140] ss:$16 sps:$4 sm:$0xff]   ;;  %v5637_v47 = vld [vmem:[%s6458_s28 + $0x164] ss:$16 sps:$4 sm:$0xff]  }
 0x152   : > { %2244 = vmatmul.mubr.bf16.gmra.mrb[8].mxu0 %v5564_v48  ;;  %2690 = vmatmul.mubr.bf16.gmra.mrb[8].mxu1 %v5564_v48  ;;  %v5639_v48 = vld [vmem:[%s6458_s28 + $0x160] ss:$16 sps:$4 sm:$0xff]  }
 0x153   : > { %2253 = vmatprep.mubr.bf16.mxu0 %v5571_v49  ;;  %2699 = vmatprep.mubr.bf16.mxu1 %v5571_v49  ;;  %v5640_v49 = vld [vmem:[%s6458_s28 + $0x184] ss:$16 sps:$4 sm:$0xff]  }
 0x154   : > { %2423 = vmatpush1.bf16.msra.mxu0 %v5583_v50  ;;  %2869 = vmatpush1.bf16.msra.mxu1 %v5586_v51  ;;  %v5648_v50 = vld [vmem:[%s6458_s28 + $0x180] ss:$16 sps:$4 sm:$0xff]   ;;  %v5649_v51 = vld [vmem:[%s6458_s28 + $0x1a4] ss:$16 sps:$4 sm:$0xff]  }
 0x155   : > { %2424 = vmatprep.subr.bf16.mxu0 %v5597_v52  ;;  %2870 = vmatprep.subr.bf16.mxu1 %v5600_v53  ;;  %v5651_v52 = vld [vmem:[%s6458_s28 + $0x1a0] ss:$16 sps:$4 sm:$0xff]   ;;  %v5658_v53 = vld [vmem:[%s6458_s28 + $0x1c4] ss:$16 sps:$4 sm:$0xff]  }
 0x158   : > { %2425 = vmatpush1.bf16.msra.mxu0 %v5595_v54  ;;  %2871 = vmatpush1.bf16.msra.mxu1 %v5598_v55  ;;  %v5660_v54 = vld [vmem:[%s6458_s28 + $0x1c0] ss:$16 sps:$4 sm:$0xff]   ;;  %v5667_v55 = vld [vmem:[%s6458_s28 + $0x1e4] ss:$16 sps:$4 sm:$0xff]  }
 0x159   : > { %2426 = vmatprep.subr.bf16.mxu0 %v5606_v56  ;;  %2872 = vmatprep.subr.bf16.mxu1 %v5609_v57  ;;  %v5669_v56 = vld [vmem:[%s6458_s28 + $0x1e0] ss:$16 sps:$4 sm:$0xff]   ;;  %v5676_v57 = vld [vmem:[%s6458_s28 + $0x204] ss:$16 sps:$4 sm:$0xff]  }
 0x15a   : > { %2254 = vmatmul.mubr.bf16.gmra.mrb[12].mxu0 %v5573_v58  ;;  %2700 = vmatmul.mubr.bf16.gmra.mrb[12].mxu1 %v5573_v58  ;;  %v5678_v58 = vld [vmem:[%s6458_s28 + $0x200] ss:$16 sps:$4 sm:$0xff]  }
 0x15b   : > { %2263 = vmatprep.mubr.bf16.mxu0 %v5580_v59  ;;  %2709 = vmatprep.mubr.bf16.mxu1 %v5580_v59  ;;  %v5685_v59 = vld [vmem:[%s6458_s28 + $0x224] ss:$16 sps:$4 sm:$0xff]  }
 0x15c   : > { %2427 = vmatpush1.bf16.msra.mxu0 %v5604_v60  ;;  %2873 = vmatpush1.bf16.msra.mxu1 %v5607_v61  ;;  %v5687_v60 = vld [vmem:[%s6458_s28 + $0x220] ss:$16 sps:$4 sm:$0xff]   ;;  %v5688_v61 = vld [vmem:[%s6458_s28 + $0x244] ss:$16 sps:$4 sm:$0xff]  }
 0x15d   : > { %2428 = vmatprep.subr.bf16.mxu0 %v5615_v62  ;;  %2874 = vmatprep.subr.bf16.mxu1 %v5618_v63  ;;  %v5696_v62 = vld [vmem:[%s6458_s28 + $0x240] ss:$16 sps:$4 sm:$0xff]   ;;  %v5699_v63 = vld [vmem:[%s6458_s28 + $0xc] ss:$16 sps:$4 sm:$0xff]  }
 0x160   : > { %2429 = vmatpush1.bf16.msra.mxu0 %v5613_v0  ;;  %2875 = vmatpush1.bf16.msra.mxu1 %v5616_v1  ;;  %v5697_v0 = vld [vmem:[%s6458_s28 + $0x8] ss:$16 sps:$4 sm:$0xff]   ;;  %v5700_v1 = vld [vmem:[%s6458_s28 + $0x2c] ss:$16 sps:$4 sm:$0xff]  }
 0x161   : > { %2430 = vmatprep.subr.bf16.mxu0 %v5624_v2  ;;  %2876 = vmatprep.subr.bf16.mxu1 %v5627_v3  ;;  %v5702_v2 = vld [vmem:[%s6458_s28 + $0x28] ss:$16 sps:$4 sm:$0xff]   ;;  %v5703_v3 = vld [vmem:[%s6458_s28 + $0x4c] ss:$16 sps:$4 sm:$0xff]  }
 0x162   : > { %2264 = vmatmul.mubr.bf16.gmra.mrb[16].mxu0 %v5582_v4  ;;  %2710 = vmatmul.mubr.bf16.gmra.mrb[16].mxu1 %v5582_v4  ;;  %v5705_v4 = vld [vmem:[%s6458_s28 + $0x48] ss:$16 sps:$4 sm:$0xff]  }
 0x163   : > { %2273 = vmatprep.mubr.bf16.mxu0 %v5589_v5  ;;  %2719 = vmatprep.mubr.bf16.mxu1 %v5589_v5  ;;  %v5706_v5 = vld [vmem:[%s6458_s28 + $0x6c] ss:$16 sps:$4 sm:$0xff]  }
 0x164   : > { %2431 = vmatpush1.bf16.msra.mxu0 %v5622_v6  ;;  %2877 = vmatpush1.bf16.msra.mxu1 %v5625_v7  ;;  %v5708_v6 = vld [vmem:[%s6458_s28 + $0x68] ss:$16 sps:$4 sm:$0xff]   ;;  %v5709_v7 = vld [vmem:[%s6458_s28 + $0x8c] ss:$16 sps:$4 sm:$0xff]  }
 0x165   : > { %2432 = vmatprep.subr.bf16.mxu0 %v5633_v8  ;;  %2878 = vmatprep.subr.bf16.mxu1 %v5636_v9  ;;  %v5711_v8 = vld [vmem:[%s6458_s28 + $0x88] ss:$16 sps:$4 sm:$0xff]   ;;  %v5712_v9 = vld [vmem:[%s6458_s28 + $0xac] ss:$16 sps:$4 sm:$0xff]  }
 0x168   : > { %2433 = vmatpush1.bf16.msra.mxu0 %v5631_v10  ;;  %2879 = vmatpush1.bf16.msra.mxu1 %v5634_v11  ;;  %v5714_v10 = vld [vmem:[%s6458_s28 + $0xa8] ss:$16 sps:$4 sm:$0xff]   ;;  %v5715_v11 = vld [vmem:[%s6458_s28 + $0xcc] ss:$16 sps:$4 sm:$0xff]  }
 0x169   : > { %2434 = vmatprep.subr.bf16.mxu0 %v5644_v12  ;;  %2880 = vmatprep.subr.bf16.mxu1 %v5647_v13  ;;  %v5717_v12 = vld [vmem:[%s6458_s28 + $0xc8] ss:$16 sps:$4 sm:$0xff]   ;;  %v5718_v13 = vld [vmem:[%s6458_s28 + $0xec] ss:$16 sps:$4 sm:$0xff]  }
 0x16a   : > { %2274 = vmatmul.mubr.bf16.gmra.mrb[20].mxu0 %v5591_v14  ;;  %2720 = vmatmul.mubr.bf16.gmra.mrb[20].mxu1 %v5591_v14  ;;  %v5720_v14 = vld [vmem:[%s6458_s28 + $0xe8] ss:$16 sps:$4 sm:$0xff]  }
 0x16b   : > { %2283 = vmatprep.mubr.bf16.mxu0 %v5592_v15  ;;  %2729 = vmatprep.mubr.bf16.mxu1 %v5592_v15  ;;  %v5721_v15 = vld [vmem:[%s6458_s28 + $0x10c] ss:$16 sps:$4 sm:$0xff]  }
 0x16c   : > { %2435 = vmatpush1.bf16.msra.mxu0 %v5642_v16  ;;  %2881 = vmatpush1.bf16.msra.mxu1 %v5645_v17  ;;  %v5723_v16 = vld [vmem:[%s6458_s28 + $0x108] ss:$16 sps:$4 sm:$0xff]   ;;  %v5724_v17 = vld [vmem:[%s6458_s28 + $0x12c] ss:$16 sps:$4 sm:$0xff]  }
 0x16d   : > { %2436 = vmatprep.subr.bf16.mxu0 %v5654_v18  ;;  %2882 = vmatprep.subr.bf16.mxu1 %v5657_v19  ;;  %v5726_v18 = vld [vmem:[%s6458_s28 + $0x128] ss:$16 sps:$4 sm:$0xff]   ;;  %v5727_v19 = vld [vmem:[%s6458_s28 + $0x14c] ss:$16 sps:$4 sm:$0xff]  }
 0x170   : > { %2437 = vmatpush1.bf16.msra.mxu0 %v5652_v20  ;;  %2883 = vmatpush1.bf16.msra.mxu1 %v5655_v21  ;;  %v5729_v20 = vld [vmem:[%s6458_s28 + $0x148] ss:$16 sps:$4 sm:$0xff]   ;;  %v5730_v21 = vld [vmem:[%s6458_s28 + $0x16c] ss:$16 sps:$4 sm:$0xff]  }
 0x171   : > { %2438 = vmatprep.subr.bf16.mxu0 %v5663_v22  ;;  %2884 = vmatprep.subr.bf16.mxu1 %v5666_v23  ;;  %v5732_v22 = vld [vmem:[%s6458_s28 + $0x168] ss:$16 sps:$4 sm:$0xff]   ;;  %v5733_v23 = vld [vmem:[%s6458_s28 + $0x18c] ss:$16 sps:$4 sm:$0xff]  }
 0x172   : > { %2284 = vmatmul.mubr.bf16.gmra.mrb[24].mxu0 %v5594_v24  ;;  %2730 = vmatmul.mubr.bf16.gmra.mrb[24].mxu1 %v5594_v24  ;;  %v5735_v24 = vld [vmem:[%s6458_s28 + $0x188] ss:$16 sps:$4 sm:$0xff]  }
 0x173   : > { %2293 = vmatprep.mubr.bf16.mxu0 %v5601_v25  ;;  %2739 = vmatprep.mubr.bf16.mxu1 %v5601_v25  ;;  %v5736_v25 = vld [vmem:[%s6458_s28 + $0x1ac] ss:$16 sps:$4 sm:$0xff]  }
 0x174   : > { %2439 = vmatpush1.bf16.msra.mxu0 %v5661_v26  ;;  %2885 = vmatpush1.bf16.msra.mxu1 %v5664_v27  ;;  %v5738_v26 = vld [vmem:[%s6458_s28 + $0x1a8] ss:$16 sps:$4 sm:$0xff]   ;;  %v5739_v27 = vld [vmem:[%s6458_s28 + $0x1cc] ss:$16 sps:$4 sm:$0xff]  }
 0x175   : > { %2440 = vmatprep.subr.bf16.mxu0 %v5672_v28  ;;  %2886 = vmatprep.subr.bf16.mxu1 %v5675_v29  ;;  %v5741_v28 = vld [vmem:[%s6458_s28 + $0x1c8] ss:$16 sps:$4 sm:$0xff]   ;;  %v5742_v29 = vld [vmem:[%s6458_s28 + $0x1ec] ss:$16 sps:$4 sm:$0xff]  }
 0x178   : > { %2441 = vmatpush1.bf16.msra.mxu0 %v5670_v30  ;;  %2887 = vmatpush1.bf16.msra.mxu1 %v5673_v31  ;;  %v5744_v30 = vld [vmem:[%s6458_s28 + $0x1e8] ss:$16 sps:$4 sm:$0xff]   ;;  %v5745_v31 = vld [vmem:[%s6458_s28 + $0x20c] ss:$16 sps:$4 sm:$0xff]  }
 0x179   : > { %2442 = vmatprep.subr.bf16.mxu0 %v5681_v32  ;;  %2888 = vmatprep.subr.bf16.mxu1 %v5684_v34  ;;  %v5747_v32 = vld [vmem:[%s6458_s28 + $0x208] ss:$16 sps:$4 sm:$0xff]  }
 0x17a   : > { %2294 = vmatmul.mubr.bf16.gmra.mrb[28].mxu0 %v5603_v33  ;;  %2740 = vmatmul.mubr.bf16.gmra.mrb[28].mxu1 %v5603_v33  ;;  %v5748_v33 = vld [vmem:[%s6458_s28 + $0x22c] ss:$16 sps:$4 sm:$0xff]   ;;  %v5750_v34 = vld [vmem:[%s6458_s28 + $0x228] ss:$16 sps:$4 sm:$0xff]  }
 0x17b   : > { %2303 = vmatprep.mubr.bf16.mxu0 %v5610_v35  ;;  %2749 = vmatprep.mubr.bf16.mxu1 %v5610_v35  ;;  %v5751_v35 = vld [vmem:[%s6458_s28 + $0x24c] ss:$16 sps:$4 sm:$0xff]  }
 0x17c   : > { %2443 = vmatpush1.bf16.msra.mxu0 %v5679_v36  ;;  %2889 = vmatpush1.bf16.msra.mxu1 %v5682_v37  ;;  %v5753_v36 = vld [vmem:[%s6458_s28 + $0x248] ss:$16 sps:$4 sm:$0xff]   ;;  %v815_v37 = vld [vmem:[#allocation2] sm:$0xff] }
 0x17d   : > { %2444 = vmatprep.subr.bf16.mxu0 %v5692_v38  ;;  %2890 = vmatprep.subr.bf16.mxu1 %v5695_v39  ;;  %v817_v38 = vld [vmem:[#allocation2 + $0x10] sm:$0xff]  ;;  %v816_v39 = vld [vmem:[#allocation2 + $0x8] sm:$0xff] }
 0x180   : > { %2445 = vmatpush1.bf16.msra.mxu0 %v5690_v40  ;;  %2891 = vmatpush1.bf16.msra.mxu1 %v5693_v41  ;;  %v818_v40 = vld [vmem:[#allocation2 + $0x18] sm:$0xff] }
 0x182   : > { %2304 = vmatmul.mubr.bf16.gmra.mrb[32].mxu0 %v5612_v42  ;;  %2750 = vmatmul.mubr.bf16.gmra.mrb[32].mxu1 %v5612_v42 }
 0x183   : > { %2313 = vmatprep.mubr.bf16.mxu0 %v5619_v43  ;;  %2759 = vmatprep.mubr.bf16.mxu1 %v5619_v43  ;;  %v819_v43 = vld [vmem:[#allocation2 + $0x20] sm:$0xff] }
 0x18a   : > { %2314 = vmatmul.mubr.bf16.gmra.mrb[36].mxu0 %v5621_v44  ;;  %2760 = vmatmul.mubr.bf16.gmra.mrb[36].mxu1 %v5621_v44  ;;  %v821_v44 = vld [vmem:[#allocation2 + $0x30] sm:$0xff] }
 0x18b   : > { %2323 = vmatprep.mubr.bf16.mxu0 %v5628_v45  ;;  %2769 = vmatprep.mubr.bf16.mxu1 %v5628_v45 }
 0x192   : > { %2324 = vmatmul.mubr.bf16.gmra.mrb[40].mxu0 %v5630_v46  ;;  %2770 = vmatmul.mubr.bf16.gmra.mrb[40].mxu1 %v5630_v46 }
 0x193   : > { %2333 = vmatprep.mubr.bf16.mxu0 %v5637_v47  ;;  %2779 = vmatprep.mubr.bf16.mxu1 %v5637_v47 }
 0x19a   : > { %2334 = vmatmul.mubr.bf16.gmra.mrb[44].mxu0 %v5639_v48  ;;  %2780 = vmatmul.mubr.bf16.gmra.mrb[44].mxu1 %v5639_v48 }
 0x19b   : > { %2343 = vmatprep.mubr.bf16.mxu0 %v5640_v49  ;;  %2789 = vmatprep.mubr.bf16.mxu1 %v5640_v49  ;;  %v820_v49 = vld [vmem:[#allocation2 + $0x28] sm:$0xff] }
 0x1a2   : > { %2344 = vmatmul.mubr.bf16.gmra.mrb[48].mxu0 %v5648_v50  ;;  %2790 = vmatmul.mubr.bf16.gmra.mrb[48].mxu1 %v5648_v50  ;;  %v822_v50 = vld [vmem:[#allocation2 + $0x38] sm:$0xff] }
 0x1a3   : > { %2353 = vmatprep.mubr.bf16.mxu0 %v5649_v51  ;;  %2799 = vmatprep.mubr.bf16.mxu1 %v5649_v51 }
 0x1aa   : > { %2354 = vmatmul.mubr.bf16.gmra.mrb[52].mxu0 %v5651_v52  ;;  %2800 = vmatmul.mubr.bf16.gmra.mrb[52].mxu1 %v5651_v52 }
 0x1ab   : > { %2363 = vmatprep.mubr.bf16.mxu0 %v5658_v53  ;;  %2809 = vmatprep.mubr.bf16.mxu1 %v5658_v53 }
 0x1b2   : > { %2364 = vmatmul.mubr.bf16.gmra.mrb[56].mxu0 %v5660_v54  ;;  %2810 = vmatmul.mubr.bf16.gmra.mrb[56].mxu1 %v5660_v54 }
 0x1b3   : > { %2373 = vmatprep.mubr.bf16.mxu0 %v5667_v55  ;;  %2819 = vmatprep.mubr.bf16.mxu1 %v5667_v55 }
 0x1ba   : > { %2374 = vmatmul.mubr.bf16.gmra.mrb[60].mxu0 %v5669_v56  ;;  %2820 = vmatmul.mubr.bf16.gmra.mrb[60].mxu1 %v5669_v56 }
 0x1bb   : > { %2383 = vmatprep.mubr.bf16.mxu0 %v5676_v57  ;;  %2829 = vmatprep.mubr.bf16.mxu1 %v5676_v57 }
 0x1c2   : > { %2384 = vmatmul.mubr.bf16.gmra.mrb[64].mxu0 %v5678_v58  ;;  %2830 = vmatmul.mubr.bf16.gmra.mrb[64].mxu1 %v5678_v58 }
 0x1c3   : > { %2393 = vmatprep.mubr.bf16.mxu0 %v5685_v59  ;;  %2839 = vmatprep.mubr.bf16.mxu1 %v5685_v59 }
 0x1ca   : > { %2394 = vmatmul.mubr.bf16.gmra.mrb[68].mxu0 %v5687_v60  ;;  %2840 = vmatmul.mubr.bf16.gmra.mrb[68].mxu1 %v5687_v60 }
 0x1cb   : > { %2403 = vmatprep.mubr.bf16.mxu0 %v5688_v61  ;;  %2849 = vmatprep.mubr.bf16.mxu1 %v5688_v61  ;;  %v823_v61 = vld [vmem:[#allocation2 + $0x40] sm:$0xff] }
 0x1d2   : > { %2404 = vmatmul.mubr.bf16.gmra.mrb[72].mxu0 %v5696_v62  ;;  %2850 = vmatmul.mubr.bf16.gmra.mrb[72].mxu1 %v5696_v62  ;;  %v825_v62 = vld [vmem:[#allocation2 + $0x50] sm:$0xff] }
 0x1d3   : > { %2446 = vmatprep.mubr.bf16.mxu0 %v5699_v63  ;;  %2892 = vmatprep.mubr.bf16.mxu1 %v5699_v63  ;;  %v824_v63 = vld [vmem:[#allocation2 + $0x48] sm:$0xff] }
 0x1da   : > { %2447 = vmatmul.mubr.bf16.vlgmr.msra.gmra.mrb[0].mxu0 %v5697_v0  ;;  %2893 = vmatmul.mubr.bf16.vlgmr.msra.gmra.mrb[0].mxu1 %v5697_v0  ;;  %v826_v0 = vld [vmem:[#allocation2 + $0x58] sm:$0xff] }
 0x1db   : > { %2456 = vmatprep.mubr.bf16.mxu0 %v5700_v1  ;;  %2902 = vmatprep.mubr.bf16.mxu1 %v5700_v1 }
 0x1e2   : > { %2457 = vmatmul.mubr.bf16.gmra.mrb[4].mxu0 %v5702_v2  ;;  %2903 = vmatmul.mubr.bf16.gmra.mrb[4].mxu1 %v5702_v2 }
 0x1e3   : > { %2466 = vmatprep.mubr.bf16.mxu0 %v5703_v3  ;;  %2912 = vmatprep.mubr.bf16.mxu1 %v5703_v3  ;;  %v827_v3 = vld [vmem:[#allocation2 + $0x60] sm:$0xff] }
 0x1ea   : > { %2467 = vmatmul.mubr.bf16.gmra.mrb[8].mxu0 %v5705_v4  ;;  %2913 = vmatmul.mubr.bf16.gmra.mrb[8].mxu1 %v5705_v4  ;;  %v829_v4 = vld [vmem:[#allocation2 + $0x70] sm:$0xff] }
 0x1eb   : > { %2476 = vmatprep.mubr.bf16.mxu0 %v5706_v5  ;;  %2922 = vmatprep.mubr.bf16.mxu1 %v5706_v5 }
 0x1f2   : > { %2477 = vmatmul.mubr.bf16.gmra.mrb[12].mxu0 %v5708_v6  ;;  %2923 = vmatmul.mubr.bf16.gmra.mrb[12].mxu1 %v5708_v6 }
 0x1f3   : > { %2486 = vmatprep.mubr.bf16.mxu0 %v5709_v7  ;;  %2932 = vmatprep.mubr.bf16.mxu1 %v5709_v7 }
 0x1fa   : > { %2487 = vmatmul.mubr.bf16.gmra.mrb[16].mxu0 %v5711_v8  ;;  %2933 = vmatmul.mubr.bf16.gmra.mrb[16].mxu1 %v5711_v8 }
 0x1fb   : > { %2496 = vmatprep.mubr.bf16.mxu0 %v5712_v9  ;;  %2942 = vmatprep.mubr.bf16.mxu1 %v5712_v9  ;;  %v828_v9 = vld [vmem:[#allocation2 + $0x68] sm:$0xff] }
 0x202   : > { %2497 = vmatmul.mubr.bf16.gmra.mrb[20].mxu0 %v5714_v10  ;;  %2943 = vmatmul.mubr.bf16.gmra.mrb[20].mxu1 %v5714_v10  ;;  %v830_v10 = vld [vmem:[#allocation2 + $0x78] sm:$0xff] }
 0x203   : > { %2506 = vmatprep.mubr.bf16.mxu0 %v5715_v11  ;;  %2952 = vmatprep.mubr.bf16.mxu1 %v5715_v11 }
 0x20a   : > { %2507 = vmatmul.mubr.bf16.gmra.mrb[24].mxu0 %v5717_v12  ;;  %2953 = vmatmul.mubr.bf16.gmra.mrb[24].mxu1 %v5717_v12 }
 0x20b   : > { %2516 = vmatprep.mubr.bf16.mxu0 %v5718_v13  ;;  %2962 = vmatprep.mubr.bf16.mxu1 %v5718_v13 }
 0x212   : > { %2517 = vmatmul.mubr.bf16.gmra.mrb[28].mxu0 %v5720_v14  ;;  %2963 = vmatmul.mubr.bf16.gmra.mrb[28].mxu1 %v5720_v14 }
 0x213   : > { %2526 = vmatprep.mubr.bf16.mxu0 %v5721_v15  ;;  %2972 = vmatprep.mubr.bf16.mxu1 %v5721_v15 }
 0x21a   : > { %2527 = vmatmul.mubr.bf16.gmra.mrb[32].mxu0 %v5723_v16  ;;  %2973 = vmatmul.mubr.bf16.gmra.mrb[32].mxu1 %v5723_v16 }
 0x21b   : > { %2536 = vmatprep.mubr.bf16.mxu0 %v5724_v17  ;;  %2982 = vmatprep.mubr.bf16.mxu1 %v5724_v17 }
 0x222   : > { %2537 = vmatmul.mubr.bf16.gmra.mrb[36].mxu0 %v5726_v18  ;;  %2983 = vmatmul.mubr.bf16.gmra.mrb[36].mxu1 %v5726_v18 }
 0x223   : > { %2546 = vmatprep.mubr.bf16.mxu0 %v5727_v19  ;;  %2992 = vmatprep.mubr.bf16.mxu1 %v5727_v19 }
 0x22a   : > { %2547 = vmatmul.mubr.bf16.gmra.mrb[40].mxu0 %v5729_v20  ;;  %2993 = vmatmul.mubr.bf16.gmra.mrb[40].mxu1 %v5729_v20 }
 0x22b   : > { %2556 = vmatprep.mubr.bf16.mxu0 %v5730_v21  ;;  %3002 = vmatprep.mubr.bf16.mxu1 %v5730_v21  ;;  %v831_v21 = vld [vmem:[#allocation2 + $0x80] sm:$0xff] }
 0x232   : > { %2557 = vmatmul.mubr.bf16.gmra.mrb[44].mxu0 %v5732_v22  ;;  %3003 = vmatmul.mubr.bf16.gmra.mrb[44].mxu1 %v5732_v22  ;;  %v833_v22 = vld [vmem:[#allocation2 + $0x90] sm:$0xff] }
 0x233   : > { %2566 = vmatprep.mubr.bf16.mxu0 %v5733_v23  ;;  %3012 = vmatprep.mubr.bf16.mxu1 %v5733_v23  ;;  %v832_v23 = vld [vmem:[#allocation2 + $0x88] sm:$0xff] }
 0x23a   : > { %2567 = vmatmul.mubr.bf16.gmra.mrb[48].mxu0 %v5735_v24  ;;  %3013 = vmatmul.mubr.bf16.gmra.mrb[48].mxu1 %v5735_v24  ;;  %v834_v24 = vld [vmem:[#allocation2 + $0x98] sm:$0xff] }
 0x23b   : > { %2576 = vmatprep.mubr.bf16.mxu0 %v5736_v25  ;;  %3022 = vmatprep.mubr.bf16.mxu1 %v5736_v25 }
 0x242   : > { %2577 = vmatmul.mubr.bf16.gmra.mrb[52].mxu0 %v5738_v26  ;;  %3023 = vmatmul.mubr.bf16.gmra.mrb[52].mxu1 %v5738_v26 }
 0x243   : > { %2586 = vmatprep.mubr.bf16.mxu0 %v5739_v27  ;;  %3032 = vmatprep.mubr.bf16.mxu1 %v5739_v27  ;;  %v835_v27 = vld [vmem:[#allocation2 + $0xa0] sm:$0xff] }
 0x24a   : > { %2587 = vmatmul.mubr.bf16.gmra.mrb[56].mxu0 %v5741_v28  ;;  %3033 = vmatmul.mubr.bf16.gmra.mrb[56].mxu1 %v5741_v28  ;;  %v837_v28 = vld [vmem:[#allocation2 + $0xb0] sm:$0xff] }
 0x24b   : > { %2596 = vmatprep.mubr.bf16.mxu0 %v5742_v29  ;;  %3042 = vmatprep.mubr.bf16.mxu1 %v5742_v29 }
 0x252   : > { %2597 = vmatmul.mubr.bf16.gmra.mrb[60].mxu0 %v5744_v30  ;;  %3043 = vmatmul.mubr.bf16.gmra.mrb[60].mxu1 %v5744_v30 }
 0x253   : > { %2606 = vmatprep.mubr.bf16.mxu0 %v5745_v31  ;;  %3052 = vmatprep.mubr.bf16.mxu1 %v5745_v31 }
 0x25a   : > { %2607 = vmatmul.mubr.bf16.gmra.mrb[64].mxu0 %v5747_v32  ;;  %3053 = vmatmul.mubr.bf16.gmra.mrb[64].mxu1 %v5747_v32 }
 0x25b   : > { %2616 = vmatprep.mubr.bf16.mxu0 %v5748_v33  ;;  %3062 = vmatprep.mubr.bf16.mxu1 %v5748_v33  ;;  %v836_v33 = vld [vmem:[#allocation2 + $0xa8] sm:$0xff] }
 0x262   : > { %2617 = vmatmul.mubr.bf16.gmra.mrb[68].mxu0 %v5750_v34  ;;  %3063 = vmatmul.mubr.bf16.gmra.mrb[68].mxu1 %v5750_v34  ;;  %v838_v34 = vld [vmem:[#allocation2 + $0xb8] sm:$0xff] }
 0x263   : > { %2626 = vmatprep.mubr.bf16.mxu0 %v5751_v35  ;;  %3072 = vmatprep.mubr.bf16.mxu1 %v5751_v35 }
 0x26a   : > { %2627 = vmatmul.mubr.bf16.gmra.mrb[72].mxu0 %v5753_v36  ;;  %3073 = vmatmul.mubr.bf16.gmra.mrb[72].mxu1 %v5753_v36 }
 0x2ad   : > { %v2448_v41 = vpop.f32.mrb[0].mxu0  ;;  %v2894_v42 = vpop.f32.mrb[0].mxu1 }
 0x2ae   : > { %v3083_v45 = vadd.f32 %v2448_v41, %v815_v37  ;;  %v3085_v46 = vadd.f32 %v2894_v42, %v817_v38  ;;  %v2450_v47 = vpop.f32.mrb[1].mxu0  ;;  %v2896_v48 = vpop.f32.mrb[1].mxu1 }
 0x2af   : > { %v3084_v51 = vadd.f32 %v2450_v47, %v816_v39  ;;  %v3086_v52 = vadd.f32 %v2896_v48, %v818_v40  ;;  %v2452_v53 = vpop.f32.mrb[2].mxu0  ;;  %v2898_v54 = vpop.f32.mrb[2].mxu1  ;;  %v840_v47 = vld [vmem:[#allocation2 + $0xc8] sm:$0xff]  ;;  %v842_v48 = vld [vmem:[#allocation2 + $0xd8] sm:$0xff] }
 0x2b0   : > { %3235 = vst [vmem:[#allocation2] sm:$0xff] %v3083_v45  ;;  %3237 = vst [vmem:[#allocation2 + $0x10] sm:$0xff] %v3085_v46  ;;  %v3087_v55 = vadd.f32 %v2452_v53, %v819_v43  ;;  %v3089_v56 = vadd.f32 %v2898_v54, %v821_v44  ;;  %v2454_v57 = vpop.f32.mrb[3].mxu0  ;;  %v2900_v58 = vpop.f32.mrb[3].mxu1  ;;  %v839_v45 = vld [vmem:[#allocation2 + $0xc0] sm:$0xff]  ;;  %v841_v46 = vld [vmem:[#allocation2 + $0xd0] sm:$0xff] }
 0x2b1   : > { %3236 = vst [vmem:[#allocation2 + $0x8] sm:$0xff] %v3084_v51  ;;  %3238 = vst [vmem:[#allocation2 + $0x18] sm:$0xff] %v3086_v52  ;;  %v3088_v59 = vadd.f32 %v2454_v57, %v820_v49  ;;  %v3090_v60 = vadd.f32 %v2900_v58, %v822_v50  ;;  %v843_v51 = vld [vmem:[#allocation2 + $0xe0] sm:$0xff]  ;;  %v845_v52 = vld [vmem:[#allocation2 + $0xf0] sm:$0xff] }
 0x2b2   : > { %3239 = vst [vmem:[#allocation2 + $0x20] sm:$0xff] %v3087_v55  ;;  %3241 = vst [vmem:[#allocation2 + $0x30] sm:$0xff] %v3089_v56  ;;  %v844_v57 = vld [vmem:[#allocation2 + $0xe8] sm:$0xff]  ;;  %v846_v58 = vld [vmem:[#allocation2 + $0xf8] sm:$0xff] }
 0x2b3   : > { %3240 = vst [vmem:[#allocation2 + $0x28] sm:$0xff] %v3088_v59  ;;  %3242 = vst [vmem:[#allocation2 + $0x38] sm:$0xff] %v3090_v60 }
 0x2b5   : > { %v2458_v1 = vpop.f32.mrb[4].mxu0  ;;  %v2904_v2 = vpop.f32.mrb[4].mxu1 }
 0x2b6   : > { %v3091_v5 = vadd.f32 %v2458_v1, %v823_v61  ;;  %v3093_v6 = vadd.f32 %v2904_v2, %v825_v62  ;;  %v2460_v7 = vpop.f32.mrb[5].mxu0  ;;  %v2906_v8 = vpop.f32.mrb[5].mxu1 }
 0x2b7   : > { %v3092_v11 = vadd.f32 %v2460_v7, %v824_v63  ;;  %v3094_v12 = vadd.f32 %v2906_v8, %v826_v0  ;;  %v2462_v13 = vpop.f32.mrb[6].mxu0  ;;  %v2908_v14 = vpop.f32.mrb[6].mxu1  ;;  %v848_v7 = vld [vmem:[#allocation2 + $0x108] sm:$0xff]  ;;  %v850_v8 = vld [vmem:[#allocation2 + $0x118] sm:$0xff] }
 0x2b8   : > { %3243 = vst [vmem:[#allocation2 + $0x40] sm:$0xff] %v3091_v5  ;;  %3245 = vst [vmem:[#allocation2 + $0x50] sm:$0xff] %v3093_v6  ;;  %v3095_v15 = vadd.f32 %v2462_v13, %v827_v3  ;;  %v3097_v16 = vadd.f32 %v2908_v14, %v829_v4  ;;  %v2464_v17 = vpop.f32.mrb[7].mxu0  ;;  %v2910_v18 = vpop.f32.mrb[7].mxu1  ;;  %v847_v5 = vld [vmem:[#allocation2 + $0x100] sm:$0xff]  ;;  %v849_v6 = vld [vmem:[#allocation2 + $0x110] sm:$0xff] }
 0x2b9   : > { %3244 = vst [vmem:[#allocation2 + $0x48] sm:$0xff] %v3092_v11  ;;  %3246 = vst [vmem:[#allocation2 + $0x58] sm:$0xff] %v3094_v12  ;;  %v3096_v19 = vadd.f32 %v2464_v17, %v828_v9  ;;  %v3098_v20 = vadd.f32 %v2910_v18, %v830_v10  ;;  %v851_v11 = vld [vmem:[#allocation2 + $0x120] sm:$0xff]  ;;  %v853_v12 = vld [vmem:[#allocation2 + $0x130] sm:$0xff] }
 0x2ba   : > { %3247 = vst [vmem:[#allocation2 + $0x60] sm:$0xff] %v3095_v15  ;;  %3249 = vst [vmem:[#allocation2 + $0x70] sm:$0xff] %v3097_v16  ;;  %v852_v17 = vld [vmem:[#allocation2 + $0x128] sm:$0xff]  ;;  %v854_v18 = vld [vmem:[#allocation2 + $0x138] sm:$0xff] }
 0x2bb   : > { %3248 = vst [vmem:[#allocation2 + $0x68] sm:$0xff] %v3096_v19  ;;  %3250 = vst [vmem:[#allocation2 + $0x78] sm:$0xff] %v3098_v20 }
 0x2bd   : > { %v2468_v25 = vpop.f32.mrb[8].mxu0  ;;  %v2914_v26 = vpop.f32.mrb[8].mxu1 }
 0x2be   : > { %v3099_v29 = vadd.f32 %v2468_v25, %v831_v21  ;;  %v3101_v30 = vadd.f32 %v2914_v26, %v833_v22  ;;  %v2470_v31 = vpop.f32.mrb[9].mxu0  ;;  %v2916_v32 = vpop.f32.mrb[9].mxu1 }
 0x2bf   : > { %v3100_v35 = vadd.f32 %v2470_v31, %v832_v23  ;;  %v3102_v36 = vadd.f32 %v2916_v32, %v834_v24  ;;  %v2472_v37 = vpop.f32.mrb[10].mxu0  ;;  %v2918_v38 = vpop.f32.mrb[10].mxu1  ;;  %v856_v31 = vld [vmem:[#allocation2 + $0x148] sm:$0xff]  ;;  %v858_v32 = vld [vmem:[#allocation2 + $0x158] sm:$0xff] }
 0x2c0   : > { %3251 = vst [vmem:[#allocation2 + $0x80] sm:$0xff] %v3099_v29  ;;  %3253 = vst [vmem:[#allocation2 + $0x90] sm:$0xff] %v3101_v30  ;;  %v3103_v39 = vadd.f32 %v2472_v37, %v835_v27  ;;  %v3105_v40 = vadd.f32 %v2918_v38, %v837_v28  ;;  %v2474_v41 = vpop.f32.mrb[11].mxu0  ;;  %v2920_v42 = vpop.f32.mrb[11].mxu1  ;;  %v855_v29 = vld [vmem:[#allocation2 + $0x140] sm:$0xff]  ;;  %v857_v30 = vld [vmem:[#allocation2 + $0x150] sm:$0xff] }
 0x2c1   : > { %3252 = vst [vmem:[#allocation2 + $0x88] sm:$0xff] %v3100_v35  ;;  %3254 = vst [vmem:[#allocation2 + $0x98] sm:$0xff] %v3102_v36  ;;  %v3104_v43 = vadd.f32 %v2474_v41, %v836_v33  ;;  %v3106_v44 = vadd.f32 %v2920_v42, %v838_v34  ;;  %v859_v35 = vld [vmem:[#allocation2 + $0x160] sm:$0xff]  ;;  %v861_v36 = vld [vmem:[#allocation2 + $0x170] sm:$0xff] }
 0x2c2   : > { %3255 = vst [vmem:[#allocation2 + $0xa0] sm:$0xff] %v3103_v39  ;;  %3257 = vst [vmem:[#allocation2 + $0xb0] sm:$0xff] %v3105_v40  ;;  %v860_v41 = vld [vmem:[#allocation2 + $0x168] sm:$0xff]  ;;  %v862_v42 = vld [vmem:[#allocation2 + $0x178] sm:$0xff] }
 0x2c3   : > { %3256 = vst [vmem:[#allocation2 + $0xa8] sm:$0xff] %v3104_v43  ;;  %3258 = vst [vmem:[#allocation2 + $0xb8] sm:$0xff] %v3106_v44 }
 0x2c5   : > { %v2478_v49 = vpop.f32.mrb[12].mxu0  ;;  %v2924_v50 = vpop.f32.mrb[12].mxu1 }
 0x2c6   : > { %v3107_v53 = vadd.f32 %v2478_v49, %v839_v45  ;;  %v3109_v54 = vadd.f32 %v2924_v50, %v841_v46  ;;  %v2480_v55 = vpop.f32.mrb[13].mxu0  ;;  %v2926_v56 = vpop.f32.mrb[13].mxu1 }
 0x2c7   : > { %v3108_v59 = vadd.f32 %v2480_v55, %v840_v47  ;;  %v3110_v60 = vadd.f32 %v2926_v56, %v842_v48  ;;  %v2482_v61 = vpop.f32.mrb[14].mxu0  ;;  %v2928_v62 = vpop.f32.mrb[14].mxu1  ;;  %v864_v55 = vld [vmem:[#allocation2 + $0x188] sm:$0xff]  ;;  %v866_v56 = vld [vmem:[#allocation2 + $0x198] sm:$0xff] }
 0x2c8   : > { %3259 = vst [vmem:[#allocation2 + $0xc0] sm:$0xff] %v3107_v53  ;;  %3261 = vst [vmem:[#allocation2 + $0xd0] sm:$0xff] %v3109_v54  ;;  %v3111_v63 = vadd.f32 %v2482_v61, %v843_v51  ;;  %v3113_v0 = vadd.f32 %v2928_v62, %v845_v52  ;;  %v2484_v1 = vpop.f32.mrb[15].mxu0  ;;  %v2930_v2 = vpop.f32.mrb[15].mxu1  ;;  %v863_v53 = vld [vmem:[#allocation2 + $0x180] sm:$0xff]  ;;  %v865_v54 = vld [vmem:[#allocation2 + $0x190] sm:$0xff] }
 0x2c9   : > { %3260 = vst [vmem:[#allocation2 + $0xc8] sm:$0xff] %v3108_v59  ;;  %3262 = vst [vmem:[#allocation2 + $0xd8] sm:$0xff] %v3110_v60  ;;  %v3112_v3 = vadd.f32 %v2484_v1, %v844_v57  ;;  %v3114_v4 = vadd.f32 %v2930_v2, %v846_v58  ;;  %v867_v59 = vld [vmem:[#allocation2 + $0x1a0] sm:$0xff]  ;;  %v869_v60 = vld [vmem:[#allocation2 + $0x1b0] sm:$0xff] }
 0x2ca   : > { %3263 = vst [vmem:[#allocation2 + $0xe0] sm:$0xff] %v3111_v63  ;;  %3265 = vst [vmem:[#allocation2 + $0xf0] sm:$0xff] %v3113_v0  ;;  %v868_v1 = vld [vmem:[#allocation2 + $0x1a8] sm:$0xff]  ;;  %v870_v2 = vld [vmem:[#allocation2 + $0x1b8] sm:$0xff] }
 0x2cb   : > { %3264 = vst [vmem:[#allocation2 + $0xe8] sm:$0xff] %v3112_v3  ;;  %3266 = vst [vmem:[#allocation2 + $0xf8] sm:$0xff] %v3114_v4 }
 0x2cd   : > { %v2488_v9 = vpop.f32.mrb[16].mxu0  ;;  %v2934_v10 = vpop.f32.mrb[16].mxu1 }
 0x2ce   : > { %v3115_v13 = vadd.f32 %v2488_v9, %v847_v5  ;;  %v3117_v14 = vadd.f32 %v2934_v10, %v849_v6  ;;  %v2490_v15 = vpop.f32.mrb[17].mxu0  ;;  %v2936_v16 = vpop.f32.mrb[17].mxu1 }
 0x2cf   : > { %v3116_v19 = vadd.f32 %v2490_v15, %v848_v7  ;;  %v3118_v20 = vadd.f32 %v2936_v16, %v850_v8  ;;  %v2492_v21 = vpop.f32.mrb[18].mxu0  ;;  %v2938_v22 = vpop.f32.mrb[18].mxu1  ;;  %v872_v15 = vld [vmem:[#allocation2 + $0x1c8] sm:$0xff]  ;;  %v874_v16 = vld [vmem:[#allocation2 + $0x1d8] sm:$0xff] }
 0x2d0   : > { %3267 = vst [vmem:[#allocation2 + $0x100] sm:$0xff] %v3115_v13  ;;  %3269 = vst [vmem:[#allocation2 + $0x110] sm:$0xff] %v3117_v14  ;;  %v3119_v23 = vadd.f32 %v2492_v21, %v851_v11  ;;  %v3121_v24 = vadd.f32 %v2938_v22, %v853_v12  ;;  %v2494_v25 = vpop.f32.mrb[19].mxu0  ;;  %v2940_v26 = vpop.f32.mrb[19].mxu1  ;;  %v871_v13 = vld [vmem:[#allocation2 + $0x1c0] sm:$0xff]  ;;  %v873_v14 = vld [vmem:[#allocation2 + $0x1d0] sm:$0xff] }
 0x2d1   : > { %3268 = vst [vmem:[#allocation2 + $0x108] sm:$0xff] %v3116_v19  ;;  %3270 = vst [vmem:[#allocation2 + $0x118] sm:$0xff] %v3118_v20  ;;  %v3120_v27 = vadd.f32 %v2494_v25, %v852_v17  ;;  %v3122_v28 = vadd.f32 %v2940_v26, %v854_v18  ;;  %v875_v19 = vld [vmem:[#allocation2 + $0x1e0] sm:$0xff]  ;;  %v877_v20 = vld [vmem:[#allocation2 + $0x1f0] sm:$0xff] }
 0x2d2   : > { %3271 = vst [vmem:[#allocation2 + $0x120] sm:$0xff] %v3119_v23  ;;  %3273 = vst [vmem:[#allocation2 + $0x130] sm:$0xff] %v3121_v24  ;;  %v876_v25 = vld [vmem:[#allocation2 + $0x1e8] sm:$0xff]  ;;  %v878_v26 = vld [vmem:[#allocation2 + $0x1f8] sm:$0xff] }
 0x2d3   : > { %3272 = vst [vmem:[#allocation2 + $0x128] sm:$0xff] %v3120_v27  ;;  %3274 = vst [vmem:[#allocation2 + $0x138] sm:$0xff] %v3122_v28 }
 0x2d5   : > { %v2498_v33 = vpop.f32.mrb[20].mxu0  ;;  %v2944_v34 = vpop.f32.mrb[20].mxu1 }
 0x2d6   : > { %v3123_v37 = vadd.f32 %v2498_v33, %v855_v29  ;;  %v3125_v38 = vadd.f32 %v2944_v34, %v857_v30  ;;  %v2500_v39 = vpop.f32.mrb[21].mxu0  ;;  %v2946_v40 = vpop.f32.mrb[21].mxu1 }
 0x2d7   : > { %v3124_v43 = vadd.f32 %v2500_v39, %v856_v31  ;;  %v3126_v44 = vadd.f32 %v2946_v40, %v858_v32  ;;  %v2502_v45 = vpop.f32.mrb[22].mxu0  ;;  %v2948_v46 = vpop.f32.mrb[22].mxu1  ;;  %v880_v39 = vld [vmem:[#allocation2 + $0x208] sm:$0xff]  ;;  %v882_v40 = vld [vmem:[#allocation2 + $0x218] sm:$0xff] }
 0x2d8   : > { %3275 = vst [vmem:[#allocation2 + $0x140] sm:$0xff] %v3123_v37  ;;  %3277 = vst [vmem:[#allocation2 + $0x150] sm:$0xff] %v3125_v38  ;;  %v3127_v47 = vadd.f32 %v2502_v45, %v859_v35  ;;  %v3129_v48 = vadd.f32 %v2948_v46, %v861_v36  ;;  %v2504_v49 = vpop.f32.mrb[23].mxu0  ;;  %v2950_v50 = vpop.f32.mrb[23].mxu1  ;;  %v879_v37 = vld [vmem:[#allocation2 + $0x200] sm:$0xff]  ;;  %v881_v38 = vld [vmem:[#allocation2 + $0x210] sm:$0xff] }
 0x2d9   : > { %3276 = vst [vmem:[#allocation2 + $0x148] sm:$0xff] %v3124_v43  ;;  %3278 = vst [vmem:[#allocation2 + $0x158] sm:$0xff] %v3126_v44  ;;  %v3128_v51 = vadd.f32 %v2504_v49, %v860_v41  ;;  %v3130_v52 = vadd.f32 %v2950_v50, %v862_v42  ;;  %v883_v43 = vld [vmem:[#allocation2 + $0x220] sm:$0xff]  ;;  %v885_v44 = vld [vmem:[#allocation2 + $0x230] sm:$0xff] }
 0x2da   : > { %3279 = vst [vmem:[#allocation2 + $0x160] sm:$0xff] %v3127_v47  ;;  %3281 = vst [vmem:[#allocation2 + $0x170] sm:$0xff] %v3129_v48  ;;  %v884_v49 = vld [vmem:[#allocation2 + $0x228] sm:$0xff]  ;;  %v886_v50 = vld [vmem:[#allocation2 + $0x238] sm:$0xff] }
 0x2db   : > { %3280 = vst [vmem:[#allocation2 + $0x168] sm:$0xff] %v3128_v51  ;;  %3282 = vst [vmem:[#allocation2 + $0x178] sm:$0xff] %v3130_v52 }
 0x2dd   : > { %v2508_v57 = vpop.f32.mrb[24].mxu0  ;;  %v2954_v58 = vpop.f32.mrb[24].mxu1 }
 0x2de   : > { %v3131_v61 = vadd.f32 %v2508_v57, %v863_v53  ;;  %v3133_v62 = vadd.f32 %v2954_v58, %v865_v54  ;;  %v2510_v63 = vpop.f32.mrb[25].mxu0  ;;  %v2956_v0 = vpop.f32.mrb[25].mxu1 }
 0x2df   : > { %v3132_v3 = vadd.f32 %v2510_v63, %v864_v55  ;;  %v3134_v4 = vadd.f32 %v2956_v0, %v866_v56  ;;  %v2512_v5 = vpop.f32.mrb[26].mxu0  ;;  %v2958_v6 = vpop.f32.mrb[26].mxu1  ;;  %v888_v63 = vld [vmem:[#allocation2 + $0x248] sm:$0xff]  ;;  %v890_v0 = vld [vmem:[#allocation2 + $0x258] sm:$0xff] }
 0x2e0   : > { %3283 = vst [vmem:[#allocation2 + $0x180] sm:$0xff] %v3131_v61  ;;  %3285 = vst [vmem:[#allocation2 + $0x190] sm:$0xff] %v3133_v62  ;;  %v3135_v7 = vadd.f32 %v2512_v5, %v867_v59  ;;  %v3137_v8 = vadd.f32 %v2958_v6, %v869_v60  ;;  %v2514_v9 = vpop.f32.mrb[27].mxu0  ;;  %v2960_v10 = vpop.f32.mrb[27].mxu1  ;;  %v887_v61 = vld [vmem:[#allocation2 + $0x240] sm:$0xff]  ;;  %v889_v62 = vld [vmem:[#allocation2 + $0x250] sm:$0xff] }
 0x2e1   : > { %3284 = vst [vmem:[#allocation2 + $0x188] sm:$0xff] %v3132_v3  ;;  %3286 = vst [vmem:[#allocation2 + $0x198] sm:$0xff] %v3134_v4  ;;  %v3136_v11 = vadd.f32 %v2514_v9, %v868_v1  ;;  %v3138_v12 = vadd.f32 %v2960_v10, %v870_v2  ;;  %v891_v3 = vld [vmem:[#allocation2 + $0x260] sm:$0xff]  ;;  %v893_v4 = vld [vmem:[#allocation2 + $0x270] sm:$0xff] }
 0x2e2   : > { %3287 = vst [vmem:[#allocation2 + $0x1a0] sm:$0xff] %v3135_v7  ;;  %3289 = vst [vmem:[#allocation2 + $0x1b0] sm:$0xff] %v3137_v8  ;;  %v892_v9 = vld [vmem:[#allocation2 + $0x268] sm:$0xff]  ;;  %v894_v10 = vld [vmem:[#allocation2 + $0x278] sm:$0xff] }
 0x2e3   : > { %3288 = vst [vmem:[#allocation2 + $0x1a8] sm:$0xff] %v3136_v11  ;;  %3290 = vst [vmem:[#allocation2 + $0x1b8] sm:$0xff] %v3138_v12 }
 0x2e5   : > { %v2518_v17 = vpop.f32.mrb[28].mxu0  ;;  %v2964_v18 = vpop.f32.mrb[28].mxu1 }
 0x2e6   : > { %v3139_v21 = vadd.f32 %v2518_v17, %v871_v13  ;;  %v3141_v22 = vadd.f32 %v2964_v18, %v873_v14  ;;  %v2520_v23 = vpop.f32.mrb[29].mxu0  ;;  %v2966_v24 = vpop.f32.mrb[29].mxu1 }
 0x2e7   : > { %v3140_v27 = vadd.f32 %v2520_v23, %v872_v15  ;;  %v3142_v28 = vadd.f32 %v2966_v24, %v874_v16  ;;  %v2522_v29 = vpop.f32.mrb[30].mxu0  ;;  %v2968_v30 = vpop.f32.mrb[30].mxu1  ;;  %v896_v23 = vld [vmem:[#allocation2 + $0x288] sm:$0xff]  ;;  %v898_v24 = vld [vmem:[#allocation2 + $0x298] sm:$0xff] }
 0x2e8   : > { %3291 = vst [vmem:[#allocation2 + $0x1c0] sm:$0xff] %v3139_v21  ;;  %3293 = vst [vmem:[#allocation2 + $0x1d0] sm:$0xff] %v3141_v22  ;;  %v3143_v31 = vadd.f32 %v2522_v29, %v875_v19  ;;  %v3145_v32 = vadd.f32 %v2968_v30, %v877_v20  ;;  %v2524_v33 = vpop.f32.mrb[31].mxu0  ;;  %v2970_v34 = vpop.f32.mrb[31].mxu1  ;;  %v895_v21 = vld [vmem:[#allocation2 + $0x280] sm:$0xff]  ;;  %v897_v22 = vld [vmem:[#allocation2 + $0x290] sm:$0xff] }
 0x2e9   : > { %3292 = vst [vmem:[#allocation2 + $0x1c8] sm:$0xff] %v3140_v27  ;;  %3294 = vst [vmem:[#allocation2 + $0x1d8] sm:$0xff] %v3142_v28  ;;  %v3144_v35 = vadd.f32 %v2524_v33, %v876_v25  ;;  %v3146_v36 = vadd.f32 %v2970_v34, %v878_v26  ;;  %v899_v27 = vld [vmem:[#allocation2 + $0x2a0] sm:$0xff]  ;;  %v901_v28 = vld [vmem:[#allocation2 + $0x2b0] sm:$0xff] }
 0x2ea   : > { %3295 = vst [vmem:[#allocation2 + $0x1e0] sm:$0xff] %v3143_v31  ;;  %3297 = vst [vmem:[#allocation2 + $0x1f0] sm:$0xff] %v3145_v32  ;;  %v900_v33 = vld [vmem:[#allocation2 + $0x2a8] sm:$0xff]  ;;  %v902_v34 = vld [vmem:[#allocation2 + $0x2b8] sm:$0xff] }
 0x2eb   : > { %3296 = vst [vmem:[#allocation2 + $0x1e8] sm:$0xff] %v3144_v35  ;;  %3298 = vst [vmem:[#allocation2 + $0x1f8] sm:$0xff] %v3146_v36 }
 0x2ed   : > { %v2528_v41 = vpop.f32.mrb[32].mxu0  ;;  %v2974_v42 = vpop.f32.mrb[32].mxu1 }
 0x2ee   : > { %v3147_v45 = vadd.f32 %v2528_v41, %v879_v37  ;;  %v3149_v46 = vadd.f32 %v2974_v42, %v881_v38  ;;  %v2530_v47 = vpop.f32.mrb[33].mxu0  ;;  %v2976_v48 = vpop.f32.mrb[33].mxu1 }
 0x2ef   : > { %v3148_v51 = vadd.f32 %v2530_v47, %v880_v39  ;;  %v3150_v52 = vadd.f32 %v2976_v48, %v882_v40  ;;  %v2532_v53 = vpop.f32.mrb[34].mxu0  ;;  %v2978_v54 = vpop.f32.mrb[34].mxu1  ;;  %v904_v47 = vld [vmem:[#allocation2 + $0x2c8] sm:$0xff]  ;;  %v906_v48 = vld [vmem:[#allocation2 + $0x2d8] sm:$0xff] }
 0x2f0   : > { %3299 = vst [vmem:[#allocation2 + $0x200] sm:$0xff] %v3147_v45  ;;  %3301 = vst [vmem:[#allocation2 + $0x210] sm:$0xff] %v3149_v46  ;;  %v3151_v55 = vadd.f32 %v2532_v53, %v883_v43  ;;  %v3153_v56 = vadd.f32 %v2978_v54, %v885_v44  ;;  %v2534_v57 = vpop.f32.mrb[35].mxu0  ;;  %v2980_v58 = vpop.f32.mrb[35].mxu1  ;;  %v903_v45 = vld [vmem:[#allocation2 + $0x2c0] sm:$0xff]  ;;  %v905_v46 = vld [vmem:[#allocation2 + $0x2d0] sm:$0xff] }
 0x2f1   : > { %3300 = vst [vmem:[#allocation2 + $0x208] sm:$0xff] %v3148_v51  ;;  %3302 = vst [vmem:[#allocation2 + $0x218] sm:$0xff] %v3150_v52  ;;  %v3152_v59 = vadd.f32 %v2534_v57, %v884_v49  ;;  %v3154_v60 = vadd.f32 %v2980_v58, %v886_v50  ;;  %v907_v51 = vld [vmem:[#allocation2 + $0x2e0] sm:$0xff]  ;;  %v909_v52 = vld [vmem:[#allocation2 + $0x2f0] sm:$0xff] }
 0x2f2   : > { %3303 = vst [vmem:[#allocation2 + $0x220] sm:$0xff] %v3151_v55  ;;  %3305 = vst [vmem:[#allocation2 + $0x230] sm:$0xff] %v3153_v56  ;;  %v908_v57 = vld [vmem:[#allocation2 + $0x2e8] sm:$0xff]  ;;  %v910_v58 = vld [vmem:[#allocation2 + $0x2f8] sm:$0xff] }
 0x2f3   : > { %3304 = vst [vmem:[#allocation2 + $0x228] sm:$0xff] %v3152_v59  ;;  %3306 = vst [vmem:[#allocation2 + $0x238] sm:$0xff] %v3154_v60 }
 0x2f5   : > { %v2538_v1 = vpop.f32.mrb[36].mxu0  ;;  %v2984_v2 = vpop.f32.mrb[36].mxu1 }
 0x2f6   : > { %v3155_v5 = vadd.f32 %v2538_v1, %v887_v61  ;;  %v3157_v6 = vadd.f32 %v2984_v2, %v889_v62  ;;  %v2540_v7 = vpop.f32.mrb[37].mxu0  ;;  %v2986_v8 = vpop.f32.mrb[37].mxu1 }
 0x2f7   : > { %v3156_v11 = vadd.f32 %v2540_v7, %v888_v63  ;;  %v3158_v12 = vadd.f32 %v2986_v8, %v890_v0  ;;  %v2542_v13 = vpop.f32.mrb[38].mxu0  ;;  %v2988_v14 = vpop.f32.mrb[38].mxu1  ;;  %v912_v7 = vld [vmem:[#allocation2 + $0x308] sm:$0xff]  ;;  %v914_v8 = vld [vmem:[#allocation2 + $0x318] sm:$0xff] }
 0x2f8   : > { %3307 = vst [vmem:[#allocation2 + $0x240] sm:$0xff] %v3155_v5  ;;  %3309 = vst [vmem:[#allocation2 + $0x250] sm:$0xff] %v3157_v6  ;;  %v3159_v15 = vadd.f32 %v2542_v13, %v891_v3  ;;  %v3161_v16 = vadd.f32 %v2988_v14, %v893_v4  ;;  %v2544_v17 = vpop.f32.mrb[39].mxu0  ;;  %v2990_v18 = vpop.f32.mrb[39].mxu1  ;;  %v911_v5 = vld [vmem:[#allocation2 + $0x300] sm:$0xff]  ;;  %v913_v6 = vld [vmem:[#allocation2 + $0x310] sm:$0xff] }
 0x2f9   : > { %3308 = vst [vmem:[#allocation2 + $0x248] sm:$0xff] %v3156_v11  ;;  %3310 = vst [vmem:[#allocation2 + $0x258] sm:$0xff] %v3158_v12  ;;  %v3160_v19 = vadd.f32 %v2544_v17, %v892_v9  ;;  %v3162_v20 = vadd.f32 %v2990_v18, %v894_v10  ;;  %v915_v11 = vld [vmem:[#allocation2 + $0x320] sm:$0xff]  ;;  %v917_v12 = vld [vmem:[#allocation2 + $0x330] sm:$0xff] }
 0x2fa   : > { %3311 = vst [vmem:[#allocation2 + $0x260] sm:$0xff] %v3159_v15  ;;  %3313 = vst [vmem:[#allocation2 + $0x270] sm:$0xff] %v3161_v16  ;;  %v916_v17 = vld [vmem:[#allocation2 + $0x328] sm:$0xff]  ;;  %v918_v18 = vld [vmem:[#allocation2 + $0x338] sm:$0xff] }
 0x2fb   : > { %3312 = vst [vmem:[#allocation2 + $0x268] sm:$0xff] %v3160_v19  ;;  %3314 = vst [vmem:[#allocation2 + $0x278] sm:$0xff] %v3162_v20 }
 0x2fd   : > { %v2548_v25 = vpop.f32.mrb[40].mxu0  ;;  %v2994_v26 = vpop.f32.mrb[40].mxu1 }
 0x2fe   : > { %v3163_v29 = vadd.f32 %v2548_v25, %v895_v21  ;;  %v3165_v30 = vadd.f32 %v2994_v26, %v897_v22  ;;  %v2550_v31 = vpop.f32.mrb[41].mxu0  ;;  %v2996_v32 = vpop.f32.mrb[41].mxu1 }
 0x2ff   : > { %v3164_v35 = vadd.f32 %v2550_v31, %v896_v23  ;;  %v3166_v36 = vadd.f32 %v2996_v32, %v898_v24  ;;  %v2552_v37 = vpop.f32.mrb[42].mxu0  ;;  %v2998_v38 = vpop.f32.mrb[42].mxu1  ;;  %v920_v31 = vld [vmem:[#allocation2 + $0x348] sm:$0xff]  ;;  %v922_v32 = vld [vmem:[#allocation2 + $0x358] sm:$0xff] }
 0x300   : > { %3315 = vst [vmem:[#allocation2 + $0x280] sm:$0xff] %v3163_v29  ;;  %3317 = vst [vmem:[#allocation2 + $0x290] sm:$0xff] %v3165_v30  ;;  %v3167_v39 = vadd.f32 %v2552_v37, %v899_v27  ;;  %v3169_v40 = vadd.f32 %v2998_v38, %v901_v28  ;;  %v2554_v41 = vpop.f32.mrb[43].mxu0  ;;  %v3000_v42 = vpop.f32.mrb[43].mxu1  ;;  %v919_v29 = vld [vmem:[#allocation2 + $0x340] sm:$0xff]  ;;  %v921_v30 = vld [vmem:[#allocation2 + $0x350] sm:$0xff] }
 0x301   : > { %3316 = vst [vmem:[#allocation2 + $0x288] sm:$0xff] %v3164_v35  ;;  %3318 = vst [vmem:[#allocation2 + $0x298] sm:$0xff] %v3166_v36  ;;  %v3168_v43 = vadd.f32 %v2554_v41, %v900_v33  ;;  %v3170_v44 = vadd.f32 %v3000_v42, %v902_v34  ;;  %v923_v35 = vld [vmem:[#allocation2 + $0x360] sm:$0xff]  ;;  %v925_v36 = vld [vmem:[#allocation2 + $0x370] sm:$0xff] }
 0x302   : > { %3319 = vst [vmem:[#allocation2 + $0x2a0] sm:$0xff] %v3167_v39  ;;  %3321 = vst [vmem:[#allocation2 + $0x2b0] sm:$0xff] %v3169_v40  ;;  %v924_v41 = vld [vmem:[#allocation2 + $0x368] sm:$0xff]  ;;  %v926_v42 = vld [vmem:[#allocation2 + $0x378] sm:$0xff] }
 0x303   : > { %3320 = vst [vmem:[#allocation2 + $0x2a8] sm:$0xff] %v3168_v43  ;;  %3322 = vst [vmem:[#allocation2 + $0x2b8] sm:$0xff] %v3170_v44 }
 0x305   : > { %v2558_v49 = vpop.f32.mrb[44].mxu0  ;;  %v3004_v50 = vpop.f32.mrb[44].mxu1 }
 0x306   : > { %v3171_v53 = vadd.f32 %v2558_v49, %v903_v45  ;;  %v3173_v54 = vadd.f32 %v3004_v50, %v905_v46  ;;  %v2560_v55 = vpop.f32.mrb[45].mxu0  ;;  %v3006_v56 = vpop.f32.mrb[45].mxu1 }
 0x307   : > { %v3172_v59 = vadd.f32 %v2560_v55, %v904_v47  ;;  %v3174_v60 = vadd.f32 %v3006_v56, %v906_v48  ;;  %v2562_v61 = vpop.f32.mrb[46].mxu0  ;;  %v3008_v62 = vpop.f32.mrb[46].mxu1  ;;  %v928_v55 = vld [vmem:[#allocation2 + $0x388] sm:$0xff]  ;;  %v930_v56 = vld [vmem:[#allocation2 + $0x398] sm:$0xff] }
 0x308   : > { %3323 = vst [vmem:[#allocation2 + $0x2c0] sm:$0xff] %v3171_v53  ;;  %3325 = vst [vmem:[#allocation2 + $0x2d0] sm:$0xff] %v3173_v54  ;;  %v3175_v63 = vadd.f32 %v2562_v61, %v907_v51  ;;  %v3177_v0 = vadd.f32 %v3008_v62, %v909_v52  ;;  %v2564_v1 = vpop.f32.mrb[47].mxu0  ;;  %v3010_v2 = vpop.f32.mrb[47].mxu1  ;;  %v927_v53 = vld [vmem:[#allocation2 + $0x380] sm:$0xff]  ;;  %v929_v54 = vld [vmem:[#allocation2 + $0x390] sm:$0xff] }
 0x309   : > { %3324 = vst [vmem:[#allocation2 + $0x2c8] sm:$0xff] %v3172_v59  ;;  %3326 = vst [vmem:[#allocation2 + $0x2d8] sm:$0xff] %v3174_v60  ;;  %v3176_v3 = vadd.f32 %v2564_v1, %v908_v57  ;;  %v3178_v4 = vadd.f32 %v3010_v2, %v910_v58  ;;  %v931_v59 = vld [vmem:[#allocation2 + $0x3a0] sm:$0xff]  ;;  %v933_v60 = vld [vmem:[#allocation2 + $0x3b0] sm:$0xff] }
 0x30a   : > { %3327 = vst [vmem:[#allocation2 + $0x2e0] sm:$0xff] %v3175_v63  ;;  %3329 = vst [vmem:[#allocation2 + $0x2f0] sm:$0xff] %v3177_v0  ;;  %v932_v1 = vld [vmem:[#allocation2 + $0x3a8] sm:$0xff]  ;;  %v934_v2 = vld [vmem:[#allocation2 + $0x3b8] sm:$0xff] }
 0x30b   : > { %3328 = vst [vmem:[#allocation2 + $0x2e8] sm:$0xff] %v3176_v3  ;;  %3330 = vst [vmem:[#allocation2 + $0x2f8] sm:$0xff] %v3178_v4 }
 0x30d   : > { %v2568_v9 = vpop.f32.mrb[48].mxu0  ;;  %v3014_v10 = vpop.f32.mrb[48].mxu1 }
 0x30e   : > { %v3179_v13 = vadd.f32 %v2568_v9, %v911_v5  ;;  %v3181_v14 = vadd.f32 %v3014_v10, %v913_v6  ;;  %v2570_v15 = vpop.f32.mrb[49].mxu0  ;;  %v3016_v16 = vpop.f32.mrb[49].mxu1 }
 0x30f   : > { %v3180_v19 = vadd.f32 %v2570_v15, %v912_v7  ;;  %v3182_v20 = vadd.f32 %v3016_v16, %v914_v8  ;;  %v2572_v21 = vpop.f32.mrb[50].mxu0  ;;  %v3018_v22 = vpop.f32.mrb[50].mxu1  ;;  %v936_v15 = vld [vmem:[#allocation2 + $0x3c8] sm:$0xff]  ;;  %v938_v16 = vld [vmem:[#allocation2 + $0x3d8] sm:$0xff] }
 0x310   : > { %3331 = vst [vmem:[#allocation2 + $0x300] sm:$0xff] %v3179_v13  ;;  %3333 = vst [vmem:[#allocation2 + $0x310] sm:$0xff] %v3181_v14  ;;  %v3183_v23 = vadd.f32 %v2572_v21, %v915_v11  ;;  %v3185_v24 = vadd.f32 %v3018_v22, %v917_v12  ;;  %v2574_v25 = vpop.f32.mrb[51].mxu0  ;;  %v3020_v26 = vpop.f32.mrb[51].mxu1  ;;  %v935_v13 = vld [vmem:[#allocation2 + $0x3c0] sm:$0xff]  ;;  %v937_v14 = vld [vmem:[#allocation2 + $0x3d0] sm:$0xff] }
 0x311   : > { %3332 = vst [vmem:[#allocation2 + $0x308] sm:$0xff] %v3180_v19  ;;  %3334 = vst [vmem:[#allocation2 + $0x318] sm:$0xff] %v3182_v20  ;;  %v3184_v27 = vadd.f32 %v2574_v25, %v916_v17  ;;  %v3186_v28 = vadd.f32 %v3020_v26, %v918_v18  ;;  %v939_v19 = vld [vmem:[#allocation2 + $0x3e0] sm:$0xff]  ;;  %v941_v20 = vld [vmem:[#allocation2 + $0x3f0] sm:$0xff] }
 0x312   : > { %3335 = vst [vmem:[#allocation2 + $0x320] sm:$0xff] %v3183_v23  ;;  %3337 = vst [vmem:[#allocation2 + $0x330] sm:$0xff] %v3185_v24  ;;  %v940_v25 = vld [vmem:[#allocation2 + $0x3e8] sm:$0xff]  ;;  %v942_v26 = vld [vmem:[#allocation2 + $0x3f8] sm:$0xff] }
 0x313   : > { %3336 = vst [vmem:[#allocation2 + $0x328] sm:$0xff] %v3184_v27  ;;  %3338 = vst [vmem:[#allocation2 + $0x338] sm:$0xff] %v3186_v28 }
 0x315   : > { %v2578_v33 = vpop.f32.mrb[52].mxu0  ;;  %v3024_v34 = vpop.f32.mrb[52].mxu1 }
 0x316   : > { %v3187_v37 = vadd.f32 %v2578_v33, %v919_v29  ;;  %v3189_v38 = vadd.f32 %v3024_v34, %v921_v30  ;;  %v2580_v39 = vpop.f32.mrb[53].mxu0  ;;  %v3026_v40 = vpop.f32.mrb[53].mxu1 }
 0x317   : > { %v3188_v43 = vadd.f32 %v2580_v39, %v920_v31  ;;  %v3190_v44 = vadd.f32 %v3026_v40, %v922_v32  ;;  %v2582_v45 = vpop.f32.mrb[54].mxu0  ;;  %v3028_v46 = vpop.f32.mrb[54].mxu1  ;;  %v944_v39 = vld [vmem:[#allocation2 + $0x408] sm:$0xff]  ;;  %v946_v40 = vld [vmem:[#allocation2 + $0x418] sm:$0xff] }
 0x318   : > { %3339 = vst [vmem:[#allocation2 + $0x340] sm:$0xff] %v3187_v37  ;;  %3341 = vst [vmem:[#allocation2 + $0x350] sm:$0xff] %v3189_v38  ;;  %v3191_v47 = vadd.f32 %v2582_v45, %v923_v35  ;;  %v3193_v48 = vadd.f32 %v3028_v46, %v925_v36  ;;  %v2584_v49 = vpop.f32.mrb[55].mxu0  ;;  %v3030_v50 = vpop.f32.mrb[55].mxu1  ;;  %v943_v37 = vld [vmem:[#allocation2 + $0x400] sm:$0xff]  ;;  %v945_v38 = vld [vmem:[#allocation2 + $0x410] sm:$0xff] }
 0x319   : > { %3340 = vst [vmem:[#allocation2 + $0x348] sm:$0xff] %v3188_v43  ;;  %3342 = vst [vmem:[#allocation2 + $0x358] sm:$0xff] %v3190_v44  ;;  %v3192_v51 = vadd.f32 %v2584_v49, %v924_v41  ;;  %v3194_v52 = vadd.f32 %v3030_v50, %v926_v42  ;;  %v947_v43 = vld [vmem:[#allocation2 + $0x420] sm:$0xff]  ;;  %v949_v44 = vld [vmem:[#allocation2 + $0x430] sm:$0xff] }
 0x31a   : > { %3343 = vst [vmem:[#allocation2 + $0x360] sm:$0xff] %v3191_v47  ;;  %3345 = vst [vmem:[#allocation2 + $0x370] sm:$0xff] %v3193_v48  ;;  %v948_v49 = vld [vmem:[#allocation2 + $0x428] sm:$0xff]  ;;  %v950_v50 = vld [vmem:[#allocation2 + $0x438] sm:$0xff] }
 0x31b   : > { %3344 = vst [vmem:[#allocation2 + $0x368] sm:$0xff] %v3192_v51  ;;  %3346 = vst [vmem:[#allocation2 + $0x378] sm:$0xff] %v3194_v52 }
 0x31d   : > { %v2588_v57 = vpop.f32.mrb[56].mxu0  ;;  %v3034_v58 = vpop.f32.mrb[56].mxu1 }
 0x31e   : > { %v3195_v61 = vadd.f32 %v2588_v57, %v927_v53  ;;  %v3197_v62 = vadd.f32 %v3034_v58, %v929_v54  ;;  %v2590_v63 = vpop.f32.mrb[57].mxu0  ;;  %v3036_v0 = vpop.f32.mrb[57].mxu1 }
 0x31f   : > { %v3196_v3 = vadd.f32 %v2590_v63, %v928_v55  ;;  %v3198_v4 = vadd.f32 %v3036_v0, %v930_v56  ;;  %v2592_v5 = vpop.f32.mrb[58].mxu0  ;;  %v3038_v6 = vpop.f32.mrb[58].mxu1  ;;  %v952_v63 = vld [vmem:[#allocation2 + $0x448] sm:$0xff]  ;;  %v954_v0 = vld [vmem:[#allocation2 + $0x458] sm:$0xff] }
 0x320   : > { %3347 = vst [vmem:[#allocation2 + $0x380] sm:$0xff] %v3195_v61  ;;  %3349 = vst [vmem:[#allocation2 + $0x390] sm:$0xff] %v3197_v62  ;;  %v3199_v7 = vadd.f32 %v2592_v5, %v931_v59  ;;  %v3201_v8 = vadd.f32 %v3038_v6, %v933_v60  ;;  %v2594_v9 = vpop.f32.mrb[59].mxu0  ;;  %v3040_v10 = vpop.f32.mrb[59].mxu1  ;;  %v951_v61 = vld [vmem:[#allocation2 + $0x440] sm:$0xff]  ;;  %v953_v62 = vld [vmem:[#allocation2 + $0x450] sm:$0xff] }
 0x321   : > { %3348 = vst [vmem:[#allocation2 + $0x388] sm:$0xff] %v3196_v3  ;;  %3350 = vst [vmem:[#allocation2 + $0x398] sm:$0xff] %v3198_v4  ;;  %v3200_v11 = vadd.f32 %v2594_v9, %v932_v1  ;;  %v3202_v12 = vadd.f32 %v3040_v10, %v934_v2  ;;  %v955_v3 = vld [vmem:[#allocation2 + $0x460] sm:$0xff]  ;;  %v957_v4 = vld [vmem:[#allocation2 + $0x470] sm:$0xff] }
 0x322   : > { %3351 = vst [vmem:[#allocation2 + $0x3a0] sm:$0xff] %v3199_v7  ;;  %3353 = vst [vmem:[#allocation2 + $0x3b0] sm:$0xff] %v3201_v8  ;;  %v956_v9 = vld [vmem:[#allocation2 + $0x468] sm:$0xff]  ;;  %v958_v10 = vld [vmem:[#allocation2 + $0x478] sm:$0xff] }
 0x323   : > { %3352 = vst [vmem:[#allocation2 + $0x3a8] sm:$0xff] %v3200_v11  ;;  %3354 = vst [vmem:[#allocation2 + $0x3b8] sm:$0xff] %v3202_v12 }
 0x325   : > { %v2598_v17 = vpop.f32.mrb[60].mxu0  ;;  %v3044_v18 = vpop.f32.mrb[60].mxu1 }
 0x326   : > { %v3203_v21 = vadd.f32 %v2598_v17, %v935_v13  ;;  %v3205_v22 = vadd.f32 %v3044_v18, %v937_v14  ;;  %v2600_v23 = vpop.f32.mrb[61].mxu0  ;;  %v3046_v24 = vpop.f32.mrb[61].mxu1 }
 0x327   : > { %v3204_v27 = vadd.f32 %v2600_v23, %v936_v15  ;;  %v3206_v28 = vadd.f32 %v3046_v24, %v938_v16  ;;  %v2602_v29 = vpop.f32.mrb[62].mxu0  ;;  %v3048_v30 = vpop.f32.mrb[62].mxu1  ;;  %v960_v23 = vld [vmem:[#allocation2 + $0x488] sm:$0xff]  ;;  %v962_v24 = vld [vmem:[#allocation2 + $0x498] sm:$0xff] }
 0x328   : > { %3355 = vst [vmem:[#allocation2 + $0x3c0] sm:$0xff] %v3203_v21  ;;  %3357 = vst [vmem:[#allocation2 + $0x3d0] sm:$0xff] %v3205_v22  ;;  %v3207_v31 = vadd.f32 %v2602_v29, %v939_v19  ;;  %v3209_v32 = vadd.f32 %v3048_v30, %v941_v20  ;;  %v2604_v33 = vpop.f32.mrb[63].mxu0  ;;  %v3050_v34 = vpop.f32.mrb[63].mxu1  ;;  %v959_v21 = vld [vmem:[#allocation2 + $0x480] sm:$0xff]  ;;  %v961_v22 = vld [vmem:[#allocation2 + $0x490] sm:$0xff] }
 0x329   : > { %3356 = vst [vmem:[#allocation2 + $0x3c8] sm:$0xff] %v3204_v27  ;;  %3358 = vst [vmem:[#allocation2 + $0x3d8] sm:$0xff] %v3206_v28  ;;  %v3208_v35 = vadd.f32 %v2604_v33, %v940_v25  ;;  %v3210_v36 = vadd.f32 %v3050_v34, %v942_v26  ;;  %v963_v27 = vld [vmem:[#allocation2 + $0x4a0] sm:$0xff]  ;;  %v965_v28 = vld [vmem:[#allocation2 + $0x4b0] sm:$0xff] }
 0x32a   : > { %3359 = vst [vmem:[#allocation2 + $0x3e0] sm:$0xff] %v3207_v31  ;;  %3361 = vst [vmem:[#allocation2 + $0x3f0] sm:$0xff] %v3209_v32  ;;  %v964_v33 = vld [vmem:[#allocation2 + $0x4a8] sm:$0xff]  ;;  %v966_v34 = vld [vmem:[#allocation2 + $0x4b8] sm:$0xff] }
 0x32b   : > { %3360 = vst [vmem:[#allocation2 + $0x3e8] sm:$0xff] %v3208_v35  ;;  %3362 = vst [vmem:[#allocation2 + $0x3f8] sm:$0xff] %v3210_v36 }
 0x32d   : > { %v2608_v41 = vpop.f32.mrb[64].mxu0  ;;  %v3054_v42 = vpop.f32.mrb[64].mxu1 }
 0x32e   : > { %v3211_v45 = vadd.f32 %v2608_v41, %v943_v37  ;;  %v3213_v46 = vadd.f32 %v3054_v42, %v945_v38  ;;  %v2610_v47 = vpop.f32.mrb[65].mxu0  ;;  %v3056_v48 = vpop.f32.mrb[65].mxu1 }
 0x32f   : > { %v3212_v51 = vadd.f32 %v2610_v47, %v944_v39  ;;  %v3214_v52 = vadd.f32 %v3056_v48, %v946_v40  ;;  %v2612_v53 = vpop.f32.mrb[66].mxu0  ;;  %v3058_v54 = vpop.f32.mrb[66].mxu1  ;;  %v3718_v48 = vld [vmem:[%s6476_s6 + $0x8] sm:$0xff] (!%p5011_p1) }
 0x330   : > { %3363 = vst [vmem:[#allocation2 + $0x400] sm:$0xff] %v3211_v45  ;;  %3365 = vst [vmem:[#allocation2 + $0x410] sm:$0xff] %v3213_v46  ;;  %v3215_v55 = vadd.f32 %v2612_v53, %v947_v43  ;;  %v3217_v56 = vadd.f32 %v3058_v54, %v949_v44  ;;  %v2614_v57 = vpop.f32.mrb[67].mxu0  ;;  %v3060_v58 = vpop.f32.mrb[67].mxu1  ;;  %v3545_v45 = vlaneseq (!%p5011_p1)  ;;  %v3717_v46 = vld [vmem:[%s6476_s6] sm:$0xff] (!%p5011_p1)  ;;  %v3393_v54 = vld [vmem:[#allocation2 + $0x10] sm:$0xff] (!%p5011_p1) }
 0x331   : > { %3364 = vst [vmem:[#allocation2 + $0x408] sm:$0xff] %v3212_v51  ;;  %3366 = vst [vmem:[#allocation2 + $0x418] sm:$0xff] %v3214_v52  ;;  %v3216_v59 = vadd.f32 %v2614_v57, %v948_v49  ;;  %v3218_v60 = vadd.f32 %v3060_v58, %v950_v50  ;;  %v3391_v49 = vld [vmem:[#allocation2] sm:$0xff] (!%p5011_p1)  ;;  %v3392_v50 = vld [vmem:[#allocation2 + $0x8] sm:$0xff] (!%p5011_p1)  ;;  %v3793_v52 = vunpack.c.l.bf16 (!%p5011_p1), %v3717_v46  ;;  %v3794_v53 = vunpack.c.h.bf16 (!%p5011_p1), %v3717_v46 }
 0x332   : > { %3367 = vst [vmem:[#allocation2 + $0x420] sm:$0xff] %v3215_v55  ;;  %3369 = vst [vmem:[#allocation2 + $0x430] sm:$0xff] %v3217_v56  ;;  %v3546_v47 = vshrl.u32 (!%p5011_p1), %v3545_v45, 7  ;;  %v3543_v51 = vld [vmem:[%s653_s29] sm:$0xf] (!%p5011_p1)  ;;  %v3795_v55 = vunpack.c.l.bf16 (!%p5011_p1), %v3718_v48  ;;  %v3796_v56 = vunpack.c.h.bf16 (!%p5011_p1), %v3718_v48  ;;  %v3719_v57 = vld [vmem:[%s6476_s6 + $0x10] sm:$0xff] (!%p5011_p1) }
 0x333   : > { %3368 = vst [vmem:[#allocation2 + $0x428] sm:$0xff] %v3216_v59  ;;  %3370 = vst [vmem:[#allocation2 + $0x438] sm:$0xff] %v3218_v60  ;;  %v3394_v60 = vld [vmem:[#allocation2 + $0x18] sm:$0xff] (!%p5011_p1) }
 0x334   : > { %v3547_v58 = vsub.s32 (!%p5011_p1), 0, %v3546_v47  ;;  %v3551_v59 = vsub.s32 (!%p5011_p1), 1, %v3546_v47 }
 0x335   : > { %v2618_v1 = vpop.f32.mrb[68].mxu0  ;;  %v3064_v2 = vpop.f32.mrb[68].mxu1 }
 0x336   : > { %v3219_v5 = vadd.f32 %v2618_v1, %v951_v61  ;;  %v3221_v6 = vadd.f32 %v3064_v2, %v953_v62  ;;  %v2620_v7 = vpop.f32.mrb[69].mxu0  ;;  %v3066_v8 = vpop.f32.mrb[69].mxu1  ;;  %v3555_v61 = vsub.s32 (!%p5011_p1), 2, %v3546_v47  ;;  %v3559_v62 = vsub.s32 (!%p5011_p1), 3, %v3546_v47  ;;  %v3396_v1 = vld [vmem:[#allocation2 + $0x28] sm:$0xff] (!%p5011_p1) }
 0x337   : > { %v3220_v11 = vadd.f32 %v2620_v7, %v952_v63  ;;  %v3222_v12 = vadd.f32 %v3066_v8, %v954_v0  ;;  %v2622_v13 = vpop.f32.mrb[70].mxu0  ;;  %v3068_v14 = vpop.f32.mrb[70].mxu1  ;;  %v3720_v63 = vld [vmem:[%s6476_s6 + $0x18] sm:$0xff] (!%p5011_p1)  ;;  %v3395_v0 = vld [vmem:[#allocation2 + $0x20] sm:$0xff] (!%p5011_p1)  ;;  %v3797_v2 = vunpack.c.l.bf16 (!%p5011_p1), %v3719_v57  ;;  %v6848_v7 = vrot.slane (!%p5011_p1), %v3543_v51, %v3547_v58 }
 0x338   : > { %3371 = vst [vmem:[#allocation2 + $0x440] sm:$0xff] %v3219_v5  ;;  %3373 = vst [vmem:[#allocation2 + $0x450] sm:$0xff] %v3221_v6  ;;  %v3223_v15 = vadd.f32 %v2622_v13, %v955_v3  ;;  %v3225_v16 = vadd.f32 %v3068_v14, %v957_v4  ;;  %v2624_v17 = vpop.f32.mrb[71].mxu0  ;;  %v3070_v18 = vpop.f32.mrb[71].mxu1  ;;  %v3798_v3 = vunpack.c.h.bf16 (!%p5011_p1), %v3719_v57  ;;  %v3799_v4 = vunpack.c.l.bf16 (!%p5011_p1), %v3720_v63  ;;  %v3721_v6 = vld [vmem:[%s6476_s6 + $0x20] sm:$0xff] (!%p5011_p1)  ;;  %v3722_v13 = vld [vmem:[%s6476_s6 + $0x28] sm:$0xff] (!%p5011_p1) }
 0x339   : > { %3372 = vst [vmem:[#allocation2 + $0x448] sm:$0xff] %v3220_v11  ;;  %3374 = vst [vmem:[#allocation2 + $0x458] sm:$0xff] %v3222_v12  ;;  %v3224_v19 = vadd.f32 %v2624_v17, %v956_v9  ;;  %v3226_v20 = vadd.f32 %v3070_v18, %v958_v10  ;;  %v3800_v5 = vunpack.c.h.bf16 (!%p5011_p1), %v3720_v63  ;;  %v6850_v8 = vrot.slane (!%p5011_p1), %v3543_v51, %v3551_v59  ;;  %v3397_v11 = vld [vmem:[#allocation2 + $0x30] sm:$0xff] (!%p5011_p1)  ;;  %v3398_v12 = vld [vmem:[#allocation2 + $0x38] sm:$0xff] (!%p5011_p1) }
 0x33a   : > { %3375 = vst [vmem:[#allocation2 + $0x460] sm:$0xff] %v3223_v15  ;;  %3377 = vst [vmem:[#allocation2 + $0x470] sm:$0xff] %v3225_v16  ;;  %v6852_v9 = vrot.slane (!%p5011_p1), %v3543_v51, %v3555_v61  ;;  %v6854_v10 = vrot.slane (!%p5011_p1), %v3543_v51, %v3559_v62  ;;  %v3801_v14 = vunpack.c.l.bf16 (!%p5011_p1), %v3721_v6  ;;  %v3802_v15 = vunpack.c.h.bf16 (!%p5011_p1), %v3721_v6  ;;  %v3724_v51 = vld [vmem:[%s6476_s6 + $0x38] sm:$0xff] (!%p5011_p1)  ;;  %v3408_v61 = vld [vmem:[#allocation2 + $0x88] sm:$0xff] (!%p5011_p1) }
 0x33b   : > { %3376 = vst [vmem:[#allocation2 + $0x468] sm:$0xff] %v3224_v19  ;;  %3378 = vst [vmem:[#allocation2 + $0x478] sm:$0xff] %v3226_v20  ;;  %v3803_v16 = vunpack.c.l.bf16 (!%p5011_p1), %v3722_v13  ;;  %v3804_v17 = vunpack.c.h.bf16 (!%p5011_p1), %v3722_v13  ;;  %v3565_v18 = vadd.f32 (!%p5011_p1), %v6848_v7, %v3391_v49  ;;  %v3566_v19 = vadd.f32 (!%p5011_p1), %v6850_v8, %v3392_v50  ;;  %v3405_v49 = vld [vmem:[#allocation2 + $0x70] sm:$0xff] (!%p5011_p1)  ;;  %v3406_v50 = vld [vmem:[#allocation2 + $0x78] sm:$0xff] (!%p5011_p1) }
 0x33c   : > { %v3567_v20 = vadd.f32 (!%p5011_p1), %v6852_v9, %v3393_v54  ;;  %v3725_v62 = vld [vmem:[%s6476_s6 + $0x40] sm:$0xff] (!%p5011_p1)  ;;  %v3726_v13 = vld [vmem:[%s6476_s6 + $0x48] sm:$0xff] (!%p5011_p1) }
 0x33d   : > { %v2628_v25 = vpop.f32.mrb[72].mxu0  ;;  %v3074_v26 = vpop.f32.mrb[72].mxu1  ;;  %3390 = sbr.rel (%p5011_p1) target bundleno = 967 (0x3c7), region = 94 }
 0x33e   : > { %v3227_v29 = vadd.f32 %v2628_v25, %v959_v21  ;;  %v3229_v30 = vadd.f32 %v3074_v26, %v961_v22  ;;  %v2630_v31 = vpop.f32.mrb[73].mxu0  ;;  %v3076_v32 = vpop.f32.mrb[73].mxu1  ;;  %v3568_v21 = vadd.f32 (!%p5011_p1), %v6854_v10, %v3394_v60  ;;  %v3569_v22 = vadd.f32 (!%p5011_p1), %v6848_v7, %v3395_v0  ;;  %v3399_v26 = vld [vmem:[#allocation2 + $0x40] sm:$0xff] (!%p5011_p1) }
 0x33f   : > { %v3228_v35 = vadd.f32 %v2630_v31, %v960_v23  ;;  %v3230_v36 = vadd.f32 %v3076_v32, %v962_v24  ;;  %v2632_v37 = vpop.f32.mrb[74].mxu0  ;;  %v3078_v38 = vpop.f32.mrb[74].mxu1  ;;  %v3570_v23 = vadd.f32 (!%p5011_p1), %v6850_v8, %v3396_v1  ;;  %v3571_v24 = vadd.f32 (!%p5011_p1), %v6852_v9, %v3397_v11  ;;  %v3401_v32 = vld [vmem:[#allocation2 + $0x50] sm:$0xff] (!%p5011_p1)  ;;  %v3407_v60 = vld [vmem:[#allocation2 + $0x80] sm:$0xff] (!%p5011_p1) }
 0x340   : > { %3379 = vst [vmem:[#allocation2 + $0x480] sm:$0xff] %v3227_v29  ;;  %3381 = vst [vmem:[#allocation2 + $0x490] sm:$0xff] %v3229_v30  ;;  %v3231_v39 = vadd.f32 %v2632_v37, %v963_v27  ;;  %v3233_v40 = vadd.f32 %v3078_v38, %v965_v28  ;;  %v2634_v41 = vpop.f32.mrb[75].mxu0  ;;  %v3080_v42 = vpop.f32.mrb[75].mxu1  ;;  %v3572_v25 = vadd.f32 (!%p5011_p1), %v6854_v10, %v3398_v12  ;;  %v3400_v27 = vld [vmem:[#allocation2 + $0x48] sm:$0xff] (!%p5011_p1)  ;;  %v3403_v38 = vld [vmem:[#allocation2 + $0x60] sm:$0xff] (!%p5011_p1)  ;;  %v3808_v11 = vunpack.c.h.bf16 (!%p5011_p1), %v3724_v51 }
 0x341   : > { %3380 = vst [vmem:[#allocation2 + $0x488] sm:$0xff] %v3228_v35  ;;  %3382 = vst [vmem:[#allocation2 + $0x498] sm:$0xff] %v3230_v36  ;;  %v3232_v43 = vadd.f32 %v2634_v41, %v964_v33  ;;  %v3234_v44 = vadd.f32 %v3080_v42, %v966_v34  ;;  %v3945_v28 = vadd.f32 (!%p5011_p1), %v3793_v52, %v3565_v18  ;;  %v3402_v33 = vld [vmem:[#allocation2 + $0x58] sm:$0xff] (!%p5011_p1)  ;;  %v3411_v18 = vld [vmem:[#allocation2 + $0xa0] sm:$0xff] (!%p5011_p1) }
 0x342   : > { %3383 = vst [vmem:[#allocation2 + $0x4a0] sm:$0xff] %v3231_v39  ;;  %3385 = vst [vmem:[#allocation2 + $0x4b0] sm:$0xff] %v3233_v40  ;;  %v3946_v29 = vadd.f32 (!%p5011_p1), %v3794_v53, %v3566_v19  ;;  %v3947_v30 = vadd.f32 (!%p5011_p1), %v3795_v55, %v3567_v20  ;;  %v3948_v31 = vadd.f32 (!%p5011_p1), %v3796_v56, %v3568_v21  ;;  %v3404_v39 = vld [vmem:[#allocation2 + $0x68] sm:$0xff] (!%p5011_p1)  ;;  %v3410_v12 = vld [vmem:[#allocation2 + $0x98] sm:$0xff] (!%p5011_p1) }
 0x343   : > { %3384 = vst [vmem:[#allocation2 + $0x4a8] sm:$0xff] %v3232_v43  ;;  %3386 = vst [vmem:[#allocation2 + $0x4b8] sm:$0xff] %v3234_v44  ;;  %v3949_v34 = vadd.f32 (!%p5011_p1), %v3797_v2, %v3569_v22  ;;  %v3950_v35 = vadd.f32 (!%p5011_p1), %v3798_v3, %v3570_v23  ;;  %v3951_v36 = vadd.f32 (!%p5011_p1), %v3799_v4, %v3571_v24  ;;  %v3723_v44 = vld [vmem:[%s6476_s6 + $0x30] sm:$0xff] (!%p5011_p1)  ;;  %v3807_v2 = vunpack.c.l.bf16 (!%p5011_p1), %v3724_v51  ;;  %v3412_v19 = vld [vmem:[#allocation2 + $0xa8] sm:$0xff] (!%p5011_p1) }
 0x344   : > { %v3952_v37 = vadd.f32 %v3800_v5, %v3572_v25  ;;  %v5095_v40 = vpack.c.bf16 %v3946_v29, %v3945_v28  ;;  %v5096_v41 = vpack.c.bf16 %v3948_v31, %v3947_v30  ;;  %v3573_v42 = vadd.f32 %v6848_v7, %v3399_v26  ;;  %v3409_v3 = vld [vmem:[#allocation2 + $0x90] sm:$0xff]  ;;  %v3414_v30 = vld [vmem:[#allocation2 + $0xb8] sm:$0xff] }
 0x345   : > { %v3574_v43 = vadd.f32 %v6850_v8, %v3400_v27  ;;  %v5097_v45 = vpack.c.bf16 %v3950_v35, %v3949_v34  ;;  %v3575_v47 = vadd.f32 %v6852_v9, %v3401_v32  ;;  %v3576_v48 = vadd.f32 %v6854_v10, %v3402_v33  ;;  %v3727_v24 = vld [vmem:[%s6476_s6 + $0x50] sm:$0xff]  ;;  %v3728_v31 = vld [vmem:[%s6476_s6 + $0x58] sm:$0xff] }
 0x346   : > { %v5098_v46 = vpack.c.bf16 %v3952_v37, %v3951_v36  ;;  %4553 = vst [vmem:[%s6478_s9] sm:$0xff] %v5095_v40  ;;  %4554 = vst [vmem:[%s6478_s9 + $0x8] sm:$0xff] %v5096_v41  ;;  %v3953_v52 = vadd.f32 %v3801_v14, %v3573_v42  ;;  %v3577_v54 = vadd.f32 %v6848_v7, %v3403_v38  ;;  %v3805_v58 = vunpack.c.l.bf16 %v3723_v44  ;;  %v3413_v29 = vld [vmem:[#allocation2 + $0xb0] sm:$0xff]  ;;  %v3415_v40 = vld [vmem:[#allocation2 + $0xc0] sm:$0xff] }
 0x347   : > { %v3954_v53 = vadd.f32 %v3802_v15, %v3574_v43  ;;  %v3578_v55 = vadd.f32 %v6850_v8, %v3404_v39  ;;  %4555 = vst [vmem:[%s6478_s9 + $0x10] sm:$0xff] %v5097_v45  ;;  %v3955_v56 = vadd.f32 %v3803_v16, %v3575_v47  ;;  %v3956_v57 = vadd.f32 %v3804_v17, %v3576_v48  ;;  %v3416_v41 = vld [vmem:[#allocation2 + $0xc8] sm:$0xff]  ;;  %v3729_v42 = vld [vmem:[%s6476_s6 + $0x60] sm:$0xff]  ;;  %v3417_v47 = vld [vmem:[#allocation2 + $0xd0] sm:$0xff] }
 0x348   : > { %4556 = vst [vmem:[%s6478_s9 + $0x18] sm:$0xff] %v5098_v46  ;;  %v3806_v59 = vunpack.c.h.bf16 %v3723_v44  ;;  %v3579_v0 = vadd.f32 %v6852_v9, %v3405_v49  ;;  %v3580_v1 = vadd.f32 %v6854_v10, %v3406_v50  ;;  %v3957_v5 = vadd.f32 %v3805_v58, %v3577_v54  ;;  %v3419_v58 = vld [vmem:[#allocation2 + $0xe0] sm:$0xff] }
 0x349   : > { %v5099_v63 = vpack.c.bf16 %v3954_v53, %v3953_v52  ;;  %v5100_v4 = vpack.c.bf16 %v3956_v57, %v3955_v56  ;;  %v3581_v15 = vadd.f32 %v6848_v7, %v3407_v60  ;;  %v3582_v16 = vadd.f32 %v6850_v8, %v3408_v61  ;;  %v3418_v52 = vld [vmem:[#allocation2 + $0xd8] sm:$0xff]  ;;  %v3730_v53 = vld [vmem:[%s6476_s6 + $0x68] sm:$0xff] }
 0x34a   : > { %v3958_v6 = vadd.f32 %v3806_v59, %v3578_v55  ;;  %v3959_v14 = vadd.f32 %v3807_v2, %v3579_v0  ;;  %v3809_v17 = vunpack.c.l.bf16 %v3725_v62  ;;  %v3960_v21 = vadd.f32 %v3808_v11, %v3580_v1  ;;  %v3420_v59 = vld [vmem:[#allocation2 + $0xe8] sm:$0xff]  ;;  %v3731_v0 = vld [vmem:[%s6476_s6 + $0x70] sm:$0xff]  ;;  %v3732_v11 = vld [vmem:[%s6476_s6 + $0x78] sm:$0xff] }
 0x34b   : > { %4557 = vst [vmem:[%s6478_s9 + $0x20] sm:$0xff] %v5099_v63  ;;  %4558 = vst [vmem:[%s6478_s9 + $0x28] sm:$0xff] %v5100_v4  ;;  %v3810_v22 = vunpack.c.h.bf16 %v3725_v62  ;;  %v3583_v23 = vadd.f32 %v6852_v9, %v3409_v3  ;;  %v3584_v26 = vadd.f32 %v6854_v10, %v3410_v12  ;;  %v3811_v27 = vunpack.c.l.bf16 %v3726_v13 }
 0x34c   : > { %v5101_v20 = vpack.c.bf16 %v3958_v6, %v3957_v5  ;;  %v3961_v25 = vadd.f32 %v3809_v17, %v3581_v15  ;;  %v3812_v28 = vunpack.c.h.bf16 %v3726_v13  ;;  %v5102_v32 = vpack.c.bf16 %v3960_v21, %v3959_v14  ;;  %v3421_v5 = vld [vmem:[#allocation2 + $0xf0] sm:$0xff]  ;;  %v3422_v6 = vld [vmem:[#allocation2 + $0xf8] sm:$0xff]  ;;  %v3424_v21 = vld [vmem:[#allocation2 + $0x108] sm:$0xff] }
 0x34d   : > { %v3962_v33 = vadd.f32 %v3810_v22, %v3582_v16  ;;  %v3585_v34 = vadd.f32 %v6848_v7, %v3411_v18  ;;  %v3586_v35 = vadd.f32 %v6850_v8, %v3412_v19  ;;  %v3963_v36 = vadd.f32 %v3811_v27, %v3583_v23  ;;  %v3733_v22 = vld [vmem:[%s6476_s6 + $0x80] sm:$0xff]  ;;  %v3425_v27 = vld [vmem:[#allocation2 + $0x110] sm:$0xff] }
 0x34e   : > { %4559 = vst [vmem:[%s6478_s9 + $0x30] sm:$0xff] %v5101_v20  ;;  %v3964_v37 = vadd.f32 %v3812_v28, %v3584_v26  ;;  %v3813_v38 = vunpack.c.l.bf16 %v3727_v24  ;;  %v3814_v39 = vunpack.c.h.bf16 %v3727_v24  ;;  %4560 = vst [vmem:[%s6478_s9 + $0x38] sm:$0xff] %v5102_v32  ;;  %v3587_v44 = vadd.f32 %v6852_v9, %v3413_v29  ;;  %v3423_v20 = vld [vmem:[#allocation2 + $0x100] sm:$0xff]  ;;  %v3426_v32 = vld [vmem:[#allocation2 + $0x118] sm:$0xff] }
 0x34f   : > { %v5103_v43 = vpack.c.bf16 %v3962_v33, %v3961_v25  ;;  %v3588_v45 = vadd.f32 %v6854_v10, %v3414_v30  ;;  %v3815_v46 = vunpack.c.l.bf16 %v3728_v31  ;;  %v3816_v51 = vunpack.c.h.bf16 %v3728_v31  ;;  %v3734_v33 = vld [vmem:[%s6476_s6 + $0x88] sm:$0xff] }
 0x350   : > { %v5104_v48 = vpack.c.bf16 %v3964_v37, %v3963_v36  ;;  %v3965_v49 = vadd.f32 %v3813_v38, %v3585_v34  ;;  %v3966_v50 = vadd.f32 %v3814_v39, %v3586_v35  ;;  %v3589_v55 = vadd.f32 %v6848_v7, %v3415_v40  ;;  %v3427_v38 = vld [vmem:[#allocation2 + $0x120] sm:$0xff]  ;;  %v3428_v39 = vld [vmem:[#allocation2 + $0x128] sm:$0xff] }
 0x351   : > { %4561 = vst [vmem:[%s6478_s9 + $0x40] sm:$0xff] %v5103_v43  ;;  %v3967_v54 = vadd.f32 %v3815_v46, %v3587_v44  ;;  %v3590_v56 = vadd.f32 %v6850_v8, %v3416_v41  ;;  %v3817_v57 = vunpack.c.l.bf16 %v3729_v42  ;;  %v3968_v61 = vadd.f32 %v3816_v51, %v3588_v45  ;;  %v3735_v44 = vld [vmem:[%s6476_s6 + $0x90] sm:$0xff]  ;;  %v3736_v51 = vld [vmem:[%s6476_s6 + $0x98] sm:$0xff] }
 0x352   : > { %4562 = vst [vmem:[%s6478_s9 + $0x48] sm:$0xff] %v5104_v48  ;;  %v5105_v60 = vpack.c.bf16 %v3966_v50, %v3965_v49  ;;  %v3818_v62 = vunpack.c.h.bf16 %v3729_v42  ;;  %v3591_v63 = vadd.f32 %v6852_v9, %v3417_v47  ;;  %v3592_v2 = vadd.f32 %v6854_v10, %v3418_v52  ;;  %v3429_v49 = vld [vmem:[#allocation2 + $0x130] sm:$0xff]  ;;  %v3430_v50 = vld [vmem:[#allocation2 + $0x138] sm:$0xff] }
 0x353   : > { %v3969_v1 = vadd.f32 %v3817_v57, %v3589_v55  ;;  %v3819_v3 = vunpack.c.l.bf16 %v3730_v53  ;;  %v3820_v4 = vunpack.c.h.bf16 %v3730_v53  ;;  %v5106_v12 = vpack.c.bf16 %v3968_v61, %v3967_v54  ;;  %v3432_v61 = vld [vmem:[#allocation2 + $0x148] sm:$0xff] }
 0x354   : > { %4563 = vst [vmem:[%s6478_s9 + $0x50] sm:$0xff] %v5105_v60  ;;  %v3970_v13 = vadd.f32 %v3818_v62, %v3590_v56  ;;  %v3593_v14 = vadd.f32 %v6848_v7, %v3419_v58  ;;  %v3594_v15 = vadd.f32 %v6850_v8, %v3420_v59  ;;  %v3821_v18 = vunpack.c.l.bf16 %v3731_v0  ;;  %v3431_v60 = vld [vmem:[#allocation2 + $0x140] sm:$0xff] }
 0x355   : > { %v3971_v16 = vadd.f32 %v3819_v3, %v3591_v63  ;;  %v3972_v17 = vadd.f32 %v3820_v4, %v3592_v2  ;;  %v3822_v19 = vunpack.c.h.bf16 %v3731_v0  ;;  %4564 = vst [vmem:[%s6478_s9 + $0x58] sm:$0xff] %v5106_v12  ;;  %v3595_v24 = vadd.f32 %v6852_v9, %v3421_v5  ;;  %v3737_v62 = vld [vmem:[%s6476_s6 + $0xa0] sm:$0xff]  ;;  %v3433_v3 = vld [vmem:[#allocation2 + $0x150] sm:$0xff]  ;;  %v3434_v12 = vld [vmem:[#allocation2 + $0x158] sm:$0xff] }
 0x356   : > { %v5107_v23 = vpack.c.bf16 %v3970_v13, %v3969_v1  ;;  %v3596_v25 = vadd.f32 %v6854_v10, %v3422_v6  ;;  %v3823_v26 = vunpack.c.l.bf16 %v3732_v11  ;;  %v3973_v29 = vadd.f32 %v3821_v18, %v3593_v14  ;;  %v3738_v13 = vld [vmem:[%s6476_s6 + $0xa8] sm:$0xff]  ;;  %v3435_v18 = vld [vmem:[#allocation2 + $0x160] sm:$0xff] }
 0x357   : > { %v5108_v28 = vpack.c.bf16 %v3972_v17, %v3971_v16  ;;  %v3974_v30 = vadd.f32 %v3822_v19, %v3594_v15  ;;  %v3824_v31 = vunpack.c.h.bf16 %v3732_v11  ;;  %v3597_v35 = vadd.f32 %v6848_v7, %v3423_v20  ;;  %v3436_v19 = vld [vmem:[#allocation2 + $0x168] sm:$0xff] }
 0x358   : > { %4565 = vst [vmem:[%s6478_s9 + $0x60] sm:$0xff] %v5107_v23  ;;  %v3975_v34 = vadd.f32 %v3823_v26, %v3595_v24  ;;  %v3598_v36 = vadd.f32 %v6850_v8, %v3424_v21  ;;  %v3825_v37 = vunpack.c.l.bf16 %v3733_v22  ;;  %v3826_v42 = vunpack.c.h.bf16 %v3733_v22  ;;  %v3739_v24 = vld [vmem:[%s6476_s6 + $0xb0] sm:$0xff] }
 0x359   : > { %4566 = vst [vmem:[%s6478_s9 + $0x68] sm:$0xff] %v5108_v28  ;;  %v5109_v40 = vpack.c.bf16 %v3974_v30, %v3973_v29  ;;  %v3976_v41 = vadd.f32 %v3824_v31, %v3596_v25  ;;  %v3599_v43 = vadd.f32 %v6852_v9, %v3425_v27  ;;  %v3600_v46 = vadd.f32 %v6854_v10, %v3426_v32  ;;  %v3437_v29 = vld [vmem:[#allocation2 + $0x170] sm:$0xff]  ;;  %v3438_v30 = vld [vmem:[#allocation2 + $0x178] sm:$0xff] }
 0x35a   : > { %v3977_v45 = vadd.f32 %v3825_v37, %v3597_v35  ;;  %v3827_v47 = vunpack.c.l.bf16 %v3734_v33  ;;  %v3828_v48 = vunpack.c.h.bf16 %v3734_v33  ;;  %v3978_v53 = vadd.f32 %v3826_v42, %v3598_v36  ;;  %v3740_v31 = vld [vmem:[%s6476_s6 + $0xb8] sm:$0xff]  ;;  %v3741_v42 = vld [vmem:[%s6476_s6 + $0xc0] sm:$0xff] }
 0x35b   : > { %4567 = vst [vmem:[%s6478_s9 + $0x70] sm:$0xff] %v5109_v40  ;;  %v5110_v52 = vpack.c.bf16 %v3976_v41, %v3975_v34  ;;  %v3601_v54 = vadd.f32 %v6848_v7, %v3427_v38  ;;  %v3602_v55 = vadd.f32 %v6850_v8, %v3428_v39  ;;  %v3829_v58 = vunpack.c.l.bf16 %v3735_v44  ;;  %v3439_v40 = vld [vmem:[#allocation2 + $0x180] sm:$0xff]  ;;  %v3440_v41 = vld [vmem:[#allocation2 + $0x188] sm:$0xff] }
 0x35c   : > { %v3979_v56 = vadd.f32 %v3827_v47, %v3599_v43  ;;  %v3980_v57 = vadd.f32 %v3828_v48, %v3600_v46  ;;  %v3830_v59 = vunpack.c.h.bf16 %v3735_v44  ;;  %v5111_v63 = vpack.c.bf16 %v3978_v53, %v3977_v45  ;;  %v3441_v47 = vld [vmem:[#allocation2 + $0x190] sm:$0xff]  ;;  %v3742_v53 = vld [vmem:[%s6476_s6 + $0xc8] sm:$0xff] }
 0x35d   : > { %4568 = vst [vmem:[%s6478_s9 + $0x78] sm:$0xff] %v5110_v52  ;;  %v3603_v0 = vadd.f32 %v6852_v9, %v3429_v49  ;;  %v3604_v1 = vadd.f32 %v6854_v10, %v3430_v50  ;;  %v3831_v2 = vunpack.c.l.bf16 %v3736_v51  ;;  %v3981_v5 = vadd.f32 %v3829_v58, %v3601_v54  ;;  %v3442_v52 = vld [vmem:[#allocation2 + $0x198] sm:$0xff]  ;;  %v3443_v58 = vld [vmem:[#allocation2 + $0x1a0] sm:$0xff] }
 0x35e   : > { %v5112_v4 = vpack.c.bf16 %v3980_v57, %v3979_v56  ;;  %v3982_v6 = vadd.f32 %v3830_v59, %v3602_v55  ;;  %v3832_v11 = vunpack.c.h.bf16 %v3736_v51  ;;  %4569 = vst [vmem:[%s6478_s9 + $0x80] sm:$0xff] %v5111_v63  ;;  %v3605_v15 = vadd.f32 %v6848_v7, %v3431_v60  ;;  %v3444_v59 = vld [vmem:[#allocation2 + $0x1a8] sm:$0xff] }
 0x35f   : > { %v3983_v14 = vadd.f32 %v3831_v2, %v3603_v0  ;;  %v3606_v16 = vadd.f32 %v6850_v8, %v3432_v61  ;;  %v3833_v17 = vunpack.c.l.bf16 %v3737_v62  ;;  %v3834_v22 = vunpack.c.h.bf16 %v3737_v62  ;;  %v3743_v0 = vld [vmem:[%s6476_s6 + $0xd0] sm:$0xff] }
 0x360   : > { %4570 = vst [vmem:[%s6478_s9 + $0x88] sm:$0xff] %v5112_v4  ;;  %v5113_v20 = vpack.c.bf16 %v3982_v6, %v3981_v5  ;;  %v3984_v21 = vadd.f32 %v3832_v11, %v3604_v1  ;;  %v3607_v23 = vadd.f32 %v6852_v9, %v3433_v3  ;;  %v3608_v26 = vadd.f32 %v6854_v10, %v3434_v12  ;;  %v3445_v5 = vld [vmem:[#allocation2 + $0x1b0] sm:$0xff]  ;;  %v3446_v6 = vld [vmem:[#allocation2 + $0x1b8] sm:$0xff] }
 0x361   : > { %v3985_v25 = vadd.f32 %v3833_v17, %v3605_v15  ;;  %v3835_v27 = vunpack.c.l.bf16 %v3738_v13  ;;  %v3836_v28 = vunpack.c.h.bf16 %v3738_v13  ;;  %v3986_v33 = vadd.f32 %v3834_v22, %v3606_v16  ;;  %v3744_v11 = vld [vmem:[%s6476_s6 + $0xd8] sm:$0xff]  ;;  %v3745_v22 = vld [vmem:[%s6476_s6 + $0xe0] sm:$0xff] }
 0x362   : > { %4571 = vst [vmem:[%s6478_s9 + $0x90] sm:$0xff] %v5113_v20  ;;  %v5114_v32 = vpack.c.bf16 %v3984_v21, %v3983_v14  ;;  %v3609_v34 = vadd.f32 %v6848_v7, %v3435_v18  ;;  %v3610_v35 = vadd.f32 %v6850_v8, %v3436_v19  ;;  %v3837_v38 = vunpack.c.l.bf16 %v3739_v24  ;;  %v3447_v20 = vld [vmem:[#allocation2 + $0x1c0] sm:$0xff]  ;;  %v3448_v21 = vld [vmem:[#allocation2 + $0x1c8] sm:$0xff] }
 0x363   : > { %v3987_v36 = vadd.f32 %v3835_v27, %v3607_v23  ;;  %v3988_v37 = vadd.f32 %v3836_v28, %v3608_v26  ;;  %v3838_v39 = vunpack.c.h.bf16 %v3739_v24  ;;  %v5115_v43 = vpack.c.bf16 %v3986_v33, %v3985_v25  ;;  %v3449_v27 = vld [vmem:[#allocation2 + $0x1d0] sm:$0xff]  ;;  %v3746_v33 = vld [vmem:[%s6476_s6 + $0xe8] sm:$0xff] }
 0x364   : > { %4572 = vst [vmem:[%s6478_s9 + $0x98] sm:$0xff] %v5114_v32  ;;  %v3611_v44 = vadd.f32 %v6852_v9, %v3437_v29  ;;  %v3612_v45 = vadd.f32 %v6854_v10, %v3438_v30  ;;  %v3839_v46 = vunpack.c.l.bf16 %v3740_v31  ;;  %v3989_v49 = vadd.f32 %v3837_v38, %v3609_v34  ;;  %v3450_v32 = vld [vmem:[#allocation2 + $0x1d8] sm:$0xff]  ;;  %v3451_v38 = vld [vmem:[#allocation2 + $0x1e0] sm:$0xff] }
 0x365   : > { %v5116_v48 = vpack.c.bf16 %v3988_v37, %v3987_v36  ;;  %v3990_v50 = vadd.f32 %v3838_v39, %v3610_v35  ;;  %v3840_v51 = vunpack.c.h.bf16 %v3740_v31  ;;  %4573 = vst [vmem:[%s6478_s9 + $0xa0] sm:$0xff] %v5115_v43  ;;  %v3613_v55 = vadd.f32 %v6848_v7, %v3439_v40  ;;  %v3452_v39 = vld [vmem:[#allocation2 + $0x1e8] sm:$0xff] }
 0x366   : > { %v3991_v54 = vadd.f32 %v3839_v46, %v3611_v44  ;;  %v3614_v56 = vadd.f32 %v6850_v8, %v3440_v41  ;;  %v3841_v57 = vunpack.c.l.bf16 %v3741_v42  ;;  %v3842_v62 = vunpack.c.h.bf16 %v3741_v42  ;;  %v3747_v44 = vld [vmem:[%s6476_s6 + $0xf0] sm:$0xff] }
 0x367   : > { %4574 = vst [vmem:[%s6478_s9 + $0xa8] sm:$0xff] %v5116_v48  ;;  %v5117_v60 = vpack.c.bf16 %v3990_v50, %v3989_v49  ;;  %v3992_v61 = vadd.f32 %v3840_v51, %v3612_v45  ;;  %v3615_v63 = vadd.f32 %v6852_v9, %v3441_v47  ;;  %v3616_v2 = vadd.f32 %v6854_v10, %v3442_v52  ;;  %v3453_v49 = vld [vmem:[#allocation2 + $0x1f0] sm:$0xff]  ;;  %v3454_v50 = vld [vmem:[#allocation2 + $0x1f8] sm:$0xff] }
 0x368   : > { %v3993_v1 = vadd.f32 %v3841_v57, %v3613_v55  ;;  %v3843_v3 = vunpack.c.l.bf16 %v3742_v53  ;;  %v3844_v4 = vunpack.c.h.bf16 %v3742_v53  ;;  %v3994_v13 = vadd.f32 %v3842_v62, %v3614_v56  ;;  %v3748_v51 = vld [vmem:[%s6476_s6 + $0xf8] sm:$0xff]  ;;  %v3749_v62 = vld [vmem:[%s6476_s6 + $0x100] sm:$0xff] }
 0x369   : > { %4575 = vst [vmem:[%s6478_s9 + $0xb0] sm:$0xff] %v5117_v60  ;;  %v5118_v12 = vpack.c.bf16 %v3992_v61, %v3991_v54  ;;  %v3617_v14 = vadd.f32 %v6848_v7, %v3443_v58  ;;  %v3618_v15 = vadd.f32 %v6850_v8, %v3444_v59  ;;  %v3845_v18 = vunpack.c.l.bf16 %v3743_v0  ;;  %v3455_v60 = vld [vmem:[#allocation2 + $0x200] sm:$0xff]  ;;  %v3456_v61 = vld [vmem:[#allocation2 + $0x208] sm:$0xff] }
 0x36a   : > { %v3995_v16 = vadd.f32 %v3843_v3, %v3615_v63  ;;  %v3996_v17 = vadd.f32 %v3844_v4, %v3616_v2  ;;  %v3846_v19 = vunpack.c.h.bf16 %v3743_v0  ;;  %v5119_v23 = vpack.c.bf16 %v3994_v13, %v3993_v1  ;;  %v3457_v3 = vld [vmem:[#allocation2 + $0x210] sm:$0xff]  ;;  %v3750_v13 = vld [vmem:[%s6476_s6 + $0x108] sm:$0xff] }
 0x36b   : > { %4576 = vst [vmem:[%s6478_s9 + $0xb8] sm:$0xff] %v5118_v12  ;;  %v3619_v24 = vadd.f32 %v6852_v9, %v3445_v5  ;;  %v3620_v25 = vadd.f32 %v6854_v10, %v3446_v6  ;;  %v3847_v26 = vunpack.c.l.bf16 %v3744_v11  ;;  %v3997_v29 = vadd.f32 %v3845_v18, %v3617_v14  ;;  %v3458_v12 = vld [vmem:[#allocation2 + $0x218] sm:$0xff]  ;;  %v3459_v18 = vld [vmem:[#allocation2 + $0x220] sm:$0xff] }
 0x36c   : > { %v5120_v28 = vpack.c.bf16 %v3996_v17, %v3995_v16  ;;  %v3998_v30 = vadd.f32 %v3846_v19, %v3618_v15  ;;  %v3848_v31 = vunpack.c.h.bf16 %v3744_v11  ;;  %4577 = vst [vmem:[%s6478_s9 + $0xc0] sm:$0xff] %v5119_v23  ;;  %v3621_v35 = vadd.f32 %v6848_v7, %v3447_v20  ;;  %v3460_v19 = vld [vmem:[#allocation2 + $0x228] sm:$0xff] }
 0x36d   : > { %v3999_v34 = vadd.f32 %v3847_v26, %v3619_v24  ;;  %v3622_v36 = vadd.f32 %v6850_v8, %v3448_v21  ;;  %v3849_v37 = vunpack.c.l.bf16 %v3745_v22  ;;  %v3850_v42 = vunpack.c.h.bf16 %v3745_v22  ;;  %v3751_v24 = vld [vmem:[%s6476_s6 + $0x110] sm:$0xff] }
 0x36e   : > { %4578 = vst [vmem:[%s6478_s9 + $0xc8] sm:$0xff] %v5120_v28  ;;  %v5121_v40 = vpack.c.bf16 %v3998_v30, %v3997_v29  ;;  %v4000_v41 = vadd.f32 %v3848_v31, %v3620_v25  ;;  %v3623_v43 = vadd.f32 %v6852_v9, %v3449_v27  ;;  %v3624_v46 = vadd.f32 %v6854_v10, %v3450_v32  ;;  %v3461_v29 = vld [vmem:[#allocation2 + $0x230] sm:$0xff]  ;;  %v3462_v30 = vld [vmem:[#allocation2 + $0x238] sm:$0xff] }
 0x36f   : > { %v4001_v45 = vadd.f32 %v3849_v37, %v3621_v35  ;;  %v3851_v47 = vunpack.c.l.bf16 %v3746_v33  ;;  %v3852_v48 = vunpack.c.h.bf16 %v3746_v33  ;;  %v4002_v53 = vadd.f32 %v3850_v42, %v3622_v36  ;;  %v3752_v31 = vld [vmem:[%s6476_s6 + $0x118] sm:$0xff]  ;;  %v3753_v42 = vld [vmem:[%s6476_s6 + $0x120] sm:$0xff] }
 0x370   : > { %4579 = vst [vmem:[%s6478_s9 + $0xd0] sm:$0xff] %v5121_v40  ;;  %v5122_v52 = vpack.c.bf16 %v4000_v41, %v3999_v34  ;;  %v3625_v54 = vadd.f32 %v6848_v7, %v3451_v38  ;;  %v3626_v55 = vadd.f32 %v6850_v8, %v3452_v39  ;;  %v3853_v58 = vunpack.c.l.bf16 %v3747_v44  ;;  %v3463_v40 = vld [vmem:[#allocation2 + $0x240] sm:$0xff]  ;;  %v3464_v41 = vld [vmem:[#allocation2 + $0x248] sm:$0xff] }
 0x371   : > { %v4003_v56 = vadd.f32 %v3851_v47, %v3623_v43  ;;  %v4004_v57 = vadd.f32 %v3852_v48, %v3624_v46  ;;  %v3854_v59 = vunpack.c.h.bf16 %v3747_v44  ;;  %v5123_v63 = vpack.c.bf16 %v4002_v53, %v4001_v45  ;;  %v3465_v47 = vld [vmem:[#allocation2 + $0x250] sm:$0xff]  ;;  %v3754_v53 = vld [vmem:[%s6476_s6 + $0x128] sm:$0xff] }
 0x372   : > { %4580 = vst [vmem:[%s6478_s9 + $0xd8] sm:$0xff] %v5122_v52  ;;  %v3627_v0 = vadd.f32 %v6852_v9, %v3453_v49  ;;  %v3628_v1 = vadd.f32 %v6854_v10, %v3454_v50  ;;  %v3855_v2 = vunpack.c.l.bf16 %v3748_v51  ;;  %v4005_v5 = vadd.f32 %v3853_v58, %v3625_v54  ;;  %v3466_v52 = vld [vmem:[#allocation2 + $0x258] sm:$0xff]  ;;  %v3467_v58 = vld [vmem:[#allocation2 + $0x260] sm:$0xff] }
 0x373   : > { %v5124_v4 = vpack.c.bf16 %v4004_v57, %v4003_v56  ;;  %v4006_v6 = vadd.f32 %v3854_v59, %v3626_v55  ;;  %v3856_v11 = vunpack.c.h.bf16 %v3748_v51  ;;  %4581 = vst [vmem:[%s6478_s9 + $0xe0] sm:$0xff] %v5123_v63  ;;  %v3629_v15 = vadd.f32 %v6848_v7, %v3455_v60  ;;  %v3468_v59 = vld [vmem:[#allocation2 + $0x268] sm:$0xff] }
 0x374   : > { %v4007_v14 = vadd.f32 %v3855_v2, %v3627_v0  ;;  %v3630_v16 = vadd.f32 %v6850_v8, %v3456_v61  ;;  %v3857_v17 = vunpack.c.l.bf16 %v3749_v62  ;;  %v3858_v22 = vunpack.c.h.bf16 %v3749_v62  ;;  %v3755_v0 = vld [vmem:[%s6476_s6 + $0x130] sm:$0xff] }
 0x375   : > { %4582 = vst [vmem:[%s6478_s9 + $0xe8] sm:$0xff] %v5124_v4  ;;  %v5125_v20 = vpack.c.bf16 %v4006_v6, %v4005_v5  ;;  %v4008_v21 = vadd.f32 %v3856_v11, %v3628_v1  ;;  %v3631_v23 = vadd.f32 %v6852_v9, %v3457_v3  ;;  %v3632_v26 = vadd.f32 %v6854_v10, %v3458_v12  ;;  %v3469_v5 = vld [vmem:[#allocation2 + $0x270] sm:$0xff]  ;;  %v3470_v6 = vld [vmem:[#allocation2 + $0x278] sm:$0xff] }
 0x376   : > { %v4009_v25 = vadd.f32 %v3857_v17, %v3629_v15  ;;  %v3859_v27 = vunpack.c.l.bf16 %v3750_v13  ;;  %v3860_v28 = vunpack.c.h.bf16 %v3750_v13  ;;  %v4010_v33 = vadd.f32 %v3858_v22, %v3630_v16  ;;  %v3756_v11 = vld [vmem:[%s6476_s6 + $0x138] sm:$0xff]  ;;  %v3757_v22 = vld [vmem:[%s6476_s6 + $0x140] sm:$0xff] }
 0x377   : > { %4583 = vst [vmem:[%s6478_s9 + $0xf0] sm:$0xff] %v5125_v20  ;;  %v5126_v32 = vpack.c.bf16 %v4008_v21, %v4007_v14  ;;  %v3633_v34 = vadd.f32 %v6848_v7, %v3459_v18  ;;  %v3634_v35 = vadd.f32 %v6850_v8, %v3460_v19  ;;  %v3861_v38 = vunpack.c.l.bf16 %v3751_v24  ;;  %v3471_v20 = vld [vmem:[#allocation2 + $0x280] sm:$0xff]  ;;  %v3472_v21 = vld [vmem:[#allocation2 + $0x288] sm:$0xff] }
 0x378   : > { %v4011_v36 = vadd.f32 %v3859_v27, %v3631_v23  ;;  %v4012_v37 = vadd.f32 %v3860_v28, %v3632_v26  ;;  %v3862_v39 = vunpack.c.h.bf16 %v3751_v24  ;;  %v5127_v43 = vpack.c.bf16 %v4010_v33, %v4009_v25  ;;  %v3473_v27 = vld [vmem:[#allocation2 + $0x290] sm:$0xff]  ;;  %v3758_v33 = vld [vmem:[%s6476_s6 + $0x148] sm:$0xff] }
 0x379   : > { %4584 = vst [vmem:[%s6478_s9 + $0xf8] sm:$0xff] %v5126_v32  ;;  %v3635_v44 = vadd.f32 %v6852_v9, %v3461_v29  ;;  %v3636_v45 = vadd.f32 %v6854_v10, %v3462_v30  ;;  %v3863_v46 = vunpack.c.l.bf16 %v3752_v31  ;;  %v4013_v49 = vadd.f32 %v3861_v38, %v3633_v34  ;;  %v3474_v32 = vld [vmem:[#allocation2 + $0x298] sm:$0xff]  ;;  %v3475_v38 = vld [vmem:[#allocation2 + $0x2a0] sm:$0xff] }
 0x37a   : > { %v5128_v48 = vpack.c.bf16 %v4012_v37, %v4011_v36  ;;  %v4014_v50 = vadd.f32 %v3862_v39, %v3634_v35  ;;  %v3864_v51 = vunpack.c.h.bf16 %v3752_v31  ;;  %4585 = vst [vmem:[%s6478_s9 + $0x100] sm:$0xff] %v5127_v43  ;;  %v3637_v55 = vadd.f32 %v6848_v7, %v3463_v40  ;;  %v3476_v39 = vld [vmem:[#allocation2 + $0x2a8] sm:$0xff] }
 0x37b   : > { %v4015_v54 = vadd.f32 %v3863_v46, %v3635_v44  ;;  %v3638_v56 = vadd.f32 %v6850_v8, %v3464_v41  ;;  %v3865_v57 = vunpack.c.l.bf16 %v3753_v42  ;;  %v3866_v62 = vunpack.c.h.bf16 %v3753_v42  ;;  %v3759_v44 = vld [vmem:[%s6476_s6 + $0x150] sm:$0xff] }
 0x37c   : > { %4586 = vst [vmem:[%s6478_s9 + $0x108] sm:$0xff] %v5128_v48  ;;  %v5129_v60 = vpack.c.bf16 %v4014_v50, %v4013_v49  ;;  %v4016_v61 = vadd.f32 %v3864_v51, %v3636_v45  ;;  %v3639_v63 = vadd.f32 %v6852_v9, %v3465_v47  ;;  %v3640_v2 = vadd.f32 %v6854_v10, %v3466_v52  ;;  %v3477_v49 = vld [vmem:[#allocation2 + $0x2b0] sm:$0xff]  ;;  %v3478_v50 = vld [vmem:[#allocation2 + $0x2b8] sm:$0xff] }
 0x37d   : > { %v4017_v1 = vadd.f32 %v3865_v57, %v3637_v55  ;;  %v3867_v3 = vunpack.c.l.bf16 %v3754_v53  ;;  %v3868_v4 = vunpack.c.h.bf16 %v3754_v53  ;;  %v4018_v13 = vadd.f32 %v3866_v62, %v3638_v56  ;;  %v3760_v51 = vld [vmem:[%s6476_s6 + $0x158] sm:$0xff]  ;;  %v3761_v62 = vld [vmem:[%s6476_s6 + $0x160] sm:$0xff] }
 0x37e   : > { %4587 = vst [vmem:[%s6478_s9 + $0x110] sm:$0xff] %v5129_v60  ;;  %v5130_v12 = vpack.c.bf16 %v4016_v61, %v4015_v54  ;;  %v3641_v14 = vadd.f32 %v6848_v7, %v3467_v58  ;;  %v3642_v15 = vadd.f32 %v6850_v8, %v3468_v59  ;;  %v3869_v18 = vunpack.c.l.bf16 %v3755_v0  ;;  %v3479_v60 = vld [vmem:[#allocation2 + $0x2c0] sm:$0xff]  ;;  %v3480_v61 = vld [vmem:[#allocation2 + $0x2c8] sm:$0xff] }
 0x37f   : > { %v4019_v16 = vadd.f32 %v3867_v3, %v3639_v63  ;;  %v4020_v17 = vadd.f32 %v3868_v4, %v3640_v2  ;;  %v3870_v19 = vunpack.c.h.bf16 %v3755_v0  ;;  %v5131_v23 = vpack.c.bf16 %v4018_v13, %v4017_v1  ;;  %v3481_v3 = vld [vmem:[#allocation2 + $0x2d0] sm:$0xff]  ;;  %v3762_v13 = vld [vmem:[%s6476_s6 + $0x168] sm:$0xff] }
 0x380   : > { %4588 = vst [vmem:[%s6478_s9 + $0x118] sm:$0xff] %v5130_v12  ;;  %v3643_v24 = vadd.f32 %v6852_v9, %v3469_v5  ;;  %v3644_v25 = vadd.f32 %v6854_v10, %v3470_v6  ;;  %v3871_v26 = vunpack.c.l.bf16 %v3756_v11  ;;  %v4021_v29 = vadd.f32 %v3869_v18, %v3641_v14  ;;  %v3482_v12 = vld [vmem:[#allocation2 + $0x2d8] sm:$0xff]  ;;  %v3483_v18 = vld [vmem:[#allocation2 + $0x2e0] sm:$0xff] }
 0x381   : > { %v5132_v28 = vpack.c.bf16 %v4020_v17, %v4019_v16  ;;  %v4022_v30 = vadd.f32 %v3870_v19, %v3642_v15  ;;  %v3872_v31 = vunpack.c.h.bf16 %v3756_v11  ;;  %4589 = vst [vmem:[%s6478_s9 + $0x120] sm:$0xff] %v5131_v23  ;;  %v3645_v35 = vadd.f32 %v6848_v7, %v3471_v20  ;;  %v3484_v19 = vld [vmem:[#allocation2 + $0x2e8] sm:$0xff] }
 0x382   : > { %v4023_v34 = vadd.f32 %v3871_v26, %v3643_v24  ;;  %v3646_v36 = vadd.f32 %v6850_v8, %v3472_v21  ;;  %v3873_v37 = vunpack.c.l.bf16 %v3757_v22  ;;  %v3874_v42 = vunpack.c.h.bf16 %v3757_v22  ;;  %v3763_v24 = vld [vmem:[%s6476_s6 + $0x170] sm:$0xff] }
 0x383   : > { %4590 = vst [vmem:[%s6478_s9 + $0x128] sm:$0xff] %v5132_v28  ;;  %v5133_v40 = vpack.c.bf16 %v4022_v30, %v4021_v29  ;;  %v4024_v41 = vadd.f32 %v3872_v31, %v3644_v25  ;;  %v3647_v43 = vadd.f32 %v6852_v9, %v3473_v27  ;;  %v3648_v46 = vadd.f32 %v6854_v10, %v3474_v32  ;;  %v3485_v29 = vld [vmem:[#allocation2 + $0x2f0] sm:$0xff]  ;;  %v3486_v30 = vld [vmem:[#allocation2 + $0x2f8] sm:$0xff] }
 0x384   : > { %v4025_v45 = vadd.f32 %v3873_v37, %v3645_v35  ;;  %v3875_v47 = vunpack.c.l.bf16 %v3758_v33  ;;  %v3876_v48 = vunpack.c.h.bf16 %v3758_v33  ;;  %v4026_v53 = vadd.f32 %v3874_v42, %v3646_v36  ;;  %v3764_v31 = vld [vmem:[%s6476_s6 + $0x178] sm:$0xff]  ;;  %v3765_v42 = vld [vmem:[%s6476_s6 + $0x180] sm:$0xff] }
 0x385   : > { %4591 = vst [vmem:[%s6478_s9 + $0x130] sm:$0xff] %v5133_v40  ;;  %v5134_v52 = vpack.c.bf16 %v4024_v41, %v4023_v34  ;;  %v3649_v54 = vadd.f32 %v6848_v7, %v3475_v38  ;;  %v3650_v55 = vadd.f32 %v6850_v8, %v3476_v39  ;;  %v3877_v58 = vunpack.c.l.bf16 %v3759_v44  ;;  %v3487_v40 = vld [vmem:[#allocation2 + $0x300] sm:$0xff]  ;;  %v3488_v41 = vld [vmem:[#allocation2 + $0x308] sm:$0xff] }
 0x386   : > { %v4027_v56 = vadd.f32 %v3875_v47, %v3647_v43  ;;  %v4028_v57 = vadd.f32 %v3876_v48, %v3648_v46  ;;  %v3878_v59 = vunpack.c.h.bf16 %v3759_v44  ;;  %v5135_v63 = vpack.c.bf16 %v4026_v53, %v4025_v45  ;;  %v3489_v47 = vld [vmem:[#allocation2 + $0x310] sm:$0xff]  ;;  %v3766_v53 = vld [vmem:[%s6476_s6 + $0x188] sm:$0xff] }
 0x387   : > { %4592 = vst [vmem:[%s6478_s9 + $0x138] sm:$0xff] %v5134_v52  ;;  %v3651_v0 = vadd.f32 %v6852_v9, %v3477_v49  ;;  %v3652_v1 = vadd.f32 %v6854_v10, %v3478_v50  ;;  %v3879_v2 = vunpack.c.l.bf16 %v3760_v51  ;;  %v4029_v5 = vadd.f32 %v3877_v58, %v3649_v54  ;;  %v3490_v52 = vld [vmem:[#allocation2 + $0x318] sm:$0xff]  ;;  %v3491_v58 = vld [vmem:[#allocation2 + $0x320] sm:$0xff] }
 0x388   : > { %v5136_v4 = vpack.c.bf16 %v4028_v57, %v4027_v56  ;;  %v4030_v6 = vadd.f32 %v3878_v59, %v3650_v55  ;;  %v3880_v11 = vunpack.c.h.bf16 %v3760_v51  ;;  %4593 = vst [vmem:[%s6478_s9 + $0x140] sm:$0xff] %v5135_v63  ;;  %v3653_v15 = vadd.f32 %v6848_v7, %v3479_v60  ;;  %v3492_v59 = vld [vmem:[#allocation2 + $0x328] sm:$0xff] }
 0x389   : > { %v4031_v14 = vadd.f32 %v3879_v2, %v3651_v0  ;;  %v3654_v16 = vadd.f32 %v6850_v8, %v3480_v61  ;;  %v3881_v17 = vunpack.c.l.bf16 %v3761_v62  ;;  %v3882_v22 = vunpack.c.h.bf16 %v3761_v62  ;;  %v3767_v0 = vld [vmem:[%s6476_s6 + $0x190] sm:$0xff] }
 0x38a   : > { %4594 = vst [vmem:[%s6478_s9 + $0x148] sm:$0xff] %v5136_v4  ;;  %v5137_v20 = vpack.c.bf16 %v4030_v6, %v4029_v5  ;;  %v4032_v21 = vadd.f32 %v3880_v11, %v3652_v1  ;;  %v3655_v23 = vadd.f32 %v6852_v9, %v3481_v3  ;;  %v3656_v26 = vadd.f32 %v6854_v10, %v3482_v12  ;;  %v3493_v5 = vld [vmem:[#allocation2 + $0x330] sm:$0xff]  ;;  %v3494_v6 = vld [vmem:[#allocation2 + $0x338] sm:$0xff] }
 0x38b   : > { %v4033_v25 = vadd.f32 %v3881_v17, %v3653_v15  ;;  %v3883_v27 = vunpack.c.l.bf16 %v3762_v13  ;;  %v3884_v28 = vunpack.c.h.bf16 %v3762_v13  ;;  %v4034_v33 = vadd.f32 %v3882_v22, %v3654_v16  ;;  %v3768_v11 = vld [vmem:[%s6476_s6 + $0x198] sm:$0xff]  ;;  %v3769_v22 = vld [vmem:[%s6476_s6 + $0x1a0] sm:$0xff] }
 0x38c   : > { %4595 = vst [vmem:[%s6478_s9 + $0x150] sm:$0xff] %v5137_v20  ;;  %v5138_v32 = vpack.c.bf16 %v4032_v21, %v4031_v14  ;;  %v3657_v34 = vadd.f32 %v6848_v7, %v3483_v18  ;;  %v3658_v35 = vadd.f32 %v6850_v8, %v3484_v19  ;;  %v3885_v38 = vunpack.c.l.bf16 %v3763_v24  ;;  %v3495_v20 = vld [vmem:[#allocation2 + $0x340] sm:$0xff]  ;;  %v3496_v21 = vld [vmem:[#allocation2 + $0x348] sm:$0xff] }
 0x38d   : > { %v4035_v36 = vadd.f32 %v3883_v27, %v3655_v23  ;;  %v4036_v37 = vadd.f32 %v3884_v28, %v3656_v26  ;;  %v3886_v39 = vunpack.c.h.bf16 %v3763_v24  ;;  %v5139_v43 = vpack.c.bf16 %v4034_v33, %v4033_v25  ;;  %v3497_v27 = vld [vmem:[#allocation2 + $0x350] sm:$0xff]  ;;  %v3770_v33 = vld [vmem:[%s6476_s6 + $0x1a8] sm:$0xff] }
 0x38e   : > { %4596 = vst [vmem:[%s6478_s9 + $0x158] sm:$0xff] %v5138_v32  ;;  %v3659_v44 = vadd.f32 %v6852_v9, %v3485_v29  ;;  %v3660_v45 = vadd.f32 %v6854_v10, %v3486_v30  ;;  %v3887_v46 = vunpack.c.l.bf16 %v3764_v31  ;;  %v4037_v49 = vadd.f32 %v3885_v38, %v3657_v34  ;;  %v3498_v32 = vld [vmem:[#allocation2 + $0x358] sm:$0xff]  ;;  %v3499_v38 = vld [vmem:[#allocation2 + $0x360] sm:$0xff] }
 0x38f   : > { %v5140_v48 = vpack.c.bf16 %v4036_v37, %v4035_v36  ;;  %v4038_v50 = vadd.f32 %v3886_v39, %v3658_v35  ;;  %v3888_v51 = vunpack.c.h.bf16 %v3764_v31  ;;  %4597 = vst [vmem:[%s6478_s9 + $0x160] sm:$0xff] %v5139_v43  ;;  %v3661_v55 = vadd.f32 %v6848_v7, %v3487_v40  ;;  %v3500_v39 = vld [vmem:[#allocation2 + $0x368] sm:$0xff] }
 0x390   : > { %v4039_v54 = vadd.f32 %v3887_v46, %v3659_v44  ;;  %v3662_v56 = vadd.f32 %v6850_v8, %v3488_v41  ;;  %v3889_v57 = vunpack.c.l.bf16 %v3765_v42  ;;  %v3890_v62 = vunpack.c.h.bf16 %v3765_v42  ;;  %v3771_v44 = vld [vmem:[%s6476_s6 + $0x1b0] sm:$0xff] }
 0x391   : > { %4598 = vst [vmem:[%s6478_s9 + $0x168] sm:$0xff] %v5140_v48  ;;  %v5141_v60 = vpack.c.bf16 %v4038_v50, %v4037_v49  ;;  %v4040_v61 = vadd.f32 %v3888_v51, %v3660_v45  ;;  %v3663_v63 = vadd.f32 %v6852_v9, %v3489_v47  ;;  %v3664_v2 = vadd.f32 %v6854_v10, %v3490_v52  ;;  %v3501_v49 = vld [vmem:[#allocation2 + $0x370] sm:$0xff]  ;;  %v3502_v50 = vld [vmem:[#allocation2 + $0x378] sm:$0xff] }
 0x392   : > { %v4041_v1 = vadd.f32 %v3889_v57, %v3661_v55  ;;  %v3891_v3 = vunpack.c.l.bf16 %v3766_v53  ;;  %v3892_v4 = vunpack.c.h.bf16 %v3766_v53  ;;  %v4042_v13 = vadd.f32 %v3890_v62, %v3662_v56  ;;  %v3772_v51 = vld [vmem:[%s6476_s6 + $0x1b8] sm:$0xff]  ;;  %v3773_v62 = vld [vmem:[%s6476_s6 + $0x1c0] sm:$0xff] }
 0x393   : > { %4599 = vst [vmem:[%s6478_s9 + $0x170] sm:$0xff] %v5141_v60  ;;  %v5142_v12 = vpack.c.bf16 %v4040_v61, %v4039_v54  ;;  %v3665_v14 = vadd.f32 %v6848_v7, %v3491_v58  ;;  %v3666_v15 = vadd.f32 %v6850_v8, %v3492_v59  ;;  %v3893_v18 = vunpack.c.l.bf16 %v3767_v0  ;;  %v3503_v60 = vld [vmem:[#allocation2 + $0x380] sm:$0xff]  ;;  %v3504_v61 = vld [vmem:[#allocation2 + $0x388] sm:$0xff] }
 0x394   : > { %v4043_v16 = vadd.f32 %v3891_v3, %v3663_v63  ;;  %v4044_v17 = vadd.f32 %v3892_v4, %v3664_v2  ;;  %v3894_v19 = vunpack.c.h.bf16 %v3767_v0  ;;  %v5143_v23 = vpack.c.bf16 %v4042_v13, %v4041_v1  ;;  %v3505_v3 = vld [vmem:[#allocation2 + $0x390] sm:$0xff]  ;;  %v3774_v13 = vld [vmem:[%s6476_s6 + $0x1c8] sm:$0xff] }
 0x395   : > { %4600 = vst [vmem:[%s6478_s9 + $0x178] sm:$0xff] %v5142_v12  ;;  %v3667_v24 = vadd.f32 %v6852_v9, %v3493_v5  ;;  %v3668_v25 = vadd.f32 %v6854_v10, %v3494_v6  ;;  %v3895_v26 = vunpack.c.l.bf16 %v3768_v11  ;;  %v4045_v29 = vadd.f32 %v3893_v18, %v3665_v14  ;;  %v3506_v12 = vld [vmem:[#allocation2 + $0x398] sm:$0xff]  ;;  %v3507_v18 = vld [vmem:[#allocation2 + $0x3a0] sm:$0xff] }
 0x396   : > { %v5144_v28 = vpack.c.bf16 %v4044_v17, %v4043_v16  ;;  %v4046_v30 = vadd.f32 %v3894_v19, %v3666_v15  ;;  %v3896_v31 = vunpack.c.h.bf16 %v3768_v11  ;;  %4601 = vst [vmem:[%s6478_s9 + $0x180] sm:$0xff] %v5143_v23  ;;  %v3669_v35 = vadd.f32 %v6848_v7, %v3495_v20  ;;  %v3508_v19 = vld [vmem:[#allocation2 + $0x3a8] sm:$0xff] }
 0x397   : > { %v4047_v34 = vadd.f32 %v3895_v26, %v3667_v24  ;;  %v3670_v36 = vadd.f32 %v6850_v8, %v3496_v21  ;;  %v3897_v37 = vunpack.c.l.bf16 %v3769_v22  ;;  %v3898_v42 = vunpack.c.h.bf16 %v3769_v22  ;;  %v3775_v24 = vld [vmem:[%s6476_s6 + $0x1d0] sm:$0xff] }
 0x398   : > { %4602 = vst [vmem:[%s6478_s9 + $0x188] sm:$0xff] %v5144_v28  ;;  %v5145_v40 = vpack.c.bf16 %v4046_v30, %v4045_v29  ;;  %v4048_v41 = vadd.f32 %v3896_v31, %v3668_v25  ;;  %v3671_v43 = vadd.f32 %v6852_v9, %v3497_v27  ;;  %v3672_v46 = vadd.f32 %v6854_v10, %v3498_v32  ;;  %v3509_v29 = vld [vmem:[#allocation2 + $0x3b0] sm:$0xff]  ;;  %v3510_v30 = vld [vmem:[#allocation2 + $0x3b8] sm:$0xff] }
 0x399   : > { %v4049_v45 = vadd.f32 %v3897_v37, %v3669_v35  ;;  %v3899_v47 = vunpack.c.l.bf16 %v3770_v33  ;;  %v3900_v48 = vunpack.c.h.bf16 %v3770_v33  ;;  %v4050_v53 = vadd.f32 %v3898_v42, %v3670_v36  ;;  %v3776_v31 = vld [vmem:[%s6476_s6 + $0x1d8] sm:$0xff]  ;;  %v3777_v42 = vld [vmem:[%s6476_s6 + $0x1e0] sm:$0xff] }
 0x39a   : > { %4603 = vst [vmem:[%s6478_s9 + $0x190] sm:$0xff] %v5145_v40  ;;  %v5146_v52 = vpack.c.bf16 %v4048_v41, %v4047_v34  ;;  %v3673_v54 = vadd.f32 %v6848_v7, %v3499_v38  ;;  %v3674_v55 = vadd.f32 %v6850_v8, %v3500_v39  ;;  %v3901_v58 = vunpack.c.l.bf16 %v3771_v44  ;;  %v3511_v40 = vld [vmem:[#allocation2 + $0x3c0] sm:$0xff]  ;;  %v3512_v41 = vld [vmem:[#allocation2 + $0x3c8] sm:$0xff] }
 0x39b   : > { %v4051_v56 = vadd.f32 %v3899_v47, %v3671_v43  ;;  %v4052_v57 = vadd.f32 %v3900_v48, %v3672_v46  ;;  %v3902_v59 = vunpack.c.h.bf16 %v3771_v44  ;;  %v5147_v63 = vpack.c.bf16 %v4050_v53, %v4049_v45  ;;  %v3513_v47 = vld [vmem:[#allocation2 + $0x3d0] sm:$0xff]  ;;  %v3778_v53 = vld [vmem:[%s6476_s6 + $0x1e8] sm:$0xff] }
 0x39c   : > { %4604 = vst [vmem:[%s6478_s9 + $0x198] sm:$0xff] %v5146_v52  ;;  %v3675_v0 = vadd.f32 %v6852_v9, %v3501_v49  ;;  %v3676_v1 = vadd.f32 %v6854_v10, %v3502_v50  ;;  %v3903_v2 = vunpack.c.l.bf16 %v3772_v51  ;;  %v4053_v5 = vadd.f32 %v3901_v58, %v3673_v54  ;;  %v3514_v52 = vld [vmem:[#allocation2 + $0x3d8] sm:$0xff]  ;;  %v3515_v58 = vld [vmem:[#allocation2 + $0x3e0] sm:$0xff] }
 0x39d   : > { %v5148_v4 = vpack.c.bf16 %v4052_v57, %v4051_v56  ;;  %v4054_v6 = vadd.f32 %v3902_v59, %v3674_v55  ;;  %v3904_v11 = vunpack.c.h.bf16 %v3772_v51  ;;  %4605 = vst [vmem:[%s6478_s9 + $0x1a0] sm:$0xff] %v5147_v63  ;;  %v3677_v15 = vadd.f32 %v6848_v7, %v3503_v60  ;;  %v3516_v59 = vld [vmem:[#allocation2 + $0x3e8] sm:$0xff] }
 0x39e   : > { %v4055_v14 = vadd.f32 %v3903_v2, %v3675_v0  ;;  %v3678_v16 = vadd.f32 %v6850_v8, %v3504_v61  ;;  %v3905_v17 = vunpack.c.l.bf16 %v3773_v62  ;;  %v3906_v22 = vunpack.c.h.bf16 %v3773_v62  ;;  %v3779_v0 = vld [vmem:[%s6476_s6 + $0x1f0] sm:$0xff] }
 0x39f   : > { %4606 = vst [vmem:[%s6478_s9 + $0x1a8] sm:$0xff] %v5148_v4  ;;  %v5149_v20 = vpack.c.bf16 %v4054_v6, %v4053_v5  ;;  %v4056_v21 = vadd.f32 %v3904_v11, %v3676_v1  ;;  %v3679_v23 = vadd.f32 %v6852_v9, %v3505_v3  ;;  %v3680_v26 = vadd.f32 %v6854_v10, %v3506_v12  ;;  %v3517_v5 = vld [vmem:[#allocation2 + $0x3f0] sm:$0xff]  ;;  %v3518_v6 = vld [vmem:[#allocation2 + $0x3f8] sm:$0xff] }
 0x3a0   : > { %v4057_v25 = vadd.f32 %v3905_v17, %v3677_v15  ;;  %v3907_v27 = vunpack.c.l.bf16 %v3774_v13  ;;  %v3908_v28 = vunpack.c.h.bf16 %v3774_v13  ;;  %v4058_v33 = vadd.f32 %v3906_v22, %v3678_v16  ;;  %v3780_v11 = vld [vmem:[%s6476_s6 + $0x1f8] sm:$0xff]  ;;  %v3781_v22 = vld [vmem:[%s6476_s6 + $0x200] sm:$0xff] }
 0x3a1   : > { %4607 = vst [vmem:[%s6478_s9 + $0x1b0] sm:$0xff] %v5149_v20  ;;  %v5150_v32 = vpack.c.bf16 %v4056_v21, %v4055_v14  ;;  %v3681_v34 = vadd.f32 %v6848_v7, %v3507_v18  ;;  %v3682_v35 = vadd.f32 %v6850_v8, %v3508_v19  ;;  %v3909_v38 = vunpack.c.l.bf16 %v3775_v24  ;;  %v3519_v20 = vld [vmem:[#allocation2 + $0x400] sm:$0xff]  ;;  %v3520_v21 = vld [vmem:[#allocation2 + $0x408] sm:$0xff] }
 0x3a2   : > { %v4059_v36 = vadd.f32 %v3907_v27, %v3679_v23  ;;  %v4060_v37 = vadd.f32 %v3908_v28, %v3680_v26  ;;  %v3910_v39 = vunpack.c.h.bf16 %v3775_v24  ;;  %v5151_v43 = vpack.c.bf16 %v4058_v33, %v4057_v25  ;;  %v3521_v27 = vld [vmem:[#allocation2 + $0x410] sm:$0xff]  ;;  %v3782_v33 = vld [vmem:[%s6476_s6 + $0x208] sm:$0xff] }
 0x3a3   : > { %4608 = vst [vmem:[%s6478_s9 + $0x1b8] sm:$0xff] %v5150_v32  ;;  %v3683_v44 = vadd.f32 %v6852_v9, %v3509_v29  ;;  %v3684_v45 = vadd.f32 %v6854_v10, %v3510_v30  ;;  %v3911_v46 = vunpack.c.l.bf16 %v3776_v31  ;;  %v4061_v49 = vadd.f32 %v3909_v38, %v3681_v34  ;;  %v3522_v32 = vld [vmem:[#allocation2 + $0x418] sm:$0xff]  ;;  %v3523_v38 = vld [vmem:[#allocation2 + $0x420] sm:$0xff] }
 0x3a4   : > { %v5152_v48 = vpack.c.bf16 %v4060_v37, %v4059_v36  ;;  %v4062_v50 = vadd.f32 %v3910_v39, %v3682_v35  ;;  %v3912_v51 = vunpack.c.h.bf16 %v3776_v31  ;;  %4609 = vst [vmem:[%s6478_s9 + $0x1c0] sm:$0xff] %v5151_v43  ;;  %v3685_v55 = vadd.f32 %v6848_v7, %v3511_v40  ;;  %v3524_v39 = vld [vmem:[#allocation2 + $0x428] sm:$0xff] }
 0x3a5   : > { %v4063_v54 = vadd.f32 %v3911_v46, %v3683_v44  ;;  %v3686_v56 = vadd.f32 %v6850_v8, %v3512_v41  ;;  %v3913_v57 = vunpack.c.l.bf16 %v3777_v42  ;;  %v3914_v62 = vunpack.c.h.bf16 %v3777_v42  ;;  %v3783_v44 = vld [vmem:[%s6476_s6 + $0x210] sm:$0xff] }
 0x3a6   : > { %4610 = vst [vmem:[%s6478_s9 + $0x1c8] sm:$0xff] %v5152_v48  ;;  %v5153_v60 = vpack.c.bf16 %v4062_v50, %v4061_v49  ;;  %v4064_v61 = vadd.f32 %v3912_v51, %v3684_v45  ;;  %v3687_v63 = vadd.f32 %v6852_v9, %v3513_v47  ;;  %v3688_v2 = vadd.f32 %v6854_v10, %v3514_v52  ;;  %v3525_v49 = vld [vmem:[#allocation2 + $0x430] sm:$0xff]  ;;  %v3526_v50 = vld [vmem:[#allocation2 + $0x438] sm:$0xff] }
 0x3a7   : > { %v4065_v1 = vadd.f32 %v3913_v57, %v3685_v55  ;;  %v3915_v3 = vunpack.c.l.bf16 %v3778_v53  ;;  %v3916_v4 = vunpack.c.h.bf16 %v3778_v53  ;;  %v4066_v13 = vadd.f32 %v3914_v62, %v3686_v56  ;;  %v3784_v51 = vld [vmem:[%s6476_s6 + $0x218] sm:$0xff]  ;;  %v3785_v62 = vld [vmem:[%s6476_s6 + $0x220] sm:$0xff] }
 0x3a8   : > { %4611 = vst [vmem:[%s6478_s9 + $0x1d0] sm:$0xff] %v5153_v60  ;;  %v5154_v12 = vpack.c.bf16 %v4064_v61, %v4063_v54  ;;  %v3689_v14 = vadd.f32 %v6848_v7, %v3515_v58  ;;  %v3690_v15 = vadd.f32 %v6850_v8, %v3516_v59  ;;  %v3917_v18 = vunpack.c.l.bf16 %v3779_v0  ;;  %v3527_v60 = vld [vmem:[#allocation2 + $0x440] sm:$0xff]  ;;  %v3528_v61 = vld [vmem:[#allocation2 + $0x448] sm:$0xff] }
 0x3a9   : > { %v4067_v16 = vadd.f32 %v3915_v3, %v3687_v63  ;;  %v4068_v17 = vadd.f32 %v3916_v4, %v3688_v2  ;;  %v3918_v19 = vunpack.c.h.bf16 %v3779_v0  ;;  %v5155_v23 = vpack.c.bf16 %v4066_v13, %v4065_v1  ;;  %v3529_v3 = vld [vmem:[#allocation2 + $0x450] sm:$0xff]  ;;  %v3786_v13 = vld [vmem:[%s6476_s6 + $0x228] sm:$0xff] }
 0x3aa   : > { %4612 = vst [vmem:[%s6478_s9 + $0x1d8] sm:$0xff] %v5154_v12  ;;  %v3691_v24 = vadd.f32 %v6852_v9, %v3517_v5  ;;  %v3692_v25 = vadd.f32 %v6854_v10, %v3518_v6  ;;  %v3919_v26 = vunpack.c.l.bf16 %v3780_v11  ;;  %v4069_v29 = vadd.f32 %v3917_v18, %v3689_v14  ;;  %v3530_v12 = vld [vmem:[#allocation2 + $0x458] sm:$0xff]  ;;  %v3531_v18 = vld [vmem:[#allocation2 + $0x460] sm:$0xff] }
 0x3ab   : > { %v5156_v28 = vpack.c.bf16 %v4068_v17, %v4067_v16  ;;  %v4070_v30 = vadd.f32 %v3918_v19, %v3690_v15  ;;  %v3920_v31 = vunpack.c.h.bf16 %v3780_v11  ;;  %4613 = vst [vmem:[%s6478_s9 + $0x1e0] sm:$0xff] %v5155_v23  ;;  %v3693_v35 = vadd.f32 %v6848_v7, %v3519_v20  ;;  %v3532_v19 = vld [vmem:[#allocation2 + $0x468] sm:$0xff] }
 0x3ac   : > { %v4071_v34 = vadd.f32 %v3919_v26, %v3691_v24  ;;  %v3694_v36 = vadd.f32 %v6850_v8, %v3520_v21  ;;  %v3921_v37 = vunpack.c.l.bf16 %v3781_v22  ;;  %v3922_v42 = vunpack.c.h.bf16 %v3781_v22  ;;  %v3787_v24 = vld [vmem:[%s6476_s6 + $0x230] sm:$0xff] }
 0x3ad   : > { %4614 = vst [vmem:[%s6478_s9 + $0x1e8] sm:$0xff] %v5156_v28  ;;  %v5157_v40 = vpack.c.bf16 %v4070_v30, %v4069_v29  ;;  %v4072_v41 = vadd.f32 %v3920_v31, %v3692_v25  ;;  %v3695_v43 = vadd.f32 %v6852_v9, %v3521_v27  ;;  %v3696_v46 = vadd.f32 %v6854_v10, %v3522_v32  ;;  %v3533_v29 = vld [vmem:[#allocation2 + $0x470] sm:$0xff]  ;;  %v3534_v30 = vld [vmem:[#allocation2 + $0x478] sm:$0xff] }
 0x3ae   : > { %v4073_v45 = vadd.f32 %v3921_v37, %v3693_v35  ;;  %v3923_v47 = vunpack.c.l.bf16 %v3782_v33  ;;  %v3924_v48 = vunpack.c.h.bf16 %v3782_v33  ;;  %v4074_v53 = vadd.f32 %v3922_v42, %v3694_v36  ;;  %v3788_v31 = vld [vmem:[%s6476_s6 + $0x238] sm:$0xff]  ;;  %v3789_v42 = vld [vmem:[%s6476_s6 + $0x240] sm:$0xff] }
 0x3af   : > { %4615 = vst [vmem:[%s6478_s9 + $0x1f0] sm:$0xff] %v5157_v40  ;;  %v5158_v52 = vpack.c.bf16 %v4072_v41, %v4071_v34  ;;  %v3697_v54 = vadd.f32 %v6848_v7, %v3523_v38  ;;  %v3698_v55 = vadd.f32 %v6850_v8, %v3524_v39  ;;  %v3925_v58 = vunpack.c.l.bf16 %v3783_v44  ;;  %v3535_v40 = vld [vmem:[#allocation2 + $0x480] sm:$0xff]  ;;  %v3536_v41 = vld [vmem:[#allocation2 + $0x488] sm:$0xff] }
 0x3b0   : > { %v4075_v56 = vadd.f32 %v3923_v47, %v3695_v43  ;;  %v4076_v57 = vadd.f32 %v3924_v48, %v3696_v46  ;;  %v3926_v59 = vunpack.c.h.bf16 %v3783_v44  ;;  %v5159_v63 = vpack.c.bf16 %v4074_v53, %v4073_v45  ;;  %v3537_v47 = vld [vmem:[#allocation2 + $0x490] sm:$0xff]  ;;  %v3790_v53 = vld [vmem:[%s6476_s6 + $0x248] sm:$0xff] }
 0x3b1   : > { %4616 = vst [vmem:[%s6478_s9 + $0x1f8] sm:$0xff] %v5158_v52  ;;  %v3699_v0 = vadd.f32 %v6852_v9, %v3525_v49  ;;  %v3700_v1 = vadd.f32 %v6854_v10, %v3526_v50  ;;  %v3927_v2 = vunpack.c.l.bf16 %v3784_v51  ;;  %v4077_v5 = vadd.f32 %v3925_v58, %v3697_v54  ;;  %v3538_v52 = vld [vmem:[#allocation2 + $0x498] sm:$0xff]  ;;  %v3539_v58 = vld [vmem:[#allocation2 + $0x4a0] sm:$0xff] }
 0x3b2   : > { %v5160_v4 = vpack.c.bf16 %v4076_v57, %v4075_v56  ;;  %v4078_v6 = vadd.f32 %v3926_v59, %v3698_v55  ;;  %v3928_v11 = vunpack.c.h.bf16 %v3784_v51  ;;  %4617 = vst [vmem:[%s6478_s9 + $0x200] sm:$0xff] %v5159_v63  ;;  %v3701_v15 = vadd.f32 %v6848_v7, %v3527_v60  ;;  %v3540_v59 = vld [vmem:[#allocation2 + $0x4a8] sm:$0xff] }
 0x3b3   : > { %v4079_v14 = vadd.f32 %v3927_v2, %v3699_v0  ;;  %v3702_v16 = vadd.f32 %v6850_v8, %v3528_v61  ;;  %v3929_v17 = vunpack.c.l.bf16 %v3785_v62  ;;  %v3930_v22 = vunpack.c.h.bf16 %v3785_v62  ;;  %v3791_v0 = vld [vmem:[%s6476_s6 + $0x250] sm:$0xff] }
 0x3b4   : > { %4618 = vst [vmem:[%s6478_s9 + $0x208] sm:$0xff] %v5160_v4  ;;  %v5161_v20 = vpack.c.bf16 %v4078_v6, %v4077_v5  ;;  %v4080_v21 = vadd.f32 %v3928_v11, %v3700_v1  ;;  %v3703_v23 = vadd.f32 %v6852_v9, %v3529_v3  ;;  %v3704_v26 = vadd.f32 %v6854_v10, %v3530_v12  ;;  %v3541_v5 = vld [vmem:[#allocation2 + $0x4b0] sm:$0xff]  ;;  %v3542_v6 = vld [vmem:[#allocation2 + $0x4b8] sm:$0xff] }
 0x3b5   : > { %v4081_v25 = vadd.f32 %v3929_v17, %v3701_v15  ;;  %v3931_v27 = vunpack.c.l.bf16 %v3786_v13  ;;  %v3932_v28 = vunpack.c.h.bf16 %v3786_v13  ;;  %v4082_v33 = vadd.f32 %v3930_v22, %v3702_v16  ;;  %v3792_v11 = vld [vmem:[%s6476_s6 + $0x258] sm:$0xff] }
 0x3b6   : > { %4619 = vst [vmem:[%s6478_s9 + $0x210] sm:$0xff] %v5161_v20  ;;  %v5162_v32 = vpack.c.bf16 %v4080_v21, %v4079_v14  ;;  %v3705_v34 = vadd.f32 %v6848_v7, %v3531_v18  ;;  %v3706_v35 = vadd.f32 %v6850_v8, %v3532_v19  ;;  %v3933_v38 = vunpack.c.l.bf16 %v3787_v24 }
 0x3b7   : > { %v4083_v36 = vadd.f32 %v3931_v27, %v3703_v23  ;;  %v4084_v37 = vadd.f32 %v3932_v28, %v3704_v26  ;;  %v3934_v39 = vunpack.c.h.bf16 %v3787_v24  ;;  %v5163_v43 = vpack.c.bf16 %v4082_v33, %v4081_v25 }
 0x3b8   : > { %4620 = vst [vmem:[%s6478_s9 + $0x218] sm:$0xff] %v5162_v32  ;;  %v3707_v44 = vadd.f32 %v6852_v9, %v3533_v29  ;;  %v3708_v45 = vadd.f32 %v6854_v10, %v3534_v30  ;;  %v3935_v46 = vunpack.c.l.bf16 %v3788_v31  ;;  %v4085_v49 = vadd.f32 %v3933_v38, %v3705_v34 }
 0x3b9   : > { %v5164_v48 = vpack.c.bf16 %v4084_v37, %v4083_v36  ;;  %v4086_v50 = vadd.f32 %v3934_v39, %v3706_v35  ;;  %v3936_v51 = vunpack.c.h.bf16 %v3788_v31  ;;  %4621 = vst [vmem:[%s6478_s9 + $0x220] sm:$0xff] %v5163_v43  ;;  %v3709_v55 = vadd.f32 %v6848_v7, %v3535_v40 }
 0x3ba   : > { %v4087_v54 = vadd.f32 %v3935_v46, %v3707_v44  ;;  %v3710_v56 = vadd.f32 %v6850_v8, %v3536_v41  ;;  %v3937_v57 = vunpack.c.l.bf16 %v3789_v42  ;;  %v3938_v62 = vunpack.c.h.bf16 %v3789_v42 }
 0x3bb   : > { %4622 = vst [vmem:[%s6478_s9 + $0x228] sm:$0xff] %v5164_v48  ;;  %v5165_v60 = vpack.c.bf16 %v4086_v50, %v4085_v49  ;;  %v4088_v61 = vadd.f32 %v3936_v51, %v3708_v45  ;;  %v3711_v63 = vadd.f32 %v6852_v9, %v3537_v47  ;;  %v3712_v2 = vadd.f32 %v6854_v10, %v3538_v52 }
 0x3bc   : > { %v4089_v1 = vadd.f32 %v3937_v57, %v3709_v55  ;;  %v3939_v3 = vunpack.c.l.bf16 %v3790_v53  ;;  %v3940_v4 = vunpack.c.h.bf16 %v3790_v53  ;;  %v4090_v13 = vadd.f32 %v3938_v62, %v3710_v56 }
 0x3bd   : > { %4623 = vst [vmem:[%s6478_s9 + $0x230] sm:$0xff] %v5165_v60  ;;  %v5166_v12 = vpack.c.bf16 %v4088_v61, %v4087_v54  ;;  %v3713_v14 = vadd.f32 %v6848_v7, %v3539_v58  ;;  %v3714_v15 = vadd.f32 %v6850_v8, %v3540_v59  ;;  %v3941_v18 = vunpack.c.l.bf16 %v3791_v0 }
 0x3be   : > { %v4091_v16 = vadd.f32 %v3939_v3, %v3711_v63  ;;  %v4092_v17 = vadd.f32 %v3940_v4, %v3712_v2  ;;  %v3942_v19 = vunpack.c.h.bf16 %v3791_v0  ;;  %v5167_v20 = vpack.c.bf16 %v4090_v13, %v4089_v1 }
 0x3bf   : > { %4624 = vst [vmem:[%s6478_s9 + $0x238] sm:$0xff] %v5166_v12  ;;  %v3715_v21 = vadd.f32 %v6852_v9, %v3541_v5  ;;  %v3716_v22 = vadd.f32 %v6854_v10, %v3542_v6  ;;  %v3943_v23 = vunpack.c.l.bf16 %v3792_v11  ;;  %v4093_v25 = vadd.f32 %v3941_v18, %v3713_v14 }
 0x3c0   : > { %v5168_v24 = vpack.c.bf16 %v4092_v17, %v4091_v16  ;;  %v4094_v26 = vadd.f32 %v3942_v19, %v3714_v15  ;;  %v3944_v7 = vunpack.c.h.bf16 %v3792_v11  ;;  %4625 = vst [vmem:[%s6478_s9 + $0x240] sm:$0xff] %v5167_v20 }
 0x3c1   : > { %v4095_v8 = vadd.f32 %v3943_v23, %v3715_v21 }
 0x3c2   : > { %4626 = vst [vmem:[%s6478_s9 + $0x248] sm:$0xff] %v5168_v24  ;;  %v5169_v27 = vpack.c.bf16 %v4094_v26, %v4093_v25  ;;  %v4096_v28 = vadd.f32 %v3944_v7, %v3716_v22 }
 0x3c4   : > { %4627 = vst [vmem:[%s6478_s9 + $0x250] sm:$0xff] %v5169_v27  ;;  %v5170_v29 = vpack.c.bf16 %v4096_v28, %v4095_v8 }
 0x3c6   : > { %4628 = vst [vmem:[%s6478_s9 + $0x258] sm:$0xff] %v5170_v29 }
 0x3c7 PF: > { %s5171_s23 = sshll.u32 %s5908_s24, 8  ;;  %s4646_s8 = sshll.u32 %s6478_s9, 4  ;;  %s7162_s8 = int_to_ptr.vmem [resolvable:$true] %s4646_s8 }
 0x3c8   : > { %s7159_s10 = scalar_lea.hbm %s7243_s4, %s5171_s23  ;;  %s7166_s28 = scalar_lea.sflag [#allocation6], %s608_s11 }
 0x3c9   : > { %s5782_s20 = scalar_lea.vmem %s7162_s8, 9728  ;;  %p7269_p5 = scmp.ne.s32.totalorder %s7264_s7, 0 }
 0x3ca   : > { %p5783_p4 = scmp.ne.s32.totalorder %s7162_s8, %s5782_s20  ;;  %s5927_s24 = smov [#allocation8]  }
 0x3cb   : > { %s5786_s0 = sshll.u32 %s5927_s24, 4  ;;  %s5787_s0 = int_to_ptr.vmem [resolvable:$false] %s5786_s0 }
 0x3cc   : > { %p5784_p9 = pnand %p5783_p4, %p7269_p5  ;;  %s5788_s13 = scalar_lea.vmem %s5787_s0, 19456 }
 0x3cd   : > { %p5789_p3 = scmp.lt.s32.totalorder %s7162_s8, %s5787_s0  ;;  %p5790_p11 = scmp.lt.s32.totalorder %s5788_s13, %s5782_s20 }
 0x3ce   : > { %p5785_p2 = pneg %p5784_p9 }
 0x3cf   : > { %p5791_p13 = por %p5790_p11, %p5789_p3 }
 0x3d1   : > { %p5792_p7 = pnand %p5791_p13, %p5785_p2 }
 0x3d3   : > { %5795 = shalt.err (!%p5792_p7)
}
 0x3d4   : > { %s5796_s11 = scalar_lea.hbm %s7159_s10, 9728  ;;  %s5800_s18 = scalar_lea.hbm %s7243_s4, 19456 }
 0x3d5   : > { %p5797_p12 = scmp.ne.s32.totalorder %s7159_s10, %s5796_s11  ;;  %p5801_p8 = scmp.lt.u32.totalorder %s7159_s10, %s7243_s4 }
 0x3d6   : > { %p5802_p10 = scmp.lt.u32.totalorder %s5800_s18, %s5796_s11  ;;  %p5804_p4 = scmp.lt.u32.totalorder %s5796_s11, %s7159_s10 }
 0x3d7   : > { %p5798_p0 = pnand %p5797_p12, %p7269_p5 }
 0x3d8   : > { %p5803_p1 = por %p5802_p10, %p5801_p8 }
 0x3d9   : > { %p5799_p6 = pneg %p5798_p0 }
 0x3da   : > { %p5805_p9 = por %p5804_p4, %p5803_p1 }
 0x3dc   : > { %p5806_p2 = pnand %p5805_p9, %p5799_p6 }
 0x3de   : > { %5809 = shalt.err (!%p5806_p2)
}
 0x3df   : > { %s5928_s9 = smov 256   ;;  %s5929_s30 = smov 512  }
 0x3e0   : > { %s5930_s22 = smov 16  }
 0x3e1   : > { %5330 = dma.vmem_to_hbm [thread:$0]  (%p7269_p5), %s7162_s8, 9728, %s7159_s10, %s7166_s28, %s5928_s9, %s5929_s30, %s5930_s22  }
 0x3e2 PF: > { %s7270_s23 = sld [smem:[#allocation18_spill]]  ;;  %p5336_p3 = scmp.ge.s32.totalorder %s5920_s27, 2 }
 0x3e3   : > { %s4661_s5 = sand.u32 1, %s5872_s15  }
 0x3e4   : > { %s4662_s12 = scalar_lea.sflag [#allocation6], %s4661_s5 }
 0x3e8   : > { %p7271_p11 = scmp.ne.s32.totalorder %s7270_s23, 0 }
 0x3ea   : > { %p5333_p13 = pnand %p5336_p3, %p7271_p11 }
 0x3ec   : > { %5867 = dma.done.wait (!%p5333_p13), %s4662_s12, 9728  }
 0x3ed   : > { %5869 = vsyncadd (!%p5333_p13), %s4662_s12, 4294957568  ;;  %s20_s27 = sadd.s32 1, %s5920_s27   ;;  %s7273_s7 = sld [smem:[#allocation17_spill]] }
 0x3ee   : > { %p7195_p7 = scmp.ge.s32.totalorder %s20_s27, 14   ;;  %s7274_s10 = sld [smem:[#allocation11_spill]] }
 0x3ef   : > { %s7275_s8 = sld [smem:[#allocation16_spill]]  ;;  %s7276_s21 = sld [smem:[#allocation12_spill]] }
 0x3f0   : > { %s7277_s22 = sld [smem:[#allocation15_spill]]  ;;  %s7278_s28 = sld [smem:[#allocation13_spill]] }
 0x3f1   : > { %s7279_s0 = sld [smem:[#allocation14_spill]]  ;;  %s7281_s15 = smov %s5876_s16 }
 0x3f2   : > { %s7282_s16 = smov %s5880_s17  ;;  %s7284_s18 = smov %s5888_s19 }
 0x3f3   : > { %s7283_s17 = smov %s7273_s7  ;;  %s7287_s23 = smov %s5912_s25 }
 0x3f4   : > { %s7285_s19 = smov %s7274_s10  ;;  %s7288_s24 = smov %s5916_s26 }
 0x3f5   : > { %s7286_s20 = smov %s7275_s8  ;;  %19 = sbr.rel (!%p7195_p7) target bundleno = 12 (0xc), region = 154 }
 0x3f6   : > { %s7289_s25 = smov %s7278_s28 }
 0x3f7   : > { %s7290_s26 = smov %s7279_s0 }
 0x3fc   :  { %4667 = vsyncpa [#allocation5], 1 }
 0x3fd   :  { %4669 = vsyncpa [#allocation5 + $0x1], 1 }
 0x3fe   :  { %4670 = vsyncpa [#allocation6], 1 }
 0x3ff   :  { %4672 = vsyncpa [#allocation6 + $0x1], 1 }

</bundles_post_ra>
